<compile_context>
chip_gen: v7x
topology: tpu7x:2x2x1
jax: 0.10.0
libtpu: 0.0.40
codegen_flags: <defaults>
</compile_context>

<pallas_src>
import functools

import jax
import jax.numpy as jnp
from jax.experimental import pallas as pl
from jax.experimental.pallas import tpu as pltpu

LEAKY_SLOPE = 0.1   # matches F.leaky_relu(x, 0.1) in the reference module
BN_EPS = 1e-5


# ---------------------------------------------------------------------------
# Pallas kernels
# ---------------------------------------------------------------------------

def _gemm_bias_act_kernel(x_ref, w_ref, b_ref, o_ref, *, act):
    """out = act(x @ w + b); x:(TM,K) bf16, w:(K,TN) bf16, b:(1,TN) f32."""
    acc = jnp.dot(x_ref[...], w_ref[...], preferred_element_type=jnp.float32)
    acc = acc + b_ref[...]
    if act == "leaky":
        acc = jnp.where(acc >= 0, acc, LEAKY_SLOPE * acc)
    elif act == "relu":
        acc = jnp.maximum(acc, 0.0)
    o_ref[...] = acc.astype(o_ref.dtype)


def _gemm_bn_leaky_kernel(x_ref, w_ref, g_ref, b_ref, o_ref):
    """out = leaky_relu(BN(x @ w)); full M rows per block (batch statistics),
    grid only over channel tiles.  Single-pass variance (E[x^2]-E[x]^2)."""
    acc = jnp.dot(x_ref[...], w_ref[...], preferred_element_type=jnp.float32)
    mean = jnp.mean(acc, axis=0, keepdims=True)
    var = jnp.mean(acc * acc, axis=0, keepdims=True) - mean * mean
    y = (acc - mean) * jax.lax.rsqrt(var + BN_EPS) * g_ref[...] + b_ref[...]
    o_ref[...] = jnp.where(y >= 0, y, LEAKY_SLOPE * y)


# ---------------------------------------------------------------------------
# Pallas wrappers
# ---------------------------------------------------------------------------

def pallas_gemm_bias_act(x, w, b, act, tm_max=256, tn_max=256):
    """act(x @ w + b), tiled over (M, N); full K per block; bf16 MXU inputs."""
    M, K = x.shape
    K2, Nf = w.shape
    assert K == K2
    TM = M if M <= tm_max else tm_max
    TN = Nf if Nf <= tn_max else tn_max
    grid = (pl.cdiv(M, TM), pl.cdiv(Nf, TN))

    xb = x.astype(jnp.bfloat16)
    wb = w.astype(jnp.bfloat16)
    bf = b.astype(jnp.float32).reshape(1, Nf)

    return pl.pallas_call(
        functools.partial(_gemm_bias_act_kernel, act=act),
        out_shape=jax.ShapeDtypeStruct((M, Nf), jnp.float32),
        grid=grid,
        in_specs=[
            pl.BlockSpec((TM, K), lambda i, j: (i, 0)),
            pl.BlockSpec((K, TN), lambda i, j: (0, j)),
            pl.BlockSpec((1, TN), lambda i, j: (0, j)),
        ],
        out_specs=pl.BlockSpec((TM, TN), lambda i, j: (i, j)),
        compiler_params=pltpu.CompilerParams(
            dimension_semantics=("parallel", "parallel")),
    )(xb, wb, bf)


def pallas_gemm_bn_leaky(x, w, gamma, beta, tn_max=256):
    """leaky_relu(BN(x @ w)) with BN fused into the GEMM epilogue.

    All M rows live in one block (required for per-channel batch statistics);
    fine for MNIST-sized batches (conv2: M = batch*49, conv3: M = batch).
    """
    M, K = x.shape
    K2, Nf = w.shape
    assert K == K2
    TN = Nf if Nf <= tn_max else tn_max
    assert Nf % TN == 0
    grid = (Nf // TN,)

    xb = x.astype(jnp.bfloat16)
    wb = w.astype(jnp.bfloat16)
    g = gamma.astype(jnp.float32).reshape(1, Nf)
    b = beta.astype(jnp.float32).reshape(1, Nf)

    return pl.pallas_call(
        _gemm_bn_leaky_kernel,
        out_shape=jax.ShapeDtypeStruct((M, Nf), jnp.float32),
        grid=grid,
        in_specs=[
            pl.BlockSpec((M, K), lambda j: (0, 0)),
            pl.BlockSpec((K, TN), lambda j: (0, j)),
            pl.BlockSpec((1, TN), lambda j: (0, j)),
            pl.BlockSpec((1, TN), lambda j: (0, j)),
        ],
        out_specs=pl.BlockSpec((M, TN), lambda j: (0, j)),
        compiler_params=pltpu.CompilerParams(
            dimension_semantics=("parallel",)),
    )(xb, wb, g, b)


# ---------------------------------------------------------------------------
# Glue: im2col (NHWC, plain JAX) and parameter packing
# ---------------------------------------------------------------------------

def im2col_nhwc(x, kh, kw, stride, pad):
    """x: (N, H, W, C) -> patches (N*Ho*Wo, C*kh*kw); column order matches
    PyTorch Conv2d weight flattening (Cin major, then kh, kw)."""
    N, H, W, C = x.shape
    if pad:
        x = jnp.pad(x, ((0, 0), (pad, pad), (pad, pad), (0, 0)))
    Ho = (H + 2 * pad - kh) // stride + 1
    Wo = (W + 2 * pad - kw) // stride + 1
    cols = []
    for i in range(kh):
        for j in range(kw):
            cols.append(x[:, i:i + stride * Ho:stride, j:j + stride * Wo:stride, :])
    patches = jnp.stack(cols, axis=3)             # (N, Ho, Wo, kh*kw, C)
    patches = patches.transpose(0, 1, 2, 4, 3)    # (N, Ho, Wo, C, kh*kw)
    return patches.reshape(N * Ho * Wo, C * kh * kw), Ho, Wo


def pack_params(p):
    """Done once, OUTSIDE the jitted forward: conv weights -> GEMM matrices
    (bf16), fc1 weight pre-transposed, BN/bias params kept f32."""
    def w2m(w):  # (Cout, Cin, kh, kw) -> (Cin*kh*kw, Cout)
        return jnp.asarray(w).reshape(w.shape[0], -1).T
    return {
        "conv1_w": w2m(p["conv1_w"]).astype(jnp.bfloat16),   # (16, 64)
        "conv1_b": p["conv1_b"].astype(jnp.float32),
        "conv2_w": w2m(p["conv2_w"]).astype(jnp.bfloat16),   # (1024, 128)
        "bn2_g": p["bn2_g"].astype(jnp.float32),
        "bn2_b": p["bn2_b"].astype(jnp.float32),
        "conv3_w": w2m(p["conv3_w"]).astype(jnp.bfloat16),   # (6272, 1024)
        "bn3_g": p["bn3_g"].astype(jnp.float32),
        "bn3_b": p["bn3_b"].astype(jnp.float32),
        "fc1_w": p["fc1_w"].T.astype(jnp.bfloat16),          # (1024, 256)
        "fc1_b": p["fc1_b"].astype(jnp.float32),
    }


# ---------------------------------------------------------------------------
# Forward pass
# ---------------------------------------------------------------------------

def encoder_forward(pp, x):
    """x: (N, 1, 28, 28) float32 (NCHW, like PyTorch) -> (N, 256) float32."""
    N = x.shape[0]
    xh = jnp.transpose(x, (0, 2, 3, 1))                       # NHWC once

    # conv1: 1->64, k4 s2 p1, bias, leaky_relu(0.1)
    p, ho, wo = im2col_nhwc(xh, 4, 4, 2, 1)                   # (N*196, 16)
    h1 = pallas_gemm_bias_act(p, pp["conv1_w"], pp["conv1_b"], act="leaky")
    h1 = h1.reshape(N, ho, wo, 64)                            # NHWC, no transpose

    # conv2: 64->128, k4 s2 p1, no bias; fused bn2 + leaky_relu
    p, ho, wo = im2col_nhwc(h1, 4, 4, 2, 1)                   # (N*49, 1024)
    h2 = pallas_gemm_bn_leaky(p, pp["conv2_w"], pp["bn2_g"], pp["bn2_b"])
    h2 = h2.reshape(N, ho, wo, 128)

    # conv3: 128->1024, k7 valid, no bias; fused bn3 + leaky_relu
    p, _, _ = im2col_nhwc(h2, 7, 7, 1, 0)                     # (N, 6272)
    h3 = pallas_gemm_bn_leaky(p, pp["conv3_w"], pp["bn3_g"], pp["bn3_b"])  # (N,1024)

    # x.view(-1, 1024): spatial is 1x1 so h3 already matches.
    # fc1: 1024 -> 256, bias, relu
    return pallas_gemm_bias_act(h3, pp["fc1_w"], pp["fc1_b"], act="relu")


def init_params(key):
    ks = jax.random.split(key, 10)
    s = 0.05
    return {
        "conv1_w": s * jax.random.normal(ks[0], (64, 1, 4, 4), jnp.float32),
        "conv1_b": s * jax.random.normal(ks[1], (64,), jnp.float32),
        "conv2_w": s * jax.random.normal(ks[2], (128, 64, 4, 4), jnp.float32),
        "bn2_g": 1.0 + s * jax.random.normal(ks[3], (128,), jnp.float32),
        "bn2_b": s * jax.random.normal(ks[4], (128,), jnp.float32),
        "conv3_w": s * jax.random.normal(ks[5], (1024, 128, 7, 7), jnp.float32),
        "bn3_g": 1.0 + s * jax.random.normal(ks[6], (1024,), jnp.float32),
        "bn3_b": s * jax.random.normal(ks[7], (1024,), jnp.float32),
        "fc1_w": s * jax.random.normal(ks[8], (256, 1024), jnp.float32),
        "fc1_b": s * jax.random.normal(ks[9], (256,), jnp.float32),
    }


if __name__ == "__main__":
    key = jax.random.PRNGKey(0)
    pkey, xkey = jax.random.split(key)
    params = init_params(pkey)
    packed = pack_params(params)                  # one-time packing outside jit

    # MNIST-sized input required by the 7x7 valid conv3: (N, 1, 28, 28)
    x = jax.random.normal(xkey, (2, 1, 28, 28), jnp.float32)

    out = jax.jit(encoder_forward)(packed, x)
    out = jax.block_until_ready(out)
    assert out.shape == (2, 256) and out.dtype == jnp.float32
    print("KERNEL_OK")
</pallas_src>

<mosaic_0001>
module attributes {stable_mosaic.version = 11 : i64} {
  func.func @_gemm_bias_act_kernel(%arg0: i32, %arg1: i32, %arg2: memref<256x16xbf16, #tpu.memory_space<vmem>>, %arg3: memref<16x64xbf16, #tpu.memory_space<vmem>>, %arg4: memref<1x64xf32, #tpu.memory_space<vmem>>, %arg5: memref<256x64xf32, #tpu.memory_space<vmem>>) attributes {dimension_semantics = [#tpu.dimension_semantics<parallel>, #tpu.dimension_semantics<parallel>], iteration_bounds = array<i64: 2, 1>, scalar_prefetch = 0 : i64, scratch_operands = 0 : i64, tpu.core_type = #tpu.core_type<tc>, window_params = [{transform_indices = @transform_0, window_bounds = array<i64: 256, 16>}, {transform_indices = @transform_1, window_bounds = array<i64: 16, 64>}, {transform_indices = @transform_2, window_bounds = array<i64: 1, 64>}, {transform_indices = @transform_3, window_bounds = array<i64: 256, 64>}]} {
    %c0 = arith.constant 0 : index
    %c0_0 = arith.constant 0 : index
    %0 = vector.load %arg2[%c0, %c0_0] : memref<256x16xbf16, #tpu.memory_space<vmem>>, vector<256x16xbf16>
    %c0_1 = arith.constant 0 : index
    %c0_2 = arith.constant 0 : index
    %1 = vector.load %arg3[%c0_1, %c0_2] : memref<16x64xbf16, #tpu.memory_space<vmem>>, vector<16x64xbf16>
    %cst = arith.constant dense<0.000000e+00> : vector<256x64xf32>
    %2 = tpu.matmul %0, %1, %cst {dimension_numbers = #tpu.dot_dimension_numbers<[1], [0], [0], [1], [0, 0, 1, 1], [], []>} : vector<256x16xbf16>, vector<16x64xbf16>, vector<256x64xf32> -> vector<256x64xf32>
    %c0_3 = arith.constant 0 : index
    %c0_4 = arith.constant 0 : index
    %3 = vector.load %arg4[%c0_3, %c0_4] : memref<1x64xf32, #tpu.memory_space<vmem>>, vector<1x64xf32>
    %4 = vector.broadcast %3 : vector<1x64xf32> to vector<256x64xf32>
    %5 = arith.addf %2, %4 : vector<256x64xf32>
    %cst_5 = arith.constant 0.000000e+00 : f32
    %6 = vector.broadcast %cst_5 : f32 to vector<256x64xf32>
    %7 = arith.cmpf oge, %5, %6 : vector<256x64xf32>
    %cst_6 = arith.constant 1.000000e-01 : f32
    %8 = vector.broadcast %cst_6 : f32 to vector<256x64xf32>
    %9 = arith.mulf %8, %5 : vector<256x64xf32>
    %10 = arith.select %7, %5, %9 : vector<256x64xi1>, vector<256x64xf32>
    %c0_7 = arith.constant 0 : index
    %c0_8 = arith.constant 0 : index
    %11 = vector.load %arg5[%c0_7, %c0_8] : memref<256x64xf32, #tpu.memory_space<vmem>>, vector<256x64xf32>
    tpu.vector_store %arg5[%c0_7, %c0_8], %10 {strides = array<i32>} : memref<256x64xf32, #tpu.memory_space<vmem>>, vector<256x64xf32>,
    return
  }
  func.func @transform_0(%arg0: i32, %arg1: i32) -> (i32, i32) {
    %c0_i32 = arith.constant 0 : i32
    %c0_i32_0 = arith.constant 0 : i32
    return %arg0, %c0_i32 : i32, i32
  }
  func.func @transform_1(%arg0: i32, %arg1: i32) -> (i32, i32) {
    %c0_i32 = arith.constant 0 : i32
    %c0_i32_0 = arith.constant 0 : i32
    return %c0_i32, %arg1 : i32, i32
  }
  func.func @transform_2(%arg0: i32, %arg1: i32) -> (i32, i32) {
    %c0_i32 = arith.constant 0 : i32
    %c0_i32_0 = arith.constant 0 : i32
    return %c0_i32, %arg1 : i32, i32
  }
  func.func @transform_3(%arg0: i32, %arg1: i32) -> (i32, i32) {
    %c0_i32 = arith.constant 0 : i32
    return %arg0, %arg1 : i32, i32
  }
}

module attributes {stable_mosaic.version = 11 : i64} {
  func.func @_gemm_bn_leaky_kernel(%arg0: i32, %arg1: memref<98x1024xbf16, #tpu.memory_space<vmem>>, %arg2: memref<1024x128xbf16, #tpu.memory_space<vmem>>, %arg3: memref<1x128xf32, #tpu.memory_space<vmem>>, %arg4: memref<1x128xf32, #tpu.memory_space<vmem>>, %arg5: memref<98x128xf32, #tpu.memory_space<vmem>>) attributes {dimension_semantics = [#tpu.dimension_semantics<parallel>], iteration_bounds = array<i64: 1>, scalar_prefetch = 0 : i64, scratch_operands = 0 : i64, tpu.core_type = #tpu.core_type<tc>, window_params = [{pipeline_mode = #tpu.pipeline_mode<synchronous>, transform_indices = @transform_0, window_bounds = array<i64: 98, 1024>}, {transform_indices = @transform_1, window_bounds = array<i64: 1024, 128>}, {transform_indices = @transform_2, window_bounds = array<i64: 1, 128>}, {transform_indices = @transform_3, window_bounds = array<i64: 1, 128>}, {transform_indices = @transform_4, window_bounds = array<i64: 98, 128>}]} {
    %c0 = arith.constant 0 : index
    %c0_0 = arith.constant 0 : index
    %0 = vector.load %arg1[%c0, %c0_0] : memref<98x1024xbf16, #tpu.memory_space<vmem>>, vector<98x1024xbf16>
    %c0_1 = arith.constant 0 : index
    %c0_2 = arith.constant 0 : index
    %1 = vector.load %arg2[%c0_1, %c0_2] : memref<1024x128xbf16, #tpu.memory_space<vmem>>, vector<1024x128xbf16>
    %cst = arith.constant dense<0.000000e+00> : vector<98x128xf32>
    %2 = tpu.matmul %0, %1, %cst {dimension_numbers = #tpu.dot_dimension_numbers<[1], [0], [0], [1], [0, 0, 1, 1], [], []>} : vector<98x1024xbf16>, vector<1024x128xbf16>, vector<98x128xf32> -> vector<98x128xf32>
    %cst_3 = arith.constant dense<0.000000e+00> : vector<128xf32>
    %3 = vector.multi_reduction <add>, %2, %cst_3 [0] : vector<98x128xf32> to vector<128xf32>
    %4 = vector.shape_cast %3 : vector<128xf32> to vector<1x128xf32>
    %cst_4 = arith.constant 9.800000e+01 : f32
    %5 = vector.broadcast %cst_4 : f32 to vector<1x128xf32>
    %6 = arith.divf %4, %5 : vector<1x128xf32>
    %7 = arith.mulf %2, %2 : vector<98x128xf32>
    %cst_5 = arith.constant dense<0.000000e+00> : vector<128xf32>
    %8 = vector.multi_reduction <add>, %7, %cst_5 [0] : vector<98x128xf32> to vector<128xf32>
    %9 = vector.shape_cast %8 : vector<128xf32> to vector<1x128xf32>
    %cst_6 = arith.constant 9.800000e+01 : f32
    %10 = vector.broadcast %cst_6 : f32 to vector<1x128xf32>
    %11 = arith.divf %9, %10 : vector<1x128xf32>
    %12 = arith.mulf %6, %6 : vector<1x128xf32>
    %13 = arith.subf %11, %12 : vector<1x128xf32>
    %14 = vector.broadcast %6 : vector<1x128xf32> to vector<98x128xf32>
    %15 = arith.subf %2, %14 : vector<98x128xf32>
    %cst_7 = arith.constant 9.99999974E-6 : f32
    %16 = vector.broadcast %cst_7 : f32 to vector<1x128xf32>
    %17 = arith.addf %13, %16 : vector<1x128xf32>
    %18 = math.rsqrt %17 : vector<1x128xf32>
    %19 = vector.broadcast %18 : vector<1x128xf32> to vector<98x128xf32>
    %20 = arith.mulf %15, %19 : vector<98x128xf32>
    %c0_8 = arith.constant 0 : index
    %c0_9 = arith.constant 0 : index
    %21 = vector.load %arg3[%c0_8, %c0_9] : memref<1x128xf32, #tpu.memory_space<vmem>>, vector<1x128xf32>
    %22 = vector.broadcast %21 : vector<1x128xf32> to vector<98x128xf32>
    %23 = arith.mulf %20, %22 : vector<98x128xf32>
    %c0_10 = arith.constant 0 : index
    %c0_11 = arith.constant 0 : index
    %24 = vector.load %arg4[%c0_10, %c0_11] : memref<1x128xf32, #tpu.memory_space<vmem>>, vector<1x128xf32>
    %25 = vector.broadcast %24 : vector<1x128xf32> to vector<98x128xf32>
    %26 = arith.addf %23, %25 : vector<98x128xf32>
    %cst_12 = arith.constant 0.000000e+00 : f32
    %27 = vector.broadcast %cst_12 : f32 to vector<98x128xf32>
    %28 = arith.cmpf oge, %26, %27 : vector<98x128xf32>
    %cst_13 = arith.constant 1.000000e-01 : f32
    %29 = vector.broadcast %cst_13 : f32 to vector<98x128xf32>
    %30 = arith.mulf %29, %26 : vector<98x128xf32>
    %31 = arith.select %28, %26, %30 : vector<98x128xi1>, vector<98x128xf32>
    %c0_14 = arith.constant 0 : index
    %c0_15 = arith.constant 0 : index
    %32 = vector.load %arg5[%c0_14, %c0_15] : memref<98x128xf32, #tpu.memory_space<vmem>>, vector<98x128xf32>
    tpu.vector_store %arg5[%c0_14, %c0_15], %31 {strides = array<i32>} : memref<98x128xf32, #tpu.memory_space<vmem>>, vector<98x128xf32>,
    return
  }
  func.func @transform_0(%arg0: i32) -> (i32, i32) {
    %c0_i32 = arith.constant 0 : i32
    %c0_i32_0 = arith.constant 0 : i32
    %c0_i32_1 = arith.constant 0 : i32
    return %c0_i32, %c0_i32_0 : i32, i32
  }
  func.func @transform_1(%arg0: i32) -> (i32, i32) {
    %c0_i32 = arith.constant 0 : i32
    %c0_i32_0 = arith.constant 0 : i32
    return %c0_i32, %arg0 : i32, i32
  }
  func.func @transform_2(%arg0: i32) -> (i32, i32) {
    %c0_i32 = arith.constant 0 : i32
    %c0_i32_0 = arith.constant 0 : i32
    return %c0_i32, %arg0 : i32, i32
  }
  func.func @transform_3(%arg0: i32) -> (i32, i32) {
    %c0_i32 = arith.constant 0 : i32
    %c0_i32_0 = arith.constant 0 : i32
    return %c0_i32, %arg0 : i32, i32
  }
  func.func @transform_4(%arg0: i32) -> (i32, i32) {
    %c0_i32 = arith.constant 0 : i32
    %c0_i32_0 = arith.constant 0 : i32
    return %c0_i32, %arg0 : i32, i32
  }
}

module attributes {stable_mosaic.version = 11 : i64} {
  func.func @_gemm_bn_leaky_kernel(%arg0: i32, %arg1: memref<2x6272xbf16, #tpu.memory_space<vmem>>, %arg2: memref<6272x256xbf16, #tpu.memory_space<vmem>>, %arg3: memref<1x256xf32, #tpu.memory_space<vmem>>, %arg4: memref<1x256xf32, #tpu.memory_space<vmem>>, %arg5: memref<2x256xf32, #tpu.memory_space<vmem>>) attributes {dimension_semantics = [#tpu.dimension_semantics<parallel>], iteration_bounds = array<i64: 4>, scalar_prefetch = 0 : i64, scratch_operands = 0 : i64, tpu.core_type = #tpu.core_type<tc>, window_params = [{pipeline_mode = #tpu.pipeline_mode<synchronous>, transform_indices = @transform_0, window_bounds = array<i64: 2, 6272>}, {transform_indices = @transform_1, window_bounds = array<i64: 6272, 256>}, {transform_indices = @transform_2, window_bounds = array<i64: 1, 256>}, {transform_indices = @transform_3, window_bounds = array<i64: 1, 256>}, {transform_indices = @transform_4, window_bounds = array<i64: 2, 256>}]} {
    %c0 = arith.constant 0 : index
    %c0_0 = arith.constant 0 : index
    %0 = vector.load %arg1[%c0, %c0_0] : memref<2x6272xbf16, #tpu.memory_space<vmem>>, vector<2x6272xbf16>
    %c0_1 = arith.constant 0 : index
    %c0_2 = arith.constant 0 : index
    %1 = vector.load %arg2[%c0_1, %c0_2] : memref<6272x256xbf16, #tpu.memory_space<vmem>>, vector<6272x256xbf16>
    %cst = arith.constant dense<0.000000e+00> : vector<2x256xf32>
    %2 = tpu.matmul %0, %1, %cst {dimension_numbers = #tpu.dot_dimension_numbers<[1], [0], [0], [1], [0, 0, 1, 1], [], []>} : vector<2x6272xbf16>, vector<6272x256xbf16>, vector<2x256xf32> -> vector<2x256xf32>
    %cst_3 = arith.constant dense<0.000000e+00> : vector<256xf32>
    %3 = vector.multi_reduction <add>, %2, %cst_3 [0] : vector<2x256xf32> to vector<256xf32>
    %4 = vector.shape_cast %3 : vector<256xf32> to vector<1x256xf32>
    %cst_4 = arith.constant 2.000000e+00 : f32
    %5 = vector.broadcast %cst_4 : f32 to vector<1x256xf32>
    %6 = arith.divf %4, %5 : vector<1x256xf32>
    %7 = arith.mulf %2, %2 : vector<2x256xf32>
    %cst_5 = arith.constant dense<0.000000e+00> : vector<256xf32>
    %8 = vector.multi_reduction <add>, %7, %cst_5 [0] : vector<2x256xf32> to vector<256xf32>
    %9 = vector.shape_cast %8 : vector<256xf32> to vector<1x256xf32>
    %cst_6 = arith.constant 2.000000e+00 : f32
    %10 = vector.broadcast %cst_6 : f32 to vector<1x256xf32>
    %11 = arith.divf %9, %10 : vector<1x256xf32>
    %12 = arith.mulf %6, %6 : vector<1x256xf32>
    %13 = arith.subf %11, %12 : vector<1x256xf32>
    %14 = vector.broadcast %6 : vector<1x256xf32> to vector<2x256xf32>
    %15 = arith.subf %2, %14 : vector<2x256xf32>
    %cst_7 = arith.constant 9.99999974E-6 : f32
    %16 = vector.broadcast %cst_7 : f32 to vector<1x256xf32>
    %17 = arith.addf %13, %16 : vector<1x256xf32>
    %18 = math.rsqrt %17 : vector<1x256xf32>
    %19 = vector.broadcast %18 : vector<1x256xf32> to vector<2x256xf32>
    %20 = arith.mulf %15, %19 : vector<2x256xf32>
    %c0_8 = arith.constant 0 : index
    %c0_9 = arith.constant 0 : index
    %21 = vector.load %arg3[%c0_8, %c0_9] : memref<1x256xf32, #tpu.memory_space<vmem>>, vector<1x256xf32>
    %22 = vector.broadcast %21 : vector<1x256xf32> to vector<2x256xf32>
    %23 = arith.mulf %20, %22 : vector<2x256xf32>
    %c0_10 = arith.constant 0 : index
    %c0_11 = arith.constant 0 : index
    %24 = vector.load %arg4[%c0_10, %c0_11] : memref<1x256xf32, #tpu.memory_space<vmem>>, vector<1x256xf32>
    %25 = vector.broadcast %24 : vector<1x256xf32> to vector<2x256xf32>
    %26 = arith.addf %23, %25 : vector<2x256xf32>
    %cst_12 = arith.constant 0.000000e+00 : f32
    %27 = vector.broadcast %cst_12 : f32 to vector<2x256xf32>
    %28 = arith.cmpf oge, %26, %27 : vector<2x256xf32>
    %cst_13 = arith.constant 1.000000e-01 : f32
    %29 = vector.broadcast %cst_13 : f32 to vector<2x256xf32>
    %30 = arith.mulf %29, %26 : vector<2x256xf32>
    %31 = arith.select %28, %26, %30 : vector<2x256xi1>, vector<2x256xf32>
    %c0_14 = arith.constant 0 : index
    %c0_15 = arith.constant 0 : index
    %32 = vector.load %arg5[%c0_14, %c0_15] : memref<2x256xf32, #tpu.memory_space<vmem>>, vector<2x256xf32>
    tpu.vector_store %arg5[%c0_14, %c0_15], %31 {strides = array<i32>} : memref<2x256xf32, #tpu.memory_space<vmem>>, vector<2x256xf32>,
    return
  }
  func.func @transform_0(%arg0: i32) -> (i32, i32) {
    %c0_i32 = arith.constant 0 : i32
    %c0_i32_0 = arith.constant 0 : i32
    %c0_i32_1 = arith.constant 0 : i32
    return %c0_i32, %c0_i32_0 : i32, i32
  }
  func.func @transform_1(%arg0: i32) -> (i32, i32) {
    %c0_i32 = arith.constant 0 : i32
    %c0_i32_0 = arith.constant 0 : i32
    return %c0_i32, %arg0 : i32, i32
  }
  func.func @transform_2(%arg0: i32) -> (i32, i32) {
    %c0_i32 = arith.constant 0 : i32
    %c0_i32_0 = arith.constant 0 : i32
    return %c0_i32, %arg0 : i32, i32
  }
  func.func @transform_3(%arg0: i32) -> (i32, i32) {
    %c0_i32 = arith.constant 0 : i32
    %c0_i32_0 = arith.constant 0 : i32
    return %c0_i32, %arg0 : i32, i32
  }
  func.func @transform_4(%arg0: i32) -> (i32, i32) {
    %c0_i32 = arith.constant 0 : i32
    %c0_i32_0 = arith.constant 0 : i32
    return %c0_i32, %arg0 : i32, i32
  }
}

module attributes {stable_mosaic.version = 11 : i64} {
  func.func @_gemm_bias_act_kernel(%arg0: i32, %arg1: i32, %arg2: memref<2x1024xbf16, #tpu.memory_space<vmem>>, %arg3: memref<1024x256xbf16, #tpu.memory_space<vmem>>, %arg4: memref<1x256xf32, #tpu.memory_space<vmem>>, %arg5: memref<2x256xf32, #tpu.memory_space<vmem>>) attributes {dimension_semantics = [#tpu.dimension_semantics<parallel>, #tpu.dimension_semantics<parallel>], iteration_bounds = array<i64: 1, 1>, scalar_prefetch = 0 : i64, scratch_operands = 0 : i64, tpu.core_type = #tpu.core_type<tc>, window_params = [{transform_indices = @transform_0, window_bounds = array<i64: 2, 1024>}, {transform_indices = @transform_1, window_bounds = array<i64: 1024, 256>}, {transform_indices = @transform_2, window_bounds = array<i64: 1, 256>}, {transform_indices = @transform_3, window_bounds = array<i64: 2, 256>}]} {
    %c0 = arith.constant 0 : index
    %c0_0 = arith.constant 0 : index
    %0 = vector.load %arg2[%c0, %c0_0] : memref<2x1024xbf16, #tpu.memory_space<vmem>>, vector<2x1024xbf16>
    %c0_1 = arith.constant 0 : index
    %c0_2 = arith.constant 0 : index
    %1 = vector.load %arg3[%c0_1, %c0_2] : memref<1024x256xbf16, #tpu.memory_space<vmem>>, vector<1024x256xbf16>
    %cst = arith.constant dense<0.000000e+00> : vector<2x256xf32>
    %2 = tpu.matmul %0, %1, %cst {dimension_numbers = #tpu.dot_dimension_numbers<[1], [0], [0], [1], [0, 0, 1, 1], [], []>} : vector<2x1024xbf16>, vector<1024x256xbf16>, vector<2x256xf32> -> vector<2x256xf32>
    %c0_3 = arith.constant 0 : index
    %c0_4 = arith.constant 0 : index
    %3 = vector.load %arg4[%c0_3, %c0_4] : memref<1x256xf32, #tpu.memory_space<vmem>>, vector<1x256xf32>
    %4 = vector.broadcast %3 : vector<1x256xf32> to vector<2x256xf32>
    %5 = arith.addf %2, %4 : vector<2x256xf32>
    %cst_5 = arith.constant 0.000000e+00 : f32
    %6 = vector.broadcast %cst_5 : f32 to vector<2x256xf32>
    %7 = arith.maximumf %5, %6 : vector<2x256xf32>
    %c0_6 = arith.constant 0 : index
    %c0_7 = arith.constant 0 : index
    %8 = vector.load %arg5[%c0_6, %c0_7] : memref<2x256xf32, #tpu.memory_space<vmem>>, vector<2x256xf32>
    tpu.vector_store %arg5[%c0_6, %c0_7], %7 {strides = array<i32>} : memref<2x256xf32, #tpu.memory_space<vmem>>, vector<2x256xf32>,
    return
  }
  func.func @transform_0(%arg0: i32, %arg1: i32) -> (i32, i32) {
    %c0_i32 = arith.constant 0 : i32
    %c0_i32_0 = arith.constant 0 : i32
    return %arg0, %c0_i32 : i32, i32
  }
  func.func @transform_1(%arg0: i32, %arg1: i32) -> (i32, i32) {
    %c0_i32 = arith.constant 0 : i32
    %c0_i32_0 = arith.constant 0 : i32
    return %c0_i32, %arg1 : i32, i32
  }
  func.func @transform_2(%arg0: i32, %arg1: i32) -> (i32, i32) {
    %c0_i32 = arith.constant 0 : i32
    %c0_i32_0 = arith.constant 0 : i32
    return %c0_i32, %arg1 : i32, i32
  }
  func.func @transform_3(%arg0: i32, %arg1: i32) -> (i32, i32) {
    %c0_i32 = arith.constant 0 : i32
    return %arg0, %arg1 : i32, i32
  }
}

</mosaic_0001>

<bundles_post_ra>
// kernel: encoder_forward.4
= control target key start
LH: loop header
LB: loop body
LE: loop exit
PB: predicated region body
PF: predicated region fallthrough
CT: control target
= control target key end

     0   :  { %8 = vsyncpa [#allocation3], 0  ;;  %s1944_s0 = inlined_call_operand.vmem [shape: bf16[392,16], index: 0, kind: input, shape index: {}]   ;;  %s1945_s1 = inlined_call_operand.hbm [shape: bf16[16,64], index: 1, kind: input, shape index: {}]   ;;  %s1946_s2 = inlined_call_operand.hbm [shape: f32[1,64], index: 2, kind: input, shape index: {}]   ;;  %s1947_s3 = inlined_call_operand.vmem [shape: f32[392,64], index: 3, kind: output, shape index: {}]  }
   0x1   :  { %9 = vsyncpa [#allocation5], 0  ;;  %s1546_s12 = smov 0   ;;  %s1548_s13 = smov 0  }
   0x2   :  { %s1550_s14 = smov 0   ;;  %s1552_s15 = smov 0  }
   0x3   :  { %s1554_s16 = smov 0  }
   0x4 LB: > { %s1091_s17 = sadd.s32 4294967295, %s1488_s16   ;;  %s27_s18 = sadd.s32 1, %s1484_s15  ;;  %s1488_s16 = sphi %s1554_s16, %s15_s16   ;;  %s1484_s15 = sphi %s1552_s15, %s1966_s15   ;;  %s1480_s14 = sphi %s1550_s14, %s1965_s14   ;;  %s1476_s13 = sphi %s1548_s13, %s1964_s13   ;;  %s1472_s12 = sphi %s1546_s12, %s1963_s12  }
   0x5   : > { %p29_p0 = scmp.ge.s32.totalorder %s27_s18, 2  ;;  %s114_s19 = sadd.s32 1, %s1476_s13 }
   0x6   : > { %p124_p1 = scmp.ne.s32.totalorder %s1476_s13, %s1472_s12  ;;  %p125_p2 = scmp.eq.s32.totalorder %s1091_s17, 1 }
   0x7   : > { %s1968_s18 = smov (%p29_p0, %s27_s18), 0  ;;  %p1093_p4 = scmp.ge.s32.totalorder %s1488_s16, 1 }
   0x8   : > { %p1578_p3 = por %p125_p2, %p124_p1  ;;  %s109_s21 = ssub.s32 %s1484_s15, %s1968_s18 }
   0x9   : > { %p138_p5 = scmp.lt.s32.totalorder %s1488_s16, 3  ;;  %p112_p6 = scmp.eq.s32.totalorder %s109_s21, 0 }
   0xa   : > { %s1951_s20 = scalar_select %p1578_p3, 1, 0 }
   0xb   : > { %p1586_p7 = pnand %p1093_p4, %p138_p5  ;;  %p1590_p8 = scmp.eq.s32.totalorder %s1091_s17, 0 }
   0xc   : > { %s1595_s24 = scalar_select %p112_p6, %s1476_s13, %s114_s19  }
   0xd   : > { %s1952_s22 = scalar_select %p1586_p7, 1, 0 }
   0xe   : > { %s1953_s23 = scalar_select %p1590_p8, 1, 0 }
   0xf   : > { %p1218_p9 = pneg %p1586_p7  ;;  %s1522_s25 = smov [#allocation2]  }
  0x10   : > { %s152_s26 = sshll.u32 %s1522_s25, 4  ;;  %s1523_s28 = smov [#allocation4]   ;;  %s153_s26 = int_to_ptr.vmem [resolvable:$true] %s152_s26 }
  0x11   : > { %p1601_p10 = pnand %p1590_p8, %p1218_p9  ;;  %s168_s29 = sshll.u32 %s1523_s28, 4  ;;  %s169_s29 = int_to_ptr.vmem [resolvable:$true] %s168_s29 }
  0x12   : > { %s1354_s5 = scalar_lea.hbm %s1945_s1, 128 }
  0x13   : > { %p1355_p11 = scmp.ne.s32.totalorder %s1945_s1, %s1354_s5  ;;  %p1356_p12 = pneg %p1601_p10 }
  0x14   : > { %p1361_p1 = scmp.lt.u32.totalorder %s1354_s5, %s1945_s1 }
  0x15   : > { %p1357_p13 = pnand %p1356_p12, %p1355_p11 }
  0x17   : > { %p1358_p0 = pneg %p1357_p13 }
  0x19   : > { %p1363_p2 = pnand %p1361_p1, %p1358_p0 }
  0x1b   : > { %1366 = shalt.err (!%p1363_p2)
}
  0x1c   : > { %s1367_s10 = scalar_lea.vmem %s153_s26, 128  ;;  %p1375_p9 = scmp.lt.s32.totalorder %s153_s26, %s153_s26 }
  0x1d   : > { %p1368_p4 = scmp.ne.s32.totalorder %s153_s26, %s1367_s10  ;;  %p1376_p3 = scmp.lt.s32.totalorder %s1367_s10, %s1367_s10 }
  0x1f   : > { %p1370_p5 = pnand %p1368_p4, %p1356_p12  ;;  %p1377_p8 = por %p1376_p3, %p1375_p9 }
  0x21   : > { %p1371_p6 = pneg %p1370_p5 }
  0x23   : > { %p1378_p7 = pnand %p1377_p8, %p1371_p6 }
  0x25   : > { %1381 = shalt.err (!%p1378_p7)
}
  0x26   : > { %s1524_s11 = smov 64   ;;  %s1525_s17 = smov 4  }
  0x27   : > { %1221 = dma.hbm_to_vmem [thread:$0]  (!%p1601_p10), %s1945_s1, 128, %s153_s26, [#allocation3], %s1524_s11, %s1524_s11, %s1525_s17  }
  0x28   : > { %s1382_s30 = scalar_lea.hbm %s1946_s2, 16 }
  0x29   : > { %p1383_p3 = scmp.ne.s32.totalorder %s1946_s2, %s1382_s30  ;;  %p1389_p11 = scmp.lt.u32.totalorder %s1382_s30, %s1946_s2 }
  0x2b   : > { %p1385_p7 = pnand %p1383_p3, %p1356_p12 }
  0x2d   : > { %p1386_p8 = pneg %p1385_p7 }
  0x2f   : > { %p1391_p13 = pnand %p1389_p11, %p1386_p8 }
  0x31   : > { %1394 = shalt.err (!%p1391_p13)
}
  0x32   : > { %s1395_s26 = scalar_lea.vmem %s169_s29, 16  ;;  %s1402_s8 = scalar_lea.vmem %s169_s29, 32 }
  0x33   : > { %p1396_p0 = scmp.ne.s32.totalorder %s169_s29, %s1395_s26  ;;  %p1403_p4 = scmp.lt.s32.totalorder %s169_s29, %s169_s29 }
  0x34   : > { %p1404_p5 = scmp.lt.s32.totalorder %s1402_s8, %s1395_s26 }
  0x35   : > { %p1398_p1 = pnand %p1396_p0, %p1356_p12 }
  0x36   : > { %p1405_p6 = por %p1404_p5, %p1403_p4 }
  0x37   : > { %p1399_p2 = pneg %p1398_p1 }
  0x39   : > { %p1406_p9 = pnand %p1405_p6, %p1399_p2 }
  0x3b   : > { %1409 = shalt.err (!%p1406_p9)
}
  0x3c   : > { %1224 = dma.hbm_to_vmem [thread:$0]  (!%p1601_p10), %s1946_s2, 16, %s169_s29, [#allocation5]  }
  0x3d   : > { %p1955_p3 = scmp.ne.s32.totalorder %s1952_s22, 0 }
  0x3e   : > { %p1956_p7 = scmp.ne.s32.totalorder (!%p1955_p3), %s1953_s23, 0 }
  0x3f   : > { %198 = sbr.rel (%p1955_p3) target bundleno = 388 (0x184), region = 32 }
  0x46   : > { %1463 = dma.done.wait (%p1956_p7), [#allocation3], 128  }
  0x47   : > { %1465 = vsyncadd (%p1956_p7), [#allocation3], 4294967168 }
  0x48   : > { %1467 = dma.done.wait (%p1956_p7), [#allocation5], 16  }
  0x49   : > { %1469 = vsyncadd (%p1956_p7), [#allocation5], 4294967280  ;;  %s1658_s27 = sshll.u32 %s1480_s14, 5  ;;  %v1337_v0 = vld [vmem:[#allocation2] sm:$0xff]   ;;  %vm376_vm0 = vcmask 130048   ;;  %s226_s23 = sand.u32 1, %s1472_s12  }
  0x4a   : > { %p234_p10 = scmp.lt.s32.totalorder %s1658_s27, 48  ;;  %1174 = vmatprep.subr.bf16.mxu0 %v1337_v0  ;;  %1208 = vmatprep.subr.bf16.mxu1 %v1337_v0  ;;  %v1700_v17 = vld [vmem:[#allocation4] ss:$0 sm:$0xff]  ;;  %s1100_s21 = sshll.u32 %s226_s23, 8  ;;  %vm682_vm1 = vcmask 523264  }
  0x4b   : > { %1175 = vmatpush3.bf16.msra.mxu0 %v1337_v0  ;;  %1209 = vmatpush3.bf16.msra.mxu1 %v1337_v0  ;;  %s1708_s12 = scalar_lea.vmem [#allocation6], %s1100_s21   ;;  %p1957_p12 = scmp.ne.s32.totalorder %s1951_s20, 0 }
  0x4c   : > { %s235_s22 = scalar_select %p234_p10, %s1658_s27, 48 }
  0x4d   : > { %s723_s25 = ssub.s32 (%p1957_p12), 49, %s1658_s27  ;;  %s1154_s28 = sshll.u32 (%p1957_p12), %s1480_s14, 8 }
  0x4e   : > { %s1102_s29 = sshll.u32 %s235_s22, 2  ;;  %p724_p8 = scmp.lt.s32.totalorder (%p1957_p12), %s723_s25, 32 }
  0x4f   : > { %s1665_s19 = scalar_lea.vmem %s1944_s0, %s1102_s29  ;;  %s1807_s5 = scalar_lea.vmem (%p1957_p12), %s1947_s3, %s1154_s28  }
  0x50   : > { %v1338_v1 = vld [vmem:[%s1665_s19] sm:$0xff]   ;;  %v1340_v3 = vld [vmem:[%s1665_s19 + $0x8] sm:$0xff]   ;;  %v1342_v5 = vld [vmem:[%s1665_s19 + $0x10] sm:$0xff]  }
  0x51   : > { %v1339_v2 = vld [vmem:[%s1665_s19 + $0x40] sm:$0xff]   ;;  %1176 = vmatprep.mubr.msk.bf16.mxu0 %vm376_vm0, %v1338_v1  ;;  %v1341_v4 = vld [vmem:[%s1665_s19 + $0x48] sm:$0xff]   ;;  %v1343_v6 = vld [vmem:[%s1665_s19 + $0x50] sm:$0xff]  }
  0x52   : > { %1192 = vmatprep.mubr.msk.bf16.mxu1 %vm376_vm0, %v1339_v2  ;;  %1177 = vmatmul.mubr.msk.bf16.vlgmr.msra.gmra.mrb[0].mxu0 %vm376_vm0, %v1340_v3  ;;  %v1344_v7 = vld [vmem:[%s1665_s19 + $0x18] sm:$0xff]   ;;  %v1346_v9 = vld [vmem:[%s1665_s19 + $0x20] sm:$0xff]   ;;  %v1348_v11 = vld [vmem:[%s1665_s19 + $0x28] sm:$0xff]  }
  0x53   : > { %1193 = vmatmul.mubr.msk.bf16.vlgmr.msra.gmra.mrb[0].mxu1 %vm376_vm0, %v1341_v4  ;;  %1180 = vmatprep.mubr.msk.bf16.mxu0 %vm376_vm0, %v1342_v5  ;;  %v1345_v8 = vld [vmem:[%s1665_s19 + $0x58] sm:$0xff]   ;;  %v1347_v10 = vld [vmem:[%s1665_s19 + $0x60] sm:$0xff]   ;;  %v1349_v12 = vld [vmem:[%s1665_s19 + $0x68] sm:$0xff]  }
  0x54   : > { %1196 = vmatprep.mubr.msk.bf16.mxu1 %vm376_vm0, %v1343_v6  ;;  %v1350_v13 = vld [vmem:[%s1665_s19 + $0x30] sm:$0xff]   ;;  %v1352_v15 = vld [vmem:[%s1665_s19 + $0x38] sm:$0xff]  }
  0x55   : > { %v1351_v14 = vld [vmem:[%s1665_s19 + $0x70] sm:$0xff]   ;;  %v1353_v16 = vld [vmem:[%s1665_s19 + $0x78] sm:$0xff]  }
  0x5a   : > { %1181 = vmatmul.mubr.msk.bf16.gmra.mrb[4].mxu0 %vm376_vm0, %v1344_v7 }
  0x5b   : > { %1197 = vmatmul.mubr.msk.bf16.gmra.mrb[4].mxu1 %vm376_vm0, %v1345_v8  ;;  %1184 = vmatprep.mubr.msk.bf16.mxu0 %vm376_vm0, %v1346_v9 }
  0x5c   : > { %1200 = vmatprep.mubr.msk.bf16.mxu1 %vm376_vm0, %v1347_v10 }
  0x62   : > { %1185 = vmatmul.mubr.msk.bf16.gmra.mrb[8].mxu0 %vm376_vm0, %v1348_v11 }
  0x63   : > { %1201 = vmatmul.mubr.msk.bf16.gmra.mrb[8].mxu1 %vm376_vm0, %v1349_v12  ;;  %1188 = vmatprep.mubr.msk.bf16.mxu0 %vm376_vm0, %v1350_v13 }
  0x64   : > { %1204 = vmatprep.mubr.msk.bf16.mxu1 %vm376_vm0, %v1351_v14 }
  0x6a   : > { %1189 = vmatmul.mubr.msk.bf16.gmra.mrb[12].mxu0 %vm376_vm0, %v1352_v15 }
  0x6b   : > { %1205 = vmatmul.mubr.msk.bf16.gmra.mrb[12].mxu1 %vm376_vm0, %v1353_v16 }
 0x125   : > { %v1178_v18 = vpop.f32.mrb[0].mxu0 }
 0x126   : > { %v1194_v19 = vpop.f32.mrb[0].mxu1  ;;  %v468_v20 = vadd.f32 %v1178_v18, %v1700_v17  ;;  %v459_v22 = vpop.f32.mrb[1].mxu0 }
 0x127   : > { %v532_v21 = vadd.f32 %v1194_v19, %v1700_v17  ;;  %v523_v23 = vpop.f32.mrb[1].mxu1  ;;  %v460_v24 = vadd.f32 %v1700_v17, %v459_v22  ;;  %v1179_v26 = vpop.f32.mrb[2].mxu0 }
 0x128   : > { %v524_v25 = vadd.f32 %v1700_v17, %v523_v23  ;;  %v1195_v27 = vpop.f32.mrb[2].mxu1  ;;  %vm588_vm2 = vcmp.ge.f32.partialorder %v468_v20, 0.0  ;;  %v620_v28 = vmul.f32 0.1, %v468_v20  ;;  %v471_v34 = vadd.f32 %v1179_v26, %v1700_v17  ;;  %v462_v36 = vpop.f32.mrb[3].mxu0 }
 0x129   : > { %vm604_vm3 = vcmp.ge.f32.partialorder %v532_v21, 0.0  ;;  %v636_v29 = vmul.f32 0.1, %v532_v21  ;;  %vm586_vm4 = vcmp.ge.f32.partialorder %v460_v24, 0.0  ;;  %v618_v30 = vmul.f32 0.1, %v460_v24 }
 0x12a   : > { %vm602_vm5 = vcmp.ge.f32.partialorder %v524_v25, 0.0  ;;  %v634_v31 = vmul.f32 0.1, %v524_v25  ;;  %v652_v32 = vsel %vm588_vm2, %v468_v20, %v620_v28  ;;  %v535_v35 = vadd.f32 %v1195_v27, %v1700_v17  ;;  %v526_v37 = vpop.f32.mrb[3].mxu1 }
 0x12b   : > { %v668_v33 = vsel %vm604_vm3, %v532_v21, %v636_v29  ;;  %685 = vst.msk [vmem:[%s1708_s12 + $0x10] sm:$0xff] %vm682_vm1, %v652_v32  ;;  %v650_v38 = vsel %vm586_vm4, %v460_v24, %v618_v30  ;;  %v463_v40 = vadd.f32 %v1700_v17, %v462_v36  ;;  %v527_v41 = vadd.f32 %v1700_v17, %v526_v37 }
 0x12c   : > { %701 = vst.msk [vmem:[%s1708_s12 + $0x90] sm:$0xff] %vm682_vm1, %v668_v33  ;;  %v666_v39 = vsel %vm602_vm5, %v524_v25, %v634_v31  ;;  %683 = vst.msk [vmem:[%s1708_s12] sm:$0xff] %vm682_vm1, %v650_v38  ;;  %vm589_vm6 = vcmp.ge.f32.partialorder %v471_v34, 0.0  ;;  %v621_v42 = vmul.f32 0.1, %v471_v34  ;;  %vm605_vm7 = vcmp.ge.f32.partialorder %v535_v35, 0.0 }
 0x12d   : > { %699 = vst.msk [vmem:[%s1708_s12 + $0x80] sm:$0xff] %vm682_vm1, %v666_v39  ;;  %v637_v43 = vmul.f32 0.1, %v535_v35  ;;  %vm587_vm8 = vcmp.ge.f32.partialorder %v463_v40, 0.0  ;;  %v619_v44 = vmul.f32 0.1, %v463_v40 }
 0x12e   : > { %vm603_vm9 = vcmp.ge.f32.partialorder %v527_v41, 0.0  ;;  %v635_v45 = vmul.f32 0.1, %v527_v41  ;;  %v653_v46 = vsel %vm589_vm6, %v471_v34, %v621_v42  ;;  %v1182_v48 = vpop.f32.mrb[4].mxu0  ;;  %v1198_v49 = vpop.f32.mrb[4].mxu1 }
 0x12f   : > { %v669_v47 = vsel %vm605_vm7, %v535_v35, %v637_v43  ;;  %686 = vst.msk [vmem:[%s1708_s12 + $0x18] sm:$0xff] %vm682_vm1, %v653_v46  ;;  %v651_v50 = vsel %vm587_vm8, %v463_v40, %v619_v44  ;;  %v484_v52 = vadd.f32 %v1182_v48, %v1700_v17  ;;  %v548_v53 = vadd.f32 %v1198_v49, %v1700_v17  ;;  %v475_v54 = vpop.f32.mrb[5].mxu0  ;;  %v539_v55 = vpop.f32.mrb[5].mxu1 }
 0x130   : > { %702 = vst.msk [vmem:[%s1708_s12 + $0x98] sm:$0xff] %vm682_vm1, %v669_v47  ;;  %v667_v51 = vsel %vm603_vm9, %v527_v41, %v635_v45  ;;  %684 = vst.msk [vmem:[%s1708_s12 + $0x8] sm:$0xff] %vm682_vm1, %v651_v50  ;;  %v476_v56 = vadd.f32 %v1700_v17, %v475_v54  ;;  %v540_v57 = vadd.f32 %v1700_v17, %v539_v55  ;;  %v1183_v58 = vpop.f32.mrb[6].mxu0  ;;  %v1199_v59 = vpop.f32.mrb[6].mxu1 }
 0x131   : > { %700 = vst.msk [vmem:[%s1708_s12 + $0x88] sm:$0xff] %vm682_vm1, %v667_v51  ;;  %vm592_vm10 = vcmp.ge.f32.partialorder %v484_v52, 0.0  ;;  %v624_v60 = vmul.f32 0.1, %v484_v52  ;;  %vm608_vm11 = vcmp.ge.f32.partialorder %v548_v53, 0.0  ;;  %v487_v2 = vadd.f32 %v1183_v58, %v1700_v17  ;;  %v478_v4 = vpop.f32.mrb[7].mxu0 }
 0x132   : > { %v640_v61 = vmul.f32 0.1, %v548_v53  ;;  %vm590_vm12 = vcmp.ge.f32.partialorder %v476_v56, 0.0  ;;  %v622_v62 = vmul.f32 0.1, %v476_v56  ;;  %vm606_vm13 = vcmp.ge.f32.partialorder %v540_v57, 0.0 }
 0x133   : > { %v638_v63 = vmul.f32 0.1, %v540_v57  ;;  %v656_v0 = vsel %vm592_vm10, %v484_v52, %v624_v60  ;;  %v551_v3 = vadd.f32 %v1199_v59, %v1700_v17  ;;  %v542_v5 = vpop.f32.mrb[7].mxu1  ;;  %v479_v8 = vadd.f32 %v1700_v17, %v478_v4 }
 0x134   : > { %v672_v1 = vsel %vm608_vm11, %v548_v53, %v640_v61  ;;  %689 = vst.msk [vmem:[%s1708_s12 + $0x30] sm:$0xff] %vm682_vm1, %v656_v0  ;;  %v654_v6 = vsel %vm590_vm12, %v476_v56, %v622_v62  ;;  %v543_v9 = vadd.f32 %v1700_v17, %v542_v5  ;;  %vm593_vm14 = vcmp.ge.f32.partialorder %v487_v2, 0.0 }
 0x135   : > { %705 = vst.msk [vmem:[%s1708_s12 + $0xb0] sm:$0xff] %vm682_vm1, %v672_v1  ;;  %v670_v7 = vsel %vm606_vm13, %v540_v57, %v638_v63  ;;  %687 = vst.msk [vmem:[%s1708_s12 + $0x20] sm:$0xff] %vm682_vm1, %v654_v6  ;;  %v625_v10 = vmul.f32 0.1, %v487_v2  ;;  %vm609_vm15 = vcmp.ge.f32.partialorder %v551_v3, 0.0  ;;  %vm591_vm0 = vcmp.ge.f32.partialorder %v479_v8, 0.0 }
 0x136   : > { %703 = vst.msk [vmem:[%s1708_s12 + $0xa0] sm:$0xff] %vm682_vm1, %v670_v7  ;;  %v641_v11 = vmul.f32 0.1, %v551_v3  ;;  %v623_v12 = vmul.f32 0.1, %v479_v8  ;;  %vm607_vm2 = vcmp.ge.f32.partialorder %v543_v9, 0.0 }
 0x137   : > { %v639_v13 = vmul.f32 0.1, %v543_v9  ;;  %v657_v14 = vsel %vm593_vm14, %v487_v2, %v625_v10  ;;  %v1186_v16 = vpop.f32.mrb[8].mxu0  ;;  %v1202_v18 = vpop.f32.mrb[8].mxu1 }
 0x138   : > { %v673_v15 = vsel %vm609_vm15, %v551_v3, %v641_v11  ;;  %690 = vst.msk [vmem:[%s1708_s12 + $0x38] sm:$0xff] %vm682_vm1, %v657_v14  ;;  %v655_v19 = vsel %vm591_vm0, %v479_v8, %v623_v12  ;;  %v500_v21 = vadd.f32 %v1186_v16, %v1700_v17  ;;  %v564_v22 = vadd.f32 %v1202_v18, %v1700_v17  ;;  %v491_v23 = vpop.f32.mrb[9].mxu0  ;;  %v555_v24 = vpop.f32.mrb[9].mxu1 }
 0x139   : > { %706 = vst.msk [vmem:[%s1708_s12 + $0xb8] sm:$0xff] %vm682_vm1, %v673_v15  ;;  %v671_v20 = vsel %vm607_vm2, %v543_v9, %v639_v13  ;;  %688 = vst.msk [vmem:[%s1708_s12 + $0x28] sm:$0xff] %vm682_vm1, %v655_v19  ;;  %v492_v25 = vadd.f32 %v1700_v17, %v491_v23  ;;  %v556_v26 = vadd.f32 %v1700_v17, %v555_v24  ;;  %v1187_v27 = vpop.f32.mrb[10].mxu0  ;;  %v1203_v28 = vpop.f32.mrb[10].mxu1 }
 0x13a   : > { %704 = vst.msk [vmem:[%s1708_s12 + $0xa8] sm:$0xff] %vm682_vm1, %v671_v20  ;;  %vm596_vm3 = vcmp.ge.f32.partialorder %v500_v21, 0.0  ;;  %v628_v29 = vmul.f32 0.1, %v500_v21  ;;  %vm612_vm4 = vcmp.ge.f32.partialorder %v564_v22, 0.0  ;;  %v503_v35 = vadd.f32 %v1187_v27, %v1700_v17  ;;  %v494_v37 = vpop.f32.mrb[11].mxu0 }
 0x13b   : > { %v644_v30 = vmul.f32 0.1, %v564_v22  ;;  %vm594_vm5 = vcmp.ge.f32.partialorder %v492_v25, 0.0  ;;  %v626_v31 = vmul.f32 0.1, %v492_v25  ;;  %vm610_vm6 = vcmp.ge.f32.partialorder %v556_v26, 0.0 }
 0x13c   : > { %v642_v32 = vmul.f32 0.1, %v556_v26  ;;  %v660_v33 = vsel %vm596_vm3, %v500_v21, %v628_v29  ;;  %v567_v36 = vadd.f32 %v1203_v28, %v1700_v17  ;;  %v558_v38 = vpop.f32.mrb[11].mxu1  ;;  %v495_v41 = vadd.f32 %v1700_v17, %v494_v37 }
 0x13d   : > { %v676_v34 = vsel %vm612_vm4, %v564_v22, %v644_v30  ;;  %693 = vst.msk [vmem:[%s1708_s12 + $0x50] sm:$0xff] %vm682_vm1, %v660_v33  ;;  %v658_v39 = vsel %vm594_vm5, %v492_v25, %v626_v31  ;;  %v559_v42 = vadd.f32 %v1700_v17, %v558_v38  ;;  %v1190_v43 = vpop.f32.mrb[12].mxu0  ;;  %vm597_vm7 = vcmp.ge.f32.partialorder %v503_v35, 0.0 }
 0x13e   : > { %709 = vst.msk [vmem:[%s1708_s12 + $0xd0] sm:$0xff] %vm682_vm1, %v676_v34  ;;  %v674_v40 = vsel %vm610_vm6, %v556_v26, %v642_v32  ;;  %v1206_v44 = vpop.f32.mrb[12].mxu1  ;;  %691 = vst.msk [vmem:[%s1708_s12 + $0x40] sm:$0xff] %vm682_vm1, %v658_v39  ;;  %v629_v45 = vmul.f32 0.1, %v503_v35  ;;  %vm613_vm8 = vcmp.ge.f32.partialorder %v567_v36, 0.0  ;;  %v516_v51 = vadd.f32 %v1190_v43, %v1700_v17 }
 0x13f   : > { %707 = vst.msk [vmem:[%s1708_s12 + $0xc0] sm:$0xff] %vm682_vm1, %v674_v40  ;;  %v645_v46 = vmul.f32 0.1, %v567_v36  ;;  %vm595_vm9 = vcmp.ge.f32.partialorder %v495_v41, 0.0  ;;  %v627_v47 = vmul.f32 0.1, %v495_v41  ;;  %v580_v52 = vadd.f32 %v1206_v44, %v1700_v17 }
 0x140   : > { %vm611_vm10 = vcmp.ge.f32.partialorder %v559_v42, 0.0  ;;  %v643_v48 = vmul.f32 0.1, %v559_v42  ;;  %v661_v49 = vsel %vm597_vm7, %v503_v35, %v629_v45  ;;  %v507_v53 = vpop.f32.mrb[13].mxu0  ;;  %v571_v54 = vpop.f32.mrb[13].mxu1  ;;  %vm600_vm11 = vcmp.ge.f32.partialorder %v516_v51, 0.0 }
 0x141   : > { %v677_v50 = vsel %vm613_vm8, %v567_v36, %v645_v46  ;;  %694 = vst.msk [vmem:[%s1708_s12 + $0x58] sm:$0xff] %vm682_vm1, %v661_v49  ;;  %v659_v55 = vsel %vm595_vm9, %v495_v41, %v627_v47  ;;  %v508_v57 = vadd.f32 %v1700_v17, %v507_v53  ;;  %v572_v58 = vadd.f32 %v1700_v17, %v571_v54  ;;  %v1191_v59 = vpop.f32.mrb[14].mxu0  ;;  %v1207_v60 = vpop.f32.mrb[14].mxu1 }
 0x142   : > { %710 = vst.msk [vmem:[%s1708_s12 + $0xd8] sm:$0xff] %vm682_vm1, %v677_v50  ;;  %v675_v56 = vsel %vm611_vm10, %v559_v42, %v643_v48  ;;  %692 = vst.msk [vmem:[%s1708_s12 + $0x48] sm:$0xff] %vm682_vm1, %v659_v55  ;;  %v632_v61 = vmul.f32 0.1, %v516_v51  ;;  %vm616_vm12 = vcmp.ge.f32.partialorder %v580_v52, 0.0  ;;  %v519_v3 = vadd.f32 %v1191_v59, %v1700_v17  ;;  %v510_v5 = vpop.f32.mrb[15].mxu0 }
 0x143   : > { %708 = vst.msk [vmem:[%s1708_s12 + $0xc8] sm:$0xff] %vm682_vm1, %v675_v56  ;;  %v648_v62 = vmul.f32 0.1, %v580_v52  ;;  %vm598_vm13 = vcmp.ge.f32.partialorder %v508_v57, 0.0  ;;  %v630_v63 = vmul.f32 0.1, %v508_v57  ;;  %v583_v4 = vadd.f32 %v1207_v60, %v1700_v17 }
 0x144   : > { %vm614_vm14 = vcmp.ge.f32.partialorder %v572_v58, 0.0  ;;  %v646_v0 = vmul.f32 0.1, %v572_v58  ;;  %v664_v1 = vsel %vm600_vm11, %v516_v51, %v632_v61  ;;  %v574_v6 = vpop.f32.mrb[15].mxu1  ;;  %v511_v9 = vadd.f32 %v1700_v17, %v510_v5 }
 0x145   : > { %v680_v2 = vsel %vm616_vm12, %v580_v52, %v648_v62  ;;  %697 = vst.msk [vmem:[%s1708_s12 + $0x70] sm:$0xff] %vm682_vm1, %v664_v1  ;;  %v662_v7 = vsel %vm598_vm13, %v508_v57, %v630_v63  ;;  %v575_v10 = vadd.f32 %v1700_v17, %v574_v6  ;;  %vm601_vm15 = vcmp.ge.f32.partialorder %v519_v3, 0.0  ;;  %721 = sbr.rel (!%p1957_p12) target bundleno = 388 (0x184), region = 44 }
 0x146   : > { %713 = vst.msk [vmem:[%s1708_s12 + $0xf0] sm:$0xff] %vm682_vm1, %v680_v2  ;;  %v678_v8 = vsel %vm614_vm14, %v572_v58, %v646_v0  ;;  %695 = vst.msk [vmem:[%s1708_s12 + $0x60] sm:$0xff] %vm682_vm1, %v662_v7  ;;  %v633_v11 = vmul.f32 0.1, %v519_v3  ;;  %vm617_vm0 = vcmp.ge.f32.partialorder %v583_v4, 0.0  ;;  %vm599_vm2 = vcmp.ge.f32.partialorder %v511_v9, 0.0 }
 0x147   : > { %711 = vst.msk [vmem:[%s1708_s12 + $0xe0] sm:$0xff] %vm682_vm1, %v678_v8  ;;  %v649_v12 = vmul.f32 0.1, %v583_v4  ;;  %v631_v13 = vmul.f32 0.1, %v511_v9  ;;  %vm615_vm3 = vcmp.ge.f32.partialorder %v575_v10, 0.0 }
 0x148   : > { %v647_v14 = vmul.f32 0.1, %v575_v10  ;;  %v665_v15 = vsel %vm601_vm15, %v519_v3, %v633_v11 }
 0x149   : > { %v681_v16 = vsel %vm617_vm0, %v583_v4, %v649_v12  ;;  %698 = vst.msk [vmem:[%s1708_s12 + $0x78] sm:$0xff] %vm682_vm1, %v665_v15  ;;  %v663_v17 = vsel %vm599_vm2, %v511_v9, %v631_v13 }
 0x14a   : > { %714 = vst.msk [vmem:[%s1708_s12 + $0xf8] sm:$0xff] %vm682_vm1, %v681_v16  ;;  %v679_v18 = vsel %vm615_vm3, %v575_v10, %v647_v14  ;;  %696 = vst.msk [vmem:[%s1708_s12 + $0x68] sm:$0xff] %vm682_vm1, %v663_v17 }
 0x14b   : > { %712 = vst.msk [vmem:[%s1708_s12 + $0xe8] sm:$0xff] %vm682_vm1, %v679_v18 }
 0x14c   : > { %s1970_s25 = smov (!%p724_p8, %s723_s25), 32 }
 0x14d   : > { %s1139_s6 = sshll.u32 %s1970_s25, 7 }
 0x14e   : > { %p1142_p11 = scmp.eq.s32.totalorder %s1139_s6, 0 }
 0x14f   : > { %s1813_s7 = sshrl.u32 (!%p1142_p11), %s1970_s25, 5 }
 0x150   : > { %733 = sbr.rel (%p1142_p11) target bundleno = 388 (0x184), region = 48  ;;  %p1143_p13 = scmp.le.s32.totalorder (!%p1142_p11), %s1813_s7, 0 }
 0x157   : > { %1021 = sbr.rel (%p1143_p13) target bundleno = 367 (0x16f), region = 127  ;;  %s1958_s14 = smov (!%p1143_p13), %s1807_s5 }
 0x158   : > { %s1959_s20 = smov (!%p1143_p13), %s1708_s12  ;;  %s1822_s26 = smov (!%p1143_p13), 0  }
 0x159   : > { %s1824_s8 = smov (!%p1143_p13), 0  }
 0x15e LB: >> { %v857_v19 = vld [vmem:[%s1496_s20] sm:$0xff]  ;;  %v859_v20 = vld [vmem:[%s1496_s20 + $0x8] sm:$0xff]  ;;  %v861_v21 = vld [vmem:[%s1496_s20 + $0x10] sm:$0xff]  ;;  %s921_s9 = sadd.s32 1, %s1500_s26  ;;  %s851_s8 = sadd.s32 1, %s1504_s8   ;;  %s1504_s8 = sphi %s1824_s8, %s851_s8   ;;  %s1500_s26 = sphi %s1822_s26, %s1962_s26   ;;  %s1496_s20 = sphi %s1959_s20, %s1961_s20   ;;  %s1492_s14 = sphi %s1958_s14, %s1960_s14  }
 0x15f   : >> { %858 = vst [vmem:[%s1492_s14] sm:$0xff] %v857_v19  ;;  %860 = vst [vmem:[%s1492_s14 + $0x8] sm:$0xff] %v859_v20  ;;  %v863_v22 = vld [vmem:[%s1496_s20 + $0x18] sm:$0xff]  ;;  %v865_v23 = vld [vmem:[%s1496_s20 + $0x20] sm:$0xff]  ;;  %p922_p0 = scmp.ge.s32.totalorder %s921_s9, %s1813_s7  ;;  %p850_p1 = scmp.ge.s32.totalorder %s851_s8, %s1813_s7 }
 0x160   : >> { %862 = vst [vmem:[%s1492_s14 + $0x10] sm:$0xff] %v861_v21  ;;  %v867_v24 = vld [vmem:[%s1496_s20 + $0x28] sm:$0xff]  ;;  %864 = vst [vmem:[%s1492_s14 + $0x18] sm:$0xff] %v863_v22  ;;  %v869_v25 = vld [vmem:[%s1496_s20 + $0x30] sm:$0xff] }
 0x161   : >> { %866 = vst [vmem:[%s1492_s14 + $0x20] sm:$0xff] %v865_v23  ;;  %868 = vst [vmem:[%s1492_s14 + $0x28] sm:$0xff] %v867_v24  ;;  %v871_v26 = vld [vmem:[%s1496_s20 + $0x38] sm:$0xff]  ;;  %v873_v27 = vld [vmem:[%s1496_s20 + $0x40] sm:$0xff]  ;;  %s1972_s9 = smov (%p922_p0, %s921_s9), 0 }
 0x162   : >> { %870 = vst [vmem:[%s1492_s14 + $0x30] sm:$0xff] %v869_v25  ;;  %872 = vst [vmem:[%s1492_s14 + $0x38] sm:$0xff] %v871_v26  ;;  %v875_v28 = vld [vmem:[%s1496_s20 + $0x48] sm:$0xff]  ;;  %v877_v29 = vld [vmem:[%s1496_s20 + $0x50] sm:$0xff]  ;;  %s1144_s10 = sshll.u32 %s1972_s9, 8  ;;  %s1962_s26 = smov %s1972_s9 }
 0x163   : >> { %874 = vst [vmem:[%s1492_s14 + $0x40] sm:$0xff] %v873_v27  ;;  %v879_v30 = vld [vmem:[%s1496_s20 + $0x58] sm:$0xff]  ;;  %876 = vst [vmem:[%s1492_s14 + $0x48] sm:$0xff] %v875_v28  ;;  %v881_v31 = vld [vmem:[%s1496_s20 + $0x60] sm:$0xff]  ;;  %s1880_s27 = scalar_lea.vmem %s1708_s12, %s1144_s10 [#allocation6]   ;;  %s927_s22 = scalar_lea.vmem %s1807_s5, %s1144_s10  }
 0x164   : >> { %878 = vst [vmem:[%s1492_s14 + $0x50] sm:$0xff] %v877_v29  ;;  %880 = vst [vmem:[%s1492_s14 + $0x58] sm:$0xff] %v879_v30  ;;  %v883_v32 = vld [vmem:[%s1496_s20 + $0x68] sm:$0xff]  ;;  %v885_v33 = vld [vmem:[%s1496_s20 + $0x70] sm:$0xff] }
 0x165   : >> { %882 = vst [vmem:[%s1492_s14 + $0x60] sm:$0xff] %v881_v31  ;;  %884 = vst [vmem:[%s1492_s14 + $0x68] sm:$0xff] %v883_v32  ;;  %v887_v34 = vld [vmem:[%s1496_s20 + $0x78] sm:$0xff]  ;;  %v889_v35 = vld [vmem:[%s1496_s20 + $0x80] sm:$0xff] }
 0x166   : >> { %886 = vst [vmem:[%s1492_s14 + $0x70] sm:$0xff] %v885_v33  ;;  %v891_v36 = vld [vmem:[%s1496_s20 + $0x88] sm:$0xff]  ;;  %888 = vst [vmem:[%s1492_s14 + $0x78] sm:$0xff] %v887_v34  ;;  %v893_v37 = vld [vmem:[%s1496_s20 + $0x90] sm:$0xff] }
 0x167   : >> { %890 = vst [vmem:[%s1492_s14 + $0x80] sm:$0xff] %v889_v35  ;;  %892 = vst [vmem:[%s1492_s14 + $0x88] sm:$0xff] %v891_v36  ;;  %v895_v38 = vld [vmem:[%s1496_s20 + $0x98] sm:$0xff]  ;;  %v897_v39 = vld [vmem:[%s1496_s20 + $0xa0] sm:$0xff] }
 0x168   : >> { %894 = vst [vmem:[%s1492_s14 + $0x90] sm:$0xff] %v893_v37  ;;  %896 = vst [vmem:[%s1492_s14 + $0x98] sm:$0xff] %v895_v38  ;;  %v899_v40 = vld [vmem:[%s1496_s20 + $0xa8] sm:$0xff]  ;;  %v901_v41 = vld [vmem:[%s1496_s20 + $0xb0] sm:$0xff]  ;;  %853 = sbr.rel (!%p850_p1) target bundleno = 350 (0x15e), region = 133 }
 0x169   : >> { %898 = vst [vmem:[%s1492_s14 + $0xa0] sm:$0xff] %v897_v39  ;;  %v903_v42 = vld [vmem:[%s1496_s20 + $0xb8] sm:$0xff]  ;;  %900 = vst [vmem:[%s1492_s14 + $0xa8] sm:$0xff] %v899_v40  ;;  %v905_v43 = vld [vmem:[%s1496_s20 + $0xc0] sm:$0xff] }
 0x16a   : >> { %902 = vst [vmem:[%s1492_s14 + $0xb0] sm:$0xff] %v901_v41  ;;  %904 = vst [vmem:[%s1492_s14 + $0xb8] sm:$0xff] %v903_v42  ;;  %v907_v44 = vld [vmem:[%s1496_s20 + $0xc8] sm:$0xff]  ;;  %v909_v45 = vld [vmem:[%s1496_s20 + $0xd0] sm:$0xff] }
 0x16b   : >> { %906 = vst [vmem:[%s1492_s14 + $0xc0] sm:$0xff] %v905_v43  ;;  %908 = vst [vmem:[%s1492_s14 + $0xc8] sm:$0xff] %v907_v44  ;;  %v911_v46 = vld [vmem:[%s1496_s20 + $0xd8] sm:$0xff]  ;;  %v913_v47 = vld [vmem:[%s1496_s20 + $0xe0] sm:$0xff] }
 0x16c   : >> { %910 = vst [vmem:[%s1492_s14 + $0xd0] sm:$0xff] %v909_v45  ;;  %v915_v48 = vld [vmem:[%s1496_s20 + $0xe8] sm:$0xff]  ;;  %912 = vst [vmem:[%s1492_s14 + $0xd8] sm:$0xff] %v911_v46  ;;  %v917_v49 = vld [vmem:[%s1496_s20 + $0xf0] sm:$0xff] }
 0x16d   : >> { %914 = vst [vmem:[%s1492_s14 + $0xe0] sm:$0xff] %v913_v47  ;;  %916 = vst [vmem:[%s1492_s14 + $0xe8] sm:$0xff] %v915_v48  ;;  %v919_v50 = vld [vmem:[%s1496_s20 + $0xf8] sm:$0xff]  ;;  %s1961_s20 = smov %s1880_s27 }
 0x16e   : >> { %918 = vst [vmem:[%s1492_s14 + $0xf0] sm:$0xff] %v917_v49  ;;  %920 = vst [vmem:[%s1492_s14 + $0xf8] sm:$0xff] %v919_v50  ;;  %s1960_s14 = smov %s927_s22 }
 0x16f PF: > { %s1921_s29 = sand.u32 31, %s1970_s25   ;;  %s1155_s11 = sshll.u32 %s1813_s7, 8 }
 0x170   : > { %s932_s17 = scalar_lea.vmem %s1708_s12, %s1155_s11 [#allocation6]   ;;  %s934_s19 = scalar_lea.vmem %s1807_s5, %s1155_s11  }
 0x171   : > { %p1149_p2 = scmp.le.s32.totalorder %s1921_s29, 0 }
 0x172   : > { %s1506_s23 = smov (!%p1149_p2), %s934_s19   ;;  %s1510_s21 = smov (!%p1149_p2), %s932_s17  }
 0x173   : > { %1035 = sbr.rel (%p1149_p2) target bundleno = 388 (0x184), region = 138  ;;  %s1514_s28 = smov (!%p1149_p2), 0  }
 0x174   : > { %s1518_s30 = smov (!%p1149_p2), 0  }
 0x17a LB: >> { %v944_v51 = vld [vmem:[%s1512_s21] sm:$0xff]  ;;  %s946_s25 = sadd.s32 1, %s1516_s28  ;;  %s938_s30 = sadd.s32 1, %s1520_s30   ;;  %s1520_s30 = sphi %s1518_s30, %s938_s30   ;;  %s1516_s28 = sphi %s1514_s28, %s1515_s28   ;;  %s1512_s21 = sphi %s1510_s21, %s951_s21   ;;  %s1508_s23 = sphi %s1506_s23, %s952_s23  }
 0x17b   : >> { %945 = vst [vmem:[%s1508_s23] sm:$0xff] %v944_v51  ;;  %p947_p4 = scmp.ge.s32.totalorder %s946_s25, %s1921_s29  ;;  %p937_p5 = scmp.ge.s32.totalorder %s938_s30, %s1921_s29 }
 0x17d   : >> { %s1974_s25 = smov (%p947_p4, %s946_s25), 0  ;;  %940 = sbr.rel (!%p937_p5) target bundleno = 378 (0x17a), region = 144 }
 0x17e   : >> { %s1150_s12 = sshll.u32 %s1974_s25, 3  ;;  %s1515_s28 = smov %s1974_s25  }
 0x17f   : >> { %s951_s21 = scalar_lea.vmem %s932_s17, %s1150_s12 [#allocation6]   ;;  %s952_s23 = scalar_lea.vmem %s934_s19, %s1150_s12  }
 0x184 PF: > { %s15_s16 = sadd.s32 1, %s1488_s16   ;;  %s1963_s12 = smov %s1476_s13 }
 0x185   : > { %p12_p6 = scmp.ge.s32.totalorder %s15_s16, 4   ;;  %s1964_s13 = smov %s1595_s24 }
 0x186   : > { %s1965_s14 = smov %s1484_s15  ;;  %s1966_s15 = smov %s1968_s18 }
 0x187   :  { %14 = sbr.rel (!%p12_p6) target bundleno = 4 (0x4), region = 155 }
 0x18e   :  { %968 = vsyncpa [#allocation3], 1 }
 0x18f   :  { %970 = vsyncpa [#allocation3 + $0x1], 1 }
 0x190   :  { %971 = vsyncpa [#allocation5], 1 }

// kernel: encoder_forward.5
= control target key start
LH: loop header
LB: loop body
LE: loop exit
PB: predicated region body
PF: predicated region fallthrough
CT: control target
= control target key end

     0   :  { %9 = vsyncpa [#allocation3], 0  ;;  %s2317_s0 = inlined_call_operand.vmem [shape: bf16[98,1024], index: 0, kind: input, shape index: {}]   ;;  %s2318_s1 = inlined_call_operand.hbm [shape: bf16[1024,128], index: 1, kind: input, shape index: {}]   ;;  %s2319_s2 = inlined_call_operand.hbm [shape: f32[1,128], index: 2, kind: input, shape index: {}]   ;;  %s2320_s3 = inlined_call_operand.hbm [shape: f32[1,128], index: 3, kind: input, shape index: {}]   ;;  %s2321_s4 = inlined_call_operand.vmem [shape: f32[98,128], index: 4, kind: output, shape index: {}]  }
   0x1   :  { %10 = vsyncpa [#allocation5], 0  ;;  %s1925_s15 = smov [#allocation4]   ;;  %s1926_s17 = smov [#allocation2]  }
   0x2   :  { %s31_s16 = sshll.u32 %s1925_s15, 4  ;;  %s18_s18 = sshll.u32 %s1926_s17, 4  ;;  %s32_s16 = int_to_ptr.vmem [resolvable:$true] %s31_s16  ;;  %s1955_s18 = int_to_ptr.vmem [resolvable:$true] %s18_s18 }
   0x3   :  { %s1855_s21 = scalar_lea.hbm %s2319_s2, 16 }
   0x4   :  { %p1856_p0 = scmp.ne.s32.totalorder %s2319_s2, %s1855_s21  ;;  %p1859_p1 = scmp.lt.u32.totalorder %s1855_s21, %s2319_s2 }
   0x6   :  { %p1861_p2 = pnand %p1859_p1, %p1856_p0 }
   0x8   :  { %1864 = shalt.err (!%p1861_p2)
}
   0x9   :  { %s1865_s26 = scalar_lea.vmem %s32_s16, 16  ;;  %s1869_s27 = scalar_lea.vmem %s32_s16, 32 }
   0xa   :  { %p1866_p3 = scmp.ne.s32.totalorder %s32_s16, %s1865_s26  ;;  %p1870_p4 = scmp.lt.s32.totalorder %s32_s16, %s32_s16 }
   0xb   :  { %p1871_p5 = scmp.lt.s32.totalorder %s1869_s27, %s1865_s26 }
   0xd   :  { %p1872_p6 = por %p1871_p5, %p1870_p4 }
   0xf   :  { %p1873_p7 = pnand %p1872_p6, %p1866_p3 }
  0x11   :  { %1876 = shalt.err (!%p1873_p7)
}
  0x12   :  { %34 = dma.hbm_to_vmem [thread:$0]  %s2319_s2, 16, %s32_s16, [#allocation5]  }
  0x13   :  { %s1877_s6 = scalar_lea.hbm %s2318_s1, 8192 }
  0x14   :  { %p1878_p8 = scmp.ne.s32.totalorder %s2318_s1, %s1877_s6  ;;  %p1881_p9 = scmp.lt.u32.totalorder %s1877_s6, %s2318_s1 }
  0x16   :  { %p1883_p10 = pnand %p1881_p9, %p1878_p8 }
  0x18   :  { %1886 = shalt.err (!%p1883_p10)
}
  0x19   :  { %s1887_s11 = scalar_lea.vmem %s1955_s18, 8192  ;;  %p1892_p12 = scmp.lt.s32.totalorder %s1955_s18, %s1955_s18 }
  0x1a   :  { %p1888_p11 = scmp.ne.s32.totalorder %s1955_s18, %s1887_s11  ;;  %p1893_p13 = scmp.lt.s32.totalorder %s1887_s11, %s1887_s11 }
  0x1c   :  { %p1894_p0 = por %p1893_p13, %p1892_p12 }
  0x1e   :  { %p1895_p1 = pnand %p1894_p0, %p1888_p11 }
  0x20   :  { %1898 = shalt.err (!%p1895_p1)
}
  0x21   :  { %s1927_s2 = smov 64   ;;  %s1928_s12 = smov 4  }
  0x22   :  { %24 = dma.hbm_to_vmem [thread:$0]  %s2318_s1, 8192, %s1955_s18, [#allocation3], %s1927_s2, %s1927_s2, %s1928_s12  }
  0x23   :  { %s1929_s15 = smov [#allocation6]   ;;  %s1899_s20 = scalar_lea.hbm %s2320_s3, 16 }
  0x24   :  { %s41_s16 = sshll.u32 %s1929_s15, 4  ;;  %p1900_p2 = scmp.ne.s32.totalorder %s2320_s3, %s1899_s20  ;;  %s42_s16 = int_to_ptr.vmem [resolvable:$true] %s41_s16 }
  0x25   :  { %p1903_p3 = scmp.lt.u32.totalorder %s1899_s20, %s2320_s3 }
  0x27   :  { %p1905_p4 = pnand %p1903_p3, %p1900_p2 }
  0x29   :  { %1908 = shalt.err (!%p1905_p4)
}
  0x2a   :  { %s1909_s25 = scalar_lea.vmem %s42_s16, 16  ;;  %s1913_s1 = scalar_lea.vmem %s42_s16, 32 }
  0x2b   :  { %p1910_p5 = scmp.ne.s32.totalorder %s42_s16, %s1909_s25  ;;  %p1914_p6 = scmp.lt.s32.totalorder %s42_s16, %s42_s16 }
  0x2c   :  { %p1915_p7 = scmp.lt.s32.totalorder %s1913_s1, %s1909_s25 }
  0x2e   :  { %p1916_p8 = por %p1915_p7, %p1914_p6 }
  0x30   :  { %p1917_p9 = pnand %p1916_p8, %p1910_p5 }
  0x32   :  { %1920 = shalt.err (!%p1917_p9)
}
  0x33   :  { %44 = dma.hbm_to_vmem [thread:$0]  %s2320_s3, 16, %s42_s16, [#allocation5]  }
  0x34   :  { %1921 = dma.done.wait [#allocation3], 8192  }
  0x35   :  { %1922 = vsyncadd [#allocation3], 4294959104 }
  0x36   :  { %1923 = dma.done.wait [#allocation5], 32  }
  0x37   :  { %1924 = vsyncadd [#allocation5], 4294967264  ;;  %v1781_v0 = vld [vmem:[#allocation2 + $0x40] sm:$0xff]   ;;  %v1785_v4 = vld [vmem:[#allocation2 + $0x48] sm:$0xff]   ;;  %vm1250_vm0 = vcmask 1041408  }
  0x38   :  { %v1782_v1 = vld [vmem:[#allocation2 + $0xc0] sm:$0xff]   ;;  %1544 = vmatprep.subr.bf16.mxu0 %v1781_v0  ;;  %v1786_v5 = vld [vmem:[#allocation2 + $0xc8] sm:$0xff]   ;;  %v1789_v8 = vld [vmem:[#allocation2 + $0x50] sm:$0xff]  }
  0x39   :  { %v1783_v2 = vld [vmem:[#allocation2] sm:$0xff]   ;;  %1602 = vmatprep.subr.bf16.mxu1 %v1782_v1  ;;  %v1787_v6 = vld [vmem:[#allocation2 + $0x8] sm:$0xff]   ;;  %v1790_v9 = vld [vmem:[#allocation2 + $0xd0] sm:$0xff]  }
  0x3a   :  { %v1784_v3 = vld [vmem:[#allocation2 + $0x80] sm:$0xff]   ;;  %1545 = vmatpush3.bf16.msra.mxu0 %v1783_v2  ;;  %v1788_v7 = vld [vmem:[#allocation2 + $0x88] sm:$0xff]   ;;  %v1791_v10 = vld [vmem:[#allocation2 + $0x10] sm:$0xff]  }
  0x3b   :  { %1603 = vmatpush3.bf16.msra.mxu1 %v1784_v3  ;;  %1546 = vmatprep.subr.bf16.mxu0 %v1785_v4  ;;  %v1792_v11 = vld [vmem:[#allocation2 + $0x90] sm:$0xff]   ;;  %v1793_v12 = vld [vmem:[#allocation2 + $0x58] sm:$0xff]   ;;  %v1797_v16 = vld [vmem:[#allocation2 + $0x60] sm:$0xff]  }
  0x3c   :  { %1604 = vmatprep.subr.bf16.mxu1 %v1786_v5  ;;  %v1794_v13 = vld [vmem:[#allocation2 + $0xd8] sm:$0xff]   ;;  %v1798_v17 = vld [vmem:[#allocation2 + $0xe0] sm:$0xff]   ;;  %v1801_v20 = vld [vmem:[#allocation2 + $0x68] sm:$0xff]  }
  0x3d   :  { %v1795_v14 = vld [vmem:[#allocation2 + $0x18] sm:$0xff]   ;;  %v1799_v18 = vld [vmem:[#allocation2 + $0x20] sm:$0xff]   ;;  %v1802_v21 = vld [vmem:[#allocation2 + $0xe8] sm:$0xff]  }
  0x3e   :  { %1547 = vmatpush3.bf16.msra.mxu0 %v1787_v6  ;;  %v1796_v15 = vld [vmem:[#allocation2 + $0x98] sm:$0xff]   ;;  %v1800_v19 = vld [vmem:[#allocation2 + $0xa0] sm:$0xff]   ;;  %v1803_v22 = vld [vmem:[#allocation2 + $0x28] sm:$0xff]  }
  0x3f   :  { %1605 = vmatpush3.bf16.msra.mxu1 %v1788_v7  ;;  %1548 = vmatprep.subr.bf16.mxu0 %v1789_v8  ;;  %v1804_v23 = vld [vmem:[#allocation2 + $0xa8] sm:$0xff]   ;;  %v1805_v24 = vld [vmem:[#allocation2 + $0x70] sm:$0xff]   ;;  %v1809_v28 = vld [vmem:[#allocation2 + $0x78] sm:$0xff]  }
  0x40   :  { %1606 = vmatprep.subr.bf16.mxu1 %v1790_v9  ;;  %v1806_v25 = vld [vmem:[#allocation2 + $0xf0] sm:$0xff]   ;;  %v1810_v29 = vld [vmem:[#allocation2 + $0xf8] sm:$0xff]   ;;  %v55_v32 = vld [vmem:[%s2317_s0] sm:$0xff] }
  0x41   :  { %v1807_v26 = vld [vmem:[#allocation2 + $0x30] sm:$0xff]   ;;  %v1811_v30 = vld [vmem:[#allocation2 + $0x38] sm:$0xff]   ;;  %v59_v33 = vld [vmem:[%s2317_s0 + $0x20] sm:$0xff] }
  0x42   :  { %1549 = vmatpush3.bf16.msra.mxu0 %v1791_v10  ;;  %v1808_v27 = vld [vmem:[#allocation2 + $0xb0] sm:$0xff]   ;;  %v1812_v31 = vld [vmem:[#allocation2 + $0xb8] sm:$0xff]   ;;  %v56_v34 = vld [vmem:[%s2317_s0 + $0x8] sm:$0xff]  ;;  %v1422_v35 = vcombine.low %v55_v32, %v59_v33  ;;  %v1423_v36 = vcombine.high %v55_v32, %v59_v33 }
  0x43   :  { %1607 = vmatpush3.bf16.msra.mxu1 %v1792_v11  ;;  %1550 = vmatprep.subr.bf16.mxu0 %v1793_v12  ;;  %v60_v37 = vld [vmem:[%s2317_s0 + $0x28] sm:$0xff]  ;;  %v1813_v40 = vld [vmem:[#allocation2 + $0x140] sm:$0xff]   ;;  %v1821_v56 = vld [vmem:[#allocation2 + $0x150] sm:$0xff]  }
  0x44   :  { %1608 = vmatprep.subr.bf16.mxu1 %v1794_v13  ;;  %v1424_v38 = vcombine.low %v56_v34, %v60_v37  ;;  %v1425_v39 = vcombine.high %v56_v34, %v60_v37  ;;  %919 = vmatprep.mubr.bf16.mxu0 %v1423_v36  ;;  %v1814_v41 = vld [vmem:[#allocation2 + $0x100] sm:$0xff]   ;;  %v64_v47 = vld [vmem:[%s2317_s0 + $0x48] sm:$0xff]  ;;  %v1822_v63 = vld [vmem:[#allocation2 + $0x110] sm:$0xff]  }
  0x45   :  { %v1815_v42 = vld [vmem:[#allocation2 + $0x1c0] sm:$0xff]   ;;  %v68_v48 = vld [vmem:[%s2317_s0 + $0x68] sm:$0xff]  ;;  %v1823_v0 = vld [vmem:[#allocation2 + $0x1d0] sm:$0xff]  }
  0x46   :  { %1551 = vmatpush3.bf16.msra.mxu0 %v1795_v14  ;;  %1007 = vmatprep.mubr.bf16.mxu1 %v1425_v39  ;;  %v1816_v43 = vld [vmem:[#allocation2 + $0x180] sm:$0xff]   ;;  %v1433_v49 = vcombine.high %v64_v47, %v68_v48  ;;  %v1817_v50 = vld [vmem:[#allocation2 + $0x148] sm:$0xff]   ;;  %v1432_v53 = vcombine.low %v64_v47, %v68_v48  ;;  %v1824_v1 = vld [vmem:[#allocation2 + $0x190] sm:$0xff]  }
  0x47   :  { %1609 = vmatpush3.bf16.msra.mxu1 %v1796_v15  ;;  %1552 = vmatprep.subr.bf16.mxu0 %v1797_v16  ;;  %v63_v44 = vld [vmem:[%s2317_s0 + $0x40] sm:$0xff]  ;;  %v1818_v52 = vld [vmem:[#allocation2 + $0x108] sm:$0xff]   ;;  %v1825_v3 = vld [vmem:[#allocation2 + $0x158] sm:$0xff]  }
  0x48   :  { %1610 = vmatprep.subr.bf16.mxu1 %v1798_v17  ;;  %v67_v45 = vld [vmem:[%s2317_s0 + $0x60] sm:$0xff]  ;;  %v1819_v54 = vld [vmem:[#allocation2 + $0x1c8] sm:$0xff]   ;;  %v1826_v5 = vld [vmem:[#allocation2 + $0x118] sm:$0xff]  }
  0x49   :  { %v1431_v46 = vcombine.high %v63_v44, %v67_v45  ;;  %v1430_v51 = vcombine.low %v63_v44, %v67_v45  ;;  %v1820_v55 = vld [vmem:[#allocation2 + $0x188] sm:$0xff]   ;;  %v71_v57 = vld [vmem:[%s2317_s0 + $0x80] sm:$0xff]  ;;  %v1827_v12 = vld [vmem:[#allocation2 + $0x1d8] sm:$0xff]  }
  0x4a   :  { %1553 = vmatpush3.bf16.msra.mxu0 %v1799_v18  ;;  %v75_v58 = vld [vmem:[%s2317_s0 + $0xa0] sm:$0xff]  ;;  %v72_v59 = vld [vmem:[%s2317_s0 + $0x88] sm:$0xff]  ;;  %v1828_v13 = vld [vmem:[#allocation2 + $0x198] sm:$0xff]  }
  0x4b   :  { %1611 = vmatpush3.bf16.msra.mxu1 %v1800_v19  ;;  %1554 = vmatprep.subr.bf16.mxu0 %v1801_v20  ;;  %v76_v60 = vld [vmem:[%s2317_s0 + $0xa8] sm:$0xff]  ;;  %v1439_v61 = vcombine.high %v71_v57, %v75_v58  ;;  %v1438_v2 = vcombine.low %v71_v57, %v75_v58  ;;  %v79_v6 = vld [vmem:[%s2317_s0 + $0xc0] sm:$0xff]  ;;  %v1845_v44 = vld [vmem:[#allocation2 + $0x178] sm:$0xff]  }
  0x4c   :  { %1612 = vmatprep.subr.bf16.mxu1 %v1802_v21  ;;  %v1441_v62 = vcombine.high %v72_v59, %v76_v60  ;;  %v1440_v4 = vcombine.low %v72_v59, %v76_v60  ;;  %v83_v7 = vld [vmem:[%s2317_s0 + $0xe0] sm:$0xff]  ;;  %v80_v8 = vld [vmem:[%s2317_s0 + $0xc8] sm:$0xff]  ;;  %v1846_v45 = vld [vmem:[#allocation2 + $0x138] sm:$0xff]  }
  0x4d   :  { %v1447_v9 = vcombine.high %v79_v6, %v83_v7  ;;  %v84_v10 = vld [vmem:[%s2317_s0 + $0xe8] sm:$0xff]  ;;  %v1829_v14 = vld [vmem:[#allocation2 + $0x160] sm:$0xff]   ;;  %v1446_v16 = vcombine.low %v79_v6, %v83_v7  ;;  %v1848_v48 = vld [vmem:[#allocation2 + $0x1b8] sm:$0xff]  }
  0x4e   :  { %1555 = vmatpush3.bf16.msra.mxu0 %v1803_v22  ;;  %v1449_v11 = vcombine.high %v80_v8, %v84_v10  ;;  %v1830_v15 = vld [vmem:[#allocation2 + $0x120] sm:$0xff]   ;;  %v1448_v20 = vcombine.low %v80_v8, %v84_v10  ;;  %v88_v22 = vld [vmem:[%s2317_s0 + $0x108] sm:$0xff]  ;;  %v65_v60 = vld [vmem:[%s2317_s0 + $0x50] sm:$0xff] }
  0x4f   :  { %1613 = vmatpush3.bf16.msra.mxu1 %v1804_v23  ;;  %1556 = vmatprep.subr.bf16.mxu0 %v1805_v24  ;;  %v1831_v17 = vld [vmem:[#allocation2 + $0x1e0] sm:$0xff]   ;;  %v92_v23 = vld [vmem:[%s2317_s0 + $0x128] sm:$0xff]  ;;  %v74_v6 = vld [vmem:[%s2317_s0 + $0x98] sm:$0xff] }
  0x50   :  { %1614 = vmatprep.subr.bf16.mxu1 %v1806_v25  ;;  %v87_v18 = vld [vmem:[%s2317_s0 + $0x100] sm:$0xff]  ;;  %v1457_v24 = vcombine.high %v88_v22, %v92_v23  ;;  %v96_v32 = vld [vmem:[%s2317_s0 + $0x148] sm:$0xff]  ;;  %v1456_v36 = vcombine.low %v88_v22, %v92_v23  ;;  %v78_v7 = vld [vmem:[%s2317_s0 + $0xb8] sm:$0xff] }
  0x51   :  { %v91_v19 = vld [vmem:[%s2317_s0 + $0x120] sm:$0xff]  ;;  %v100_v33 = vld [vmem:[%s2317_s0 + $0x168] sm:$0xff]  ;;  %v90_v22 = vld [vmem:[%s2317_s0 + $0x118] sm:$0xff] }
  0x52   :  { %1557 = vmatpush3.bf16.msra.mxu0 %v1807_v26  ;;  %v1455_v21 = vcombine.high %v87_v18, %v91_v19  ;;  %v1832_v25 = vld [vmem:[#allocation2 + $0x1a0] sm:$0xff]   ;;  %v1833_v26 = vld [vmem:[#allocation2 + $0x168] sm:$0xff]   ;;  %v1454_v34 = vcombine.low %v87_v18, %v91_v19  ;;  %v1465_v39 = vcombine.high %v96_v32, %v100_v33  ;;  %v94_v23 = vld [vmem:[%s2317_s0 + $0x138] sm:$0xff] }
  0x53   :  { %1615 = vmatpush3.bf16.msra.mxu1 %v1808_v27  ;;  %1558 = vmatprep.subr.bf16.mxu0 %v1809_v28  ;;  %v1834_v27 = vld [vmem:[#allocation2 + $0x128] sm:$0xff]  }
  0x54   :  { %1616 = vmatprep.subr.bf16.mxu1 %v1810_v29  ;;  %v1835_v28 = vld [vmem:[#allocation2 + $0x1e8] sm:$0xff]  }
  0x55   :  { %v1836_v29 = vld [vmem:[#allocation2 + $0x1a8] sm:$0xff]  }
  0x56   :  { %1559 = vmatpush3.bf16.msra.mxu0 %v1811_v30  ;;  %v95_v30 = vld [vmem:[%s2317_s0 + $0x140] sm:$0xff] }
  0x57   :  { %1617 = vmatpush3.bf16.msra.mxu1 %v1812_v31  ;;  %1660 = vmatprep.subr.bf16.mxu0 %v1813_v40  ;;  %v99_v31 = vld [vmem:[%s2317_s0 + $0x160] sm:$0xff]  ;;  %v1839_v40 = vld [vmem:[#allocation2 + $0x1f0] sm:$0xff]  }
  0x58   :  { %1718 = vmatprep.subr.bf16.mxu1 %v1815_v42  ;;  %v1463_v37 = vcombine.high %v95_v30, %v99_v31  ;;  %v103_v42 = vld [vmem:[%s2317_s0 + $0x180] sm:$0x11]  ;;  %v1462_v47 = vcombine.low %v95_v30, %v99_v31  ;;  %v98_v30 = vld [vmem:[%s2317_s0 + $0x158] sm:$0xff] }
  0x59   :  { %920 = vmatmul.mubr.bf16.vlgmr.msra.gmra.mrb[0].mxu0 %v1422_v35  ;;  %v1837_v35 = vld [vmem:[#allocation2 + $0x170] sm:$0xff]   ;;  %v102_v31 = vld [vmem:[%s2317_s0 + $0x178] sm:$0xff] }
  0x5a   :  { %1008 = vmatmul.mubr.bf16.vlgmr.msra.gmra.mrb[0].mxu1 %v1424_v38  ;;  %1661 = vmatpush3.bf16.msra.mxu0 %v1814_v41  ;;  %v1838_v38 = vld [vmem:[#allocation2 + $0x130] sm:$0xff]  }
  0x5b   :  { %1719 = vmatpush3.bf16.msra.mxu1 %v1816_v43  ;;  %927 = vmatprep.mubr.bf16.mxu0 %v1431_v46  ;;  %v1840_v41 = vld [vmem:[#allocation2 + $0x1b0] sm:$0xff]   ;;  %v104_v43 = vld [vmem:[%s2317_s0 + $0x188] sm:$0x11]  ;;  %v1847_v46 = vld [vmem:[#allocation2 + $0x1f8] sm:$0xff]  }
  0x5c   :  { %1015 = vmatprep.mubr.bf16.mxu1 %v1433_v49  ;;  %1662 = vmatprep.subr.bf16.mxu0 %v1817_v50  ;;  %v1464_v49 = vcombine.low %v96_v32, %v100_v33  ;;  %v1471_v50 = vcombine.high %v103_v42, %v103_v42  ;;  %v1472_v57 = vcombine.low %v104_v43, %v104_v43 }
  0x5d   :  { %1720 = vmatprep.subr.bf16.mxu1 %v1819_v54  ;;  %v58_v54 = vld [vmem:[%s2317_s0 + $0x18] sm:$0xff]  ;;  %v1460_v33 = vcombine.low %v90_v22, %v94_v23 }
  0x5e   :  { %1663 = vmatpush3.bf16.msra.mxu0 %v1818_v52  ;;  %v57_v52 = vld [vmem:[%s2317_s0 + $0x10] sm:$0xff] }
  0x5f   :  { %1721 = vmatpush3.bf16.msra.mxu1 %v1820_v55  ;;  %1664 = vmatprep.subr.bf16.mxu0 %v1821_v56  ;;  %v62_v55 = vld [vmem:[%s2317_s0 + $0x38] sm:$0xff]  ;;  %v1470_v56 = vcombine.low %v103_v42, %v103_v42 }
  0x60   :  { %1722 = vmatprep.subr.bf16.mxu1 %v1823_v0  ;;  %v1429_v59 = vcombine.high %v58_v54, %v62_v55 }
  0x61   :  { %928 = vmatmul.mubr.bf16.gmra.mrb[4].mxu0 %v1430_v51  ;;  %v1473_v51 = vcombine.high %v104_v43, %v104_v43 }
  0x62   :  { %1016 = vmatmul.mubr.bf16.gmra.mrb[4].mxu1 %v1432_v53  ;;  %935 = vmatprep.mubr.bf16.mxu0 %v1439_v61  ;;  %v61_v53 = vld [vmem:[%s2317_s0 + $0x30] sm:$0xff] }
  0x63   :  { %1023 = vmatprep.mubr.bf16.mxu1 %v1441_v62  ;;  %1665 = vmatpush3.bf16.msra.mxu0 %v1822_v63  ;;  %v1427_v58 = vcombine.high %v57_v52, %v61_v53  ;;  %v69_v61 = vld [vmem:[%s2317_s0 + $0x70] sm:$0xff]  ;;  %v66_v62 = vld [vmem:[%s2317_s0 + $0x58] sm:$0xff]  ;;  %v1426_v0 = vcombine.low %v57_v52, %v61_v53 }
  0x64   :  { %1723 = vmatpush3.bf16.msra.mxu1 %v1824_v1  ;;  %1666 = vmatprep.subr.bf16.mxu0 %v1825_v3  ;;  %v70_v63 = vld [vmem:[%s2317_s0 + $0x78] sm:$0xff]  ;;  %v1428_v1 = vcombine.low %v58_v54, %v62_v55  ;;  %v1434_v8 = vcombine.low %v65_v60, %v69_v61 }
  0x65   :  { %1724 = vmatprep.subr.bf16.mxu1 %v1827_v12  ;;  %v1437_v3 = vcombine.high %v66_v62, %v70_v63  ;;  %v81_v12 = vld [vmem:[%s2317_s0 + $0xd0] sm:$0xff] }
  0x67   :  { %1667 = vmatpush3.bf16.msra.mxu0 %v1826_v5  ;;  %v77_v5 = vld [vmem:[%s2317_s0 + $0xb0] sm:$0xff] }
  0x68   :  { %1725 = vmatpush3.bf16.msra.mxu1 %v1828_v13  ;;  %1668 = vmatprep.subr.bf16.mxu0 %v1829_v14  ;;  %v85_v13 = vld [vmem:[%s2317_s0 + $0xf0] sm:$0xff]  ;;  %v82_v14 = vld [vmem:[%s2317_s0 + $0xd8] sm:$0xff] }
  0x69   :  { %936 = vmatmul.mubr.bf16.gmra.mrb[8].mxu0 %v1438_v2  ;;  %1726 = vmatprep.subr.bf16.mxu1 %v1831_v17  ;;  %v1435_v2 = vcombine.high %v65_v60, %v69_v61  ;;  %v1444_v17 = vcombine.low %v74_v6, %v78_v7  ;;  %v1451_v18 = vcombine.high %v81_v12, %v85_v13 }
  0x6a   :  { %1024 = vmatmul.mubr.bf16.gmra.mrb[8].mxu1 %v1440_v4  ;;  %943 = vmatprep.mubr.bf16.mxu0 %v1447_v9  ;;  %v73_v4 = vld [vmem:[%s2317_s0 + $0x90] sm:$0xff]  ;;  %v1436_v9 = vcombine.low %v66_v62, %v70_v63 }
  0x6b   :  { %1031 = vmatprep.mubr.bf16.mxu1 %v1449_v11  ;;  %1669 = vmatpush3.bf16.msra.mxu0 %v1830_v15  ;;  %v1443_v10 = vcombine.high %v73_v4, %v77_v5  ;;  %v1445_v11 = vcombine.high %v74_v6, %v78_v7  ;;  %v86_v15 = vld [vmem:[%s2317_s0 + $0xf8] sm:$0xff] }
  0x6c   :  { %1727 = vmatpush3.bf16.msra.mxu1 %v1832_v25  ;;  %1670 = vmatprep.subr.bf16.mxu0 %v1833_v26  ;;  %v1453_v19 = vcombine.high %v82_v14, %v86_v15  ;;  %v1452_v25 = vcombine.low %v82_v14, %v86_v15 }
  0x6d   :  { %1728 = vmatprep.subr.bf16.mxu1 %v1835_v28  ;;  %v97_v28 = vld [vmem:[%s2317_s0 + $0x150] sm:$0xff] }
  0x6f   :  { %1671 = vmatpush3.bf16.msra.mxu0 %v1834_v27  ;;  %v1461_v27 = vcombine.high %v90_v22, %v94_v23 }
  0x70   :  { %1729 = vmatpush3.bf16.msra.mxu1 %v1836_v29  ;;  %1672 = vmatprep.subr.bf16.mxu0 %v1837_v35  ;;  %v101_v29 = vld [vmem:[%s2317_s0 + $0x170] sm:$0xff]  ;;  %v1469_v35 = vcombine.high %v98_v30, %v102_v31 }
  0x71   :  { %944 = vmatmul.mubr.bf16.gmra.mrb[12].mxu0 %v1446_v16  ;;  %1730 = vmatprep.subr.bf16.mxu1 %v1839_v40  ;;  %v1442_v16 = vcombine.low %v73_v4, %v77_v5 }
  0x72   :  { %1032 = vmatmul.mubr.bf16.gmra.mrb[12].mxu1 %v1448_v20  ;;  %951 = vmatprep.mubr.bf16.mxu0 %v1455_v21  ;;  %v89_v20 = vld [vmem:[%s2317_s0 + $0x110] sm:$0xff] }
  0x73   :  { %1039 = vmatprep.mubr.bf16.mxu1 %v1457_v24  ;;  %1673 = vmatpush3.bf16.msra.mxu0 %v1838_v38  ;;  %v93_v21 = vld [vmem:[%s2317_s0 + $0x130] sm:$0xff]  ;;  %v1450_v24 = vcombine.low %v81_v12, %v85_v13  ;;  %v1466_v38 = vcombine.low %v97_v28, %v101_v29 }
  0x74   :  { %1731 = vmatpush3.bf16.msra.mxu1 %v1840_v41  ;;  %1674 = vmatprep.subr.bf16.mxu0 %v1845_v44  ;;  %v1459_v26 = vcombine.high %v89_v20, %v93_v21  ;;  %v1458_v32 = vcombine.low %v89_v20, %v93_v21 }
  0x75   :  { %1732 = vmatprep.subr.bf16.mxu1 %v1847_v46 }
  0x77   :  { %1675 = vmatpush3.bf16.msra.mxu0 %v1846_v45 }
  0x78   :  { %1733 = vmatpush3.bf16.msra.mxu1 %v1848_v48 }
  0x79   :  { %952 = vmatmul.mubr.bf16.gmra.mrb[16].mxu0 %v1454_v34  ;;  %v1467_v34 = vcombine.high %v97_v28, %v101_v29 }
  0x7a   :  { %1040 = vmatmul.mubr.bf16.gmra.mrb[16].mxu1 %v1456_v36  ;;  %959 = vmatprep.mubr.bf16.mxu0 %v1463_v37  ;;  %v105_v36 = vld [vmem:[%s2317_s0 + $0x190] sm:$0x11]  ;;  %v106_v37 = vld [vmem:[%s2317_s0 + $0x198] sm:$0x11] }
  0x7b   :  { %1047 = vmatprep.mubr.bf16.mxu1 %v1465_v39  ;;  %v1468_v39 = vcombine.low %v98_v30, %v102_v31  ;;  %v1475_v40 = vcombine.high %v105_v36, %v105_v36  ;;  %v1477_v41 = vcombine.high %v106_v37, %v106_v37  ;;  %v1474_v42 = vcombine.low %v105_v36, %v105_v36 }
  0x7c   :  { %v1476_v43 = vcombine.low %v106_v37, %v106_v37 }
  0x81   :  { %960 = vmatmul.mubr.bf16.gmra.mrb[20].mxu0 %v1462_v47 }
  0x82   :  { %1048 = vmatmul.mubr.bf16.gmra.mrb[20].mxu1 %v1464_v49  ;;  %967 = vmatprep.mubr.bf16.mxu0 %v1471_v50 }
  0x83   :  { %1055 = vmatprep.mubr.bf16.mxu1 %v1473_v51 }
  0x89   :  { %968 = vmatmul.mubr.bf16.gmra.mrb[24].mxu0 %v1470_v56 }
  0x8a   :  { %1056 = vmatmul.mubr.bf16.gmra.mrb[24].mxu1 %v1472_v57  ;;  %1095 = vmatprep.mubr.bf16.mxu0 %v1427_v58 }
  0x8b   :  { %1183 = vmatprep.mubr.bf16.mxu1 %v1429_v59 }
  0x91   :  { %1096 = vmatmul.mubr.bf16.vlgmr.msra.gmra.mrb[28].mxu0 %v1426_v0 }
  0x92   :  { %1184 = vmatmul.mubr.bf16.vlgmr.msra.gmra.mrb[28].mxu1 %v1428_v1  ;;  %1103 = vmatprep.mubr.bf16.mxu0 %v1435_v2 }
  0x93   :  { %1191 = vmatprep.mubr.bf16.mxu1 %v1437_v3 }
  0x99   :  { %1104 = vmatmul.mubr.bf16.gmra.mrb[32].mxu0 %v1434_v8 }
  0x9a   :  { %1192 = vmatmul.mubr.bf16.gmra.mrb[32].mxu1 %v1436_v9  ;;  %1111 = vmatprep.mubr.bf16.mxu0 %v1443_v10 }
  0x9b   :  { %1199 = vmatprep.mubr.bf16.mxu1 %v1445_v11 }
  0xa1   :  { %1112 = vmatmul.mubr.bf16.gmra.mrb[36].mxu0 %v1442_v16 }
  0xa2   :  { %1200 = vmatmul.mubr.bf16.gmra.mrb[36].mxu1 %v1444_v17  ;;  %1119 = vmatprep.mubr.bf16.mxu0 %v1451_v18 }
  0xa3   :  { %1207 = vmatprep.mubr.bf16.mxu1 %v1453_v19 }
  0xa9   :  { %1120 = vmatmul.mubr.bf16.gmra.mrb[40].mxu0 %v1450_v24 }
  0xaa   :  { %1208 = vmatmul.mubr.bf16.gmra.mrb[40].mxu1 %v1452_v25  ;;  %1127 = vmatprep.mubr.bf16.mxu0 %v1459_v26 }
  0xab   :  { %1215 = vmatprep.mubr.bf16.mxu1 %v1461_v27 }
  0xb1   :  { %1128 = vmatmul.mubr.bf16.gmra.mrb[44].mxu0 %v1458_v32 }
  0xb2   :  { %1216 = vmatmul.mubr.bf16.gmra.mrb[44].mxu1 %v1460_v33  ;;  %1135 = vmatprep.mubr.bf16.mxu0 %v1467_v34 }
  0xb3   :  { %1223 = vmatprep.mubr.bf16.mxu1 %v1469_v35 }
  0xb9   :  { %1136 = vmatmul.mubr.bf16.gmra.mrb[48].mxu0 %v1466_v38 }
  0xba   :  { %1224 = vmatmul.mubr.bf16.gmra.mrb[48].mxu1 %v1468_v39  ;;  %1143 = vmatprep.mubr.bf16.mxu0 %v1475_v40 }
  0xbb   :  { %1231 = vmatprep.mubr.bf16.mxu1 %v1477_v41 }
  0xc1   :  { %1144 = vmatmul.mubr.bf16.gmra.mrb[52].mxu0 %v1474_v42 }
  0xc2   :  { %1232 = vmatmul.mubr.bf16.gmra.mrb[52].mxu1 %v1476_v43 }
 0x12c   :  { %v1560_v44 = vpop.f32.mrb[0].mxu0 }
 0x12d   :  { %v1618_v45 = vpop.f32.mrb[0].mxu1  ;;  %v1561_v46 = vpop.f32.mrb[1].mxu0 }
 0x12e   :  { %v1562_v47 = vadd.f32 %v1561_v46, %v1560_v44  ;;  %v1619_v48 = vpop.f32.mrb[1].mxu1  ;;  %v1563_v49 = vpop.f32.mrb[2].mxu0 }
 0x12f   :  { %v1620_v50 = vadd.f32 %v1619_v48, %v1618_v45  ;;  %v1621_v51 = vpop.f32.mrb[2].mxu1  ;;  %v1564_v52 = vpop.f32.mrb[3].mxu0 }
 0x130   :  { %v1565_v53 = vadd.f32 %v1564_v52, %v1563_v49  ;;  %v1622_v54 = vpop.f32.mrb[3].mxu1 }
 0x131   :  { %v2154_v55 = vadd.f32 %v1620_v50, %v1562_v47  ;;  %v1623_v56 = vadd.f32 %v1622_v54, %v1621_v51 }
 0x133   :  { %v2156_v57 = vadd.f32 %v1623_v56, %v1565_v53 }
 0x134   :  { %v1566_v58 = vpop.f32.mrb[4].mxu0 }
 0x135   :  { %v1624_v59 = vpop.f32.mrb[4].mxu1  ;;  %v1567_v60 = vpop.f32.mrb[5].mxu0 }
 0x136   :  { %v1568_v61 = vadd.f32 %v1567_v60, %v1566_v58  ;;  %v1625_v62 = vpop.f32.mrb[5].mxu1  ;;  %v1569_v63 = vpop.f32.mrb[6].mxu0 }
 0x137   :  { %v1626_v0 = vadd.f32 %v1625_v62, %v1624_v59  ;;  %v1627_v1 = vpop.f32.mrb[6].mxu1  ;;  %v1570_v2 = vpop.f32.mrb[7].mxu0 }
 0x138   :  { %v1571_v3 = vadd.f32 %v1570_v2, %v1569_v63  ;;  %v1628_v4 = vpop.f32.mrb[7].mxu1 }
 0x139   :  { %v2158_v5 = vadd.f32 %v1626_v0, %v1568_v61  ;;  %v1629_v6 = vadd.f32 %v1628_v4, %v1627_v1 }
 0x13b   :  { %v2160_v7 = vadd.f32 %v1629_v6, %v1571_v3 }
 0x13c   :  { %v1572_v8 = vpop.f32.mrb[8].mxu0 }
 0x13d   :  { %v1630_v9 = vpop.f32.mrb[8].mxu1  ;;  %v1573_v10 = vpop.f32.mrb[9].mxu0 }
 0x13e   :  { %v1574_v11 = vadd.f32 %v1573_v10, %v1572_v8  ;;  %v1631_v12 = vpop.f32.mrb[9].mxu1  ;;  %v1575_v13 = vpop.f32.mrb[10].mxu0 }
 0x13f   :  { %v1632_v14 = vadd.f32 %v1631_v12, %v1630_v9  ;;  %v1633_v15 = vpop.f32.mrb[10].mxu1  ;;  %v1576_v16 = vpop.f32.mrb[11].mxu0 }
 0x140   :  { %v1577_v17 = vadd.f32 %v1576_v16, %v1575_v13  ;;  %v1634_v18 = vpop.f32.mrb[11].mxu1 }
 0x141   :  { %v2162_v19 = vadd.f32 %v1632_v14, %v1574_v11  ;;  %v1635_v20 = vadd.f32 %v1634_v18, %v1633_v15 }
 0x143   :  { %v2164_v21 = vadd.f32 %v1635_v20, %v1577_v17 }
 0x144   :  { %v1578_v22 = vpop.f32.mrb[12].mxu0 }
 0x145   :  { %v1636_v23 = vpop.f32.mrb[12].mxu1  ;;  %v1579_v24 = vpop.f32.mrb[13].mxu0 }
 0x146   :  { %v1580_v25 = vadd.f32 %v1579_v24, %v1578_v22  ;;  %v1637_v26 = vpop.f32.mrb[13].mxu1  ;;  %v1581_v27 = vpop.f32.mrb[14].mxu0 }
 0x147   :  { %v1638_v28 = vadd.f32 %v1637_v26, %v1636_v23  ;;  %v1639_v29 = vpop.f32.mrb[14].mxu1  ;;  %v1582_v30 = vpop.f32.mrb[15].mxu0 }
 0x148   :  { %v1583_v31 = vadd.f32 %v1582_v30, %v1581_v27  ;;  %v1640_v32 = vpop.f32.mrb[15].mxu1 }
 0x149   :  { %v2166_v33 = vadd.f32 %v1638_v28, %v1580_v25  ;;  %v1641_v34 = vadd.f32 %v1640_v32, %v1639_v29 }
 0x14b   :  { %v2168_v35 = vadd.f32 %v1641_v34, %v1583_v31 }
 0x14c   :  { %v1584_v36 = vpop.f32.mrb[16].mxu0 }
 0x14d   :  { %v1642_v37 = vpop.f32.mrb[16].mxu1  ;;  %v1585_v38 = vpop.f32.mrb[17].mxu0 }
 0x14e   :  { %v1586_v39 = vadd.f32 %v1585_v38, %v1584_v36  ;;  %v1643_v40 = vpop.f32.mrb[17].mxu1  ;;  %v1587_v41 = vpop.f32.mrb[18].mxu0 }
 0x14f   :  { %v1644_v42 = vadd.f32 %v1643_v40, %v1642_v37  ;;  %v1645_v43 = vpop.f32.mrb[18].mxu1  ;;  %v1588_v44 = vpop.f32.mrb[19].mxu0 }
 0x150   :  { %v1589_v45 = vadd.f32 %v1588_v44, %v1587_v41  ;;  %v1646_v46 = vpop.f32.mrb[19].mxu1 }
 0x151   :  { %v2170_v47 = vadd.f32 %v1644_v42, %v1586_v39  ;;  %v1647_v48 = vadd.f32 %v1646_v46, %v1645_v43 }
 0x153   :  { %v2172_v49 = vadd.f32 %v1647_v48, %v1589_v45 }
 0x154   :  { %v1590_v50 = vpop.f32.mrb[20].mxu0 }
 0x155   :  { %v1648_v51 = vpop.f32.mrb[20].mxu1  ;;  %v1591_v52 = vpop.f32.mrb[21].mxu0 }
 0x156   :  { %v1592_v53 = vadd.f32 %v1591_v52, %v1590_v50  ;;  %v1649_v54 = vpop.f32.mrb[21].mxu1  ;;  %v1593_v56 = vpop.f32.mrb[22].mxu0 }
 0x157   :  { %v1650_v58 = vadd.f32 %v1649_v54, %v1648_v51  ;;  %v1651_v59 = vpop.f32.mrb[22].mxu1  ;;  %v1594_v60 = vpop.f32.mrb[23].mxu0 }
 0x158   :  { %v1595_v61 = vadd.f32 %v1594_v60, %v1593_v56  ;;  %v1652_v62 = vpop.f32.mrb[23].mxu1 }
 0x159   :  { %v2174_v63 = vadd.f32 %v1650_v58, %v1592_v53  ;;  %v1653_v0 = vadd.f32 %v1652_v62, %v1651_v59 }
 0x15b   :  { %v2176_v1 = vadd.f32 %v1653_v0, %v1595_v61 }
 0x15c   :  { %v1596_v2 = vpop.f32.mrb[24].mxu0 }
 0x15d   :  { %v1654_v3 = vpop.f32.mrb[24].mxu1  ;;  %v1597_v4 = vpop.f32.mrb[25].mxu0 }
 0x15e   :  { %v1598_v6 = vadd.f32 %v1597_v4, %v1596_v2  ;;  %v1655_v8 = vpop.f32.mrb[25].mxu1  ;;  %v1599_v9 = vpop.f32.mrb[26].mxu0 }
 0x15f   :  { %v1656_v10 = vadd.f32 %v1655_v8, %v1654_v3  ;;  %v1657_v11 = vpop.f32.mrb[26].mxu1  ;;  %v1600_v12 = vpop.f32.mrb[27].mxu0 }
 0x160   :  { %v1658_v13 = vpop.f32.mrb[27].mxu1 }
 0x161   :  { %v2178_v14 = vadd.f32 %v1656_v10, %v1598_v6 }
 0x164   :  { %v1676_v15 = vpop.f32.mrb[28].mxu0 }
 0x165   :  { %v1734_v16 = vpop.f32.mrb[28].mxu1  ;;  %v1677_v17 = vpop.f32.mrb[29].mxu0 }
 0x166   :  { %v1678_v18 = vadd.f32 %v1677_v17, %v1676_v15  ;;  %v1735_v20 = vpop.f32.mrb[29].mxu1  ;;  %v1679_v22 = vpop.f32.mrb[30].mxu0 }
 0x167   :  { %v1736_v23 = vadd.f32 %v1735_v20, %v1734_v16  ;;  %v1737_v24 = vpop.f32.mrb[30].mxu1  ;;  %v1680_v25 = vpop.f32.mrb[31].mxu0 }
 0x168   :  { %v1098_v26 = vadd.f32 %v1678_v18, %v2154_v55  ;;  %v1681_v27 = vadd.f32 %v1680_v25, %v1679_v22  ;;  %v1738_v28 = vpop.f32.mrb[31].mxu1 }
 0x169   :  { %v1739_v29 = vadd.f32 %v1738_v28, %v1737_v24 }
 0x16a   :  { %v2181_v30 = vadd.f32 %v1736_v23, %v1098_v26  ;;  %v1101_v31 = vadd.f32 %v1681_v27, %v2156_v57 }
 0x16c   :  { %v2184_v32 = vadd.f32 %v1739_v29, %v1101_v31  ;;  %v1682_v34 = vpop.f32.mrb[32].mxu0  ;;  %v1261_v38 = vmul.f32 %v2181_v30, %v2181_v30 }
 0x16d   :  { %v1740_v36 = vpop.f32.mrb[32].mxu1  ;;  %v1683_v37 = vpop.f32.mrb[33].mxu0 }
 0x16e   :  { %v1239_v39 = vadd.f32 %v2184_v32, %v2181_v30  ;;  %v1262_v55 = vmul.f32 %v2184_v32, %v2184_v32  ;;  %v1684_v40 = vadd.f32 %v1683_v37, %v1682_v34  ;;  %v1741_v41 = vpop.f32.mrb[33].mxu1  ;;  %v1685_v42 = vpop.f32.mrb[34].mxu0 }
 0x16f   :  { %v1742_v43 = vadd.f32 %v1741_v41, %v1740_v36  ;;  %v1743_v44 = vpop.f32.mrb[34].mxu1  ;;  %v1686_v57 = vpop.f32.mrb[35].mxu0 }
 0x170   :  { %v1274_v45 = vadd.f32 %v1262_v55, %v1261_v38  ;;  %v1106_v46 = vadd.f32 %v1684_v40, %v2158_v5  ;;  %v1687_v48 = vadd.f32 %v1686_v57, %v1685_v42  ;;  %v1744_v50 = vpop.f32.mrb[35].mxu1 }
 0x171   :  { %v1745_v51 = vadd.f32 %v1744_v50, %v1743_v44 }
 0x172   :  { %v2193_v52 = vadd.f32 %v1742_v43, %v1106_v46  ;;  %v1109_v53 = vadd.f32 %v1687_v48, %v2160_v7 }
 0x174   :  { %v1240_v54 = vadd.f32 %v1239_v39, %v2193_v52  ;;  %v1263_v56 = vmul.f32 %v2193_v52, %v2193_v52  ;;  %v2199_v58 = vadd.f32 %v1745_v51, %v1109_v53  ;;  %v1688_v59 = vpop.f32.mrb[36].mxu0 }
 0x175   :  { %v1746_v60 = vpop.f32.mrb[36].mxu1  ;;  %v1689_v61 = vpop.f32.mrb[37].mxu0 }
 0x176   :  { %v1275_v62 = vadd.f32 %v1274_v45, %v1263_v56  ;;  %v1241_v5 = vadd.f32 %v1240_v54, %v2199_v58  ;;  %v1264_v0 = vmul.f32 %v2199_v58, %v2199_v58  ;;  %v1690_v2 = vadd.f32 %v1689_v61, %v1688_v59  ;;  %v1747_v3 = vpop.f32.mrb[37].mxu1  ;;  %v1691_v4 = vpop.f32.mrb[38].mxu0 }
 0x177   :  { %v1748_v7 = vadd.f32 %v1747_v3, %v1746_v60  ;;  %v1749_v6 = vpop.f32.mrb[38].mxu1  ;;  %v1692_v8 = vpop.f32.mrb[39].mxu0 }
 0x178   :  { %v1276_v9 = vadd.f32 %v1275_v62, %v1264_v0  ;;  %v1114_v10 = vadd.f32 %v1690_v2, %v2162_v19  ;;  %v1693_v11 = vadd.f32 %v1692_v8, %v1691_v4  ;;  %v1750_v12 = vpop.f32.mrb[39].mxu1 }
 0x179   :  { %v1751_v13 = vadd.f32 %v1750_v12, %v1749_v6 }
 0x17a   :  { %v2205_v15 = vadd.f32 %v1748_v7, %v1114_v10  ;;  %v1117_v16 = vadd.f32 %v1693_v11, %v2164_v21 }
 0x17c   :  { %v1242_v17 = vadd.f32 %v1241_v5, %v2205_v15  ;;  %v1265_v18 = vmul.f32 %v2205_v15, %v2205_v15  ;;  %v2211_v20 = vadd.f32 %v1751_v13, %v1117_v16  ;;  %v1694_v22 = vpop.f32.mrb[40].mxu0 }
 0x17d   :  { %v1752_v23 = vpop.f32.mrb[40].mxu1  ;;  %v1695_v24 = vpop.f32.mrb[41].mxu0 }
 0x17e   :  { %v1277_v25 = vadd.f32 %v1276_v9, %v1265_v18  ;;  %v1243_v19 = vadd.f32 %v1242_v17, %v2211_v20  ;;  %v1266_v26 = vmul.f32 %v2211_v20, %v2211_v20  ;;  %v1696_v27 = vadd.f32 %v1695_v24, %v1694_v22  ;;  %v1753_v28 = vpop.f32.mrb[41].mxu1  ;;  %v1697_v29 = vpop.f32.mrb[42].mxu0 }
 0x17f   :  { %v1754_v21 = vadd.f32 %v1753_v28, %v1752_v23  ;;  %v1755_v31 = vpop.f32.mrb[42].mxu1  ;;  %v1698_v34 = vpop.f32.mrb[43].mxu0 }
 0x180   :  { %v1278_v36 = vadd.f32 %v1277_v25, %v1266_v26  ;;  %v1122_v37 = vadd.f32 %v1696_v27, %v2166_v33  ;;  %v1699_v38 = vadd.f32 %v1698_v34, %v1697_v29  ;;  %v1756_v39 = vpop.f32.mrb[43].mxu1 }
 0x181   :  { %v1757_v55 = vadd.f32 %v1756_v39, %v1755_v31 }
 0x182   :  { %v2217_v40 = vadd.f32 %v1754_v21, %v1122_v37  ;;  %v1125_v41 = vadd.f32 %v1699_v38, %v2168_v35 }
 0x184   :  { %v1244_v42 = vadd.f32 %v1243_v19, %v2217_v40  ;;  %v1267_v43 = vmul.f32 %v2217_v40, %v2217_v40  ;;  %v2223_v44 = vadd.f32 %v1757_v55, %v1125_v41  ;;  %v1700_v57 = vpop.f32.mrb[44].mxu0 }
 0x185   :  { %v1758_v45 = vpop.f32.mrb[44].mxu1  ;;  %v1701_v46 = vpop.f32.mrb[45].mxu0 }
 0x186   :  { %v1279_v48 = vadd.f32 %v1278_v36, %v1267_v43  ;;  %v1245_v33 = vadd.f32 %v1244_v42, %v2223_v44  ;;  %v1268_v50 = vmul.f32 %v2223_v44, %v2223_v44  ;;  %v1702_v51 = vadd.f32 %v1701_v46, %v1700_v57  ;;  %v1759_v53 = vpop.f32.mrb[45].mxu1  ;;  %v1703_v54 = vpop.f32.mrb[46].mxu0 }
 0x187   :  { %v1760_v35 = vadd.f32 %v1759_v53, %v1758_v45  ;;  %v1761_v56 = vpop.f32.mrb[46].mxu1  ;;  %v1704_v59 = vpop.f32.mrb[47].mxu0 }
 0x188   :  { %v1280_v60 = vadd.f32 %v1279_v48, %v1268_v50  ;;  %v1130_v61 = vadd.f32 %v1702_v51, %v2170_v47  ;;  %v1705_v62 = vadd.f32 %v1704_v59, %v1703_v54  ;;  %v1762_v5 = vpop.f32.mrb[47].mxu1 }
 0x189   :  { %v1763_v0 = vadd.f32 %v1762_v5, %v1761_v56 }
 0x18a   :  { %v2229_v2 = vadd.f32 %v1760_v35, %v1130_v61  ;;  %v1133_v3 = vadd.f32 %v1705_v62, %v2172_v49 }
 0x18c   :  { %v1246_v4 = vadd.f32 %v1245_v33, %v2229_v2  ;;  %v1269_v7 = vmul.f32 %v2229_v2, %v2229_v2  ;;  %v2235_v6 = vadd.f32 %v1763_v0, %v1133_v3  ;;  %v1706_v8 = vpop.f32.mrb[48].mxu0 }
 0x18d   :  { %v1764_v9 = vpop.f32.mrb[48].mxu1  ;;  %v1707_v10 = vpop.f32.mrb[49].mxu0 }
 0x18e   :  { %v1281_v11 = vadd.f32 %v1280_v60, %v1269_v7  ;;  %v1247_v47 = vadd.f32 %v1246_v4, %v2235_v6  ;;  %v1270_v12 = vmul.f32 %v2235_v6, %v2235_v6  ;;  %v1708_v13 = vadd.f32 %v1707_v10, %v1706_v8  ;;  %v1765_v16 = vpop.f32.mrb[49].mxu1  ;;  %v1709_v17 = vpop.f32.mrb[50].mxu0 }
 0x18f   :  { %v1766_v49 = vadd.f32 %v1765_v16, %v1764_v9  ;;  %v1767_v18 = vpop.f32.mrb[50].mxu1  ;;  %v1710_v22 = vpop.f32.mrb[51].mxu0 }
 0x190   :  { %v1282_v23 = vadd.f32 %v1281_v11, %v1270_v12  ;;  %v1138_v24 = vadd.f32 %v1708_v13, %v2174_v63  ;;  %v1711_v25 = vadd.f32 %v1710_v22, %v1709_v17  ;;  %v1768_v19 = vpop.f32.mrb[51].mxu1 }
 0x191   :  { %v1769_v26 = vadd.f32 %v1768_v19, %v1767_v18 }
 0x192   :  { %v2241_v27 = vadd.f32 %v1766_v49, %v1138_v24  ;;  %v1141_v28 = vadd.f32 %v1711_v25, %v2176_v1 }
 0x194   :  { %v1248_v29 = vadd.f32 %v1247_v47, %v2241_v27  ;;  %v1271_v21 = vmul.f32 %v2241_v27, %v2241_v27  ;;  %v2247_v31 = vadd.f32 %v1769_v26, %v1141_v28  ;;  %v1712_v34 = vpop.f32.mrb[52].mxu0 }
 0x195   :  { %v1770_v36 = vpop.f32.mrb[52].mxu1  ;;  %v1713_v37 = vpop.f32.mrb[53].mxu0 }
 0x196   :  { %v1283_v38 = vadd.f32 %v1282_v23, %v1271_v21  ;;  %v1249_v63 = vadd.f32 %v1248_v29, %v2247_v31  ;;  %v1272_v39 = vmul.f32 %v2247_v31, %v2247_v31  ;;  %v1714_v55 = vadd.f32 %v1713_v37, %v1712_v34  ;;  %v1771_v41 = vpop.f32.mrb[53].mxu1  ;;  %v1715_v42 = vpop.f32.mrb[54].mxu0  ;;  %v1542_v29 = vld [vmem:[#allocation4] ss:$0 sm:$0xff] }
 0x197   :  { %v1772_v1 = vadd.f32 %v1771_v41, %v1770_v36  ;;  %v1773_v43 = vpop.f32.mrb[54].mxu1  ;;  %v1716_v57 = vpop.f32.mrb[55].mxu0 }
 0x198   :  { %v1284_v45 = vadd.f32 %v1283_v38, %v1272_v39  ;;  %v1146_v46 = vadd.f32 %v1714_v55, %v2178_v14  ;;  %v1774_v48 = vpop.f32.mrb[55].mxu1  ;;  %v1543_v39 = vld [vmem:[#allocation6] ss:$0 sm:$0xff] }
 0x19a   :  { %v1234_v33 = vadd.f32 %v1772_v1, %v1146_v46 }
 0x19c   :  { %v1251_v50 = vsel %vm1250_vm0, %v1234_v33, 0.0  ;;  %v1273_v51 = vmul.f32 %v1234_v33, %v1234_v33 }
 0x19d   :  { %v1252_v53 = vadd.f32 %v1251_v50, %v1249_v63 }
 0x19e   :  { %v1285_v54 = vsel %vm1250_vm0, %v1273_v51, 0.0 }
 0x19f   :  { %v1253_v35 = vrot.slane %v1252_v53, 4  ;;  %v1286_v56 = vadd.f32 %v1285_v54, %v1284_v45 }
 0x1a1   :  { %v1254_v59 = vadd.f32 %v1253_v35, %v1252_v53  ;;  %v1287_v60 = vrot.slane %v1286_v56, 4 }
 0x1a3   :  { %v1255_v61 = vrot.slane %v1254_v59, 2  ;;  %v1288_v62 = vadd.f32 %v1287_v60, %v1286_v56 }
 0x1a5   :  { %v1256_v5 = vadd.f32 %v1255_v61, %v1254_v59  ;;  %v1289_v0 = vrot.slane %v1288_v62, 2 }
 0x1a7   :  { %v1257_v3 = vrot.slane %v1256_v5, 1  ;;  %v1290_v4 = vadd.f32 %v1289_v0, %v1288_v62 }
 0x1a9   :  { %v1258_v7 = vadd.f32 %v1257_v3, %v1256_v5  ;;  %v1291_v8 = vrot.slane %v1290_v4, 1 }
 0x1ab   :  { %v1260_v14 = vmul.f32 0.010204081, %v1258_v7  ;;  %v1292_v9 = vadd.f32 %v1291_v8, %v1290_v4 }
 0x1ad   :  { %v1293_v10 = vmul.f32 0.010204081, %v1292_v9  ;;  %v1294_v11 = vmul.f32 %v1260_v14, %v1260_v14  ;;  %v1296_v47 = vsub.f32 %v2181_v30, %v1260_v14  ;;  %v1297_v12 = vsub.f32 %v2184_v32, %v1260_v14 }
 0x1ae   :  { %v1298_v13 = vsub.f32 %v2193_v52, %v1260_v14  ;;  %v1299_v16 = vsub.f32 %v2199_v58, %v1260_v14  ;;  %v1300_v17 = vsub.f32 %v2205_v15, %v1260_v14  ;;  %v1301_v49 = vsub.f32 %v2211_v20, %v1260_v14 }
 0x1af   :  { %v1295_v18 = vsub.f32 %v1293_v10, %v1294_v11  ;;  %v1302_v22 = vsub.f32 %v2217_v40, %v1260_v14  ;;  %v1303_v23 = vsub.f32 %v2223_v44, %v1260_v14  ;;  %v1304_v24 = vsub.f32 %v2229_v2, %v1260_v14 }
 0x1b0   :  { %v1305_v25 = vsub.f32 %v2235_v6, %v1260_v14  ;;  %v1306_v30 = vsub.f32 %v2241_v27, %v1260_v14  ;;  %v1307_v32 = vsub.f32 %v2247_v31, %v1260_v14  ;;  %v1308_v52 = vsub.f32 %v1234_v33, %v1260_v14 }
 0x1b1   :  { %v1309_v19 = vadd.f32 1e-05, %v1295_v18 }
 0x1b3   :  { %1853 = vrsqrt.f32 %v1309_v19 }
 0x1bd   :  { %v1854_v58 = vpop.eup %1853 }
 0x1be   :  { %v1311_v15 = vmul.f32 %v1854_v58, %v1296_v47  ;;  %v1312_v26 = vmul.f32 %v1854_v58, %v1297_v12  ;;  %v1313_v20 = vmul.f32 %v1854_v58, %v1298_v13  ;;  %v1314_v28 = vmul.f32 %v1854_v58, %v1299_v16 }
 0x1bf   :  { %v1315_v40 = vmul.f32 %v1854_v58, %v1300_v17  ;;  %v1316_v21 = vmul.f32 %v1854_v58, %v1301_v49  ;;  %v1317_v44 = vmul.f32 %v1854_v58, %v1302_v22  ;;  %v1318_v34 = vmul.f32 %v1854_v58, %v1303_v23 }
 0x1c0   :  { %v1319_v2 = vmul.f32 %v1854_v58, %v1304_v24  ;;  %v1320_v36 = vmul.f32 %v1854_v58, %v1305_v25  ;;  %v1321_v6 = vmul.f32 %v1854_v58, %v1306_v30  ;;  %v1322_v37 = vmul.f32 %v1854_v58, %v1307_v32 }
 0x1c1   :  { %v1323_v27 = vmul.f32 %v1854_v58, %v1308_v52  ;;  %v1331_v38 = vmul.f32 %v1542_v29, %v1311_v15  ;;  %v1332_v31 = vmul.f32 %v1542_v29, %v1312_v26  ;;  %v1333_v63 = vmul.f32 %v1542_v29, %v1313_v20 }
 0x1c2   :  { %v1334_v55 = vmul.f32 %v1542_v29, %v1314_v28  ;;  %v1335_v41 = vmul.f32 %v1542_v29, %v1315_v40  ;;  %v1336_v42 = vmul.f32 %v1542_v29, %v1316_v21  ;;  %v1337_v1 = vmul.f32 %v1542_v29, %v1317_v44 }
 0x1c3   :  { %v1338_v43 = vmul.f32 %v1542_v29, %v1318_v34  ;;  %v1339_v57 = vmul.f32 %v1542_v29, %v1319_v2  ;;  %v1340_v45 = vmul.f32 %v1542_v29, %v1320_v36  ;;  %v1341_v46 = vmul.f32 %v1542_v29, %v1321_v6 }
 0x1c4   :  { %v1342_v48 = vmul.f32 %v1542_v29, %v1322_v37  ;;  %v1343_v33 = vmul.f32 %v1542_v29, %v1323_v27  ;;  %v1351_v50 = vadd.f32 %v1543_v39, %v1331_v38  ;;  %v1352_v51 = vadd.f32 %v1543_v39, %v1332_v31 }
 0x1c5   :  { %v1353_v53 = vadd.f32 %v1543_v39, %v1333_v63  ;;  %v1354_v54 = vadd.f32 %v1543_v39, %v1334_v55  ;;  %v1355_v35 = vadd.f32 %v1543_v39, %v1335_v41  ;;  %v1356_v56 = vadd.f32 %v1543_v39, %v1336_v42 }
 0x1c6   :  { %v1357_v59 = vadd.f32 %v1543_v39, %v1337_v1  ;;  %v1358_v60 = vadd.f32 %v1543_v39, %v1338_v43  ;;  %v1359_v61 = vadd.f32 %v1543_v39, %v1339_v57  ;;  %v1360_v62 = vadd.f32 %v1543_v39, %v1340_v45 }
 0x1c7   :  { %v1361_v5 = vadd.f32 %v1543_v39, %v1341_v46  ;;  %v1362_v0 = vadd.f32 %v1543_v39, %v1342_v48  ;;  %v1363_v3 = vadd.f32 %v1543_v39, %v1343_v33  ;;  %vm1364_vm1 = vcmp.ge.f32.partialorder %v1351_v50, 0.0 }
 0x1c8   :  { %vm1365_vm2 = vcmp.ge.f32.partialorder %v1352_v51, 0.0  ;;  %vm1366_vm3 = vcmp.ge.f32.partialorder %v1353_v53, 0.0  ;;  %vm1367_vm4 = vcmp.ge.f32.partialorder %v1354_v54, 0.0  ;;  %vm1368_vm5 = vcmp.ge.f32.partialorder %v1355_v35, 0.0 }
 0x1c9   :  { %vm1369_vm6 = vcmp.ge.f32.partialorder %v1356_v56, 0.0  ;;  %vm1370_vm7 = vcmp.ge.f32.partialorder %v1357_v59, 0.0  ;;  %vm1371_vm8 = vcmp.ge.f32.partialorder %v1358_v60, 0.0  ;;  %vm1372_vm9 = vcmp.ge.f32.partialorder %v1359_v61, 0.0 }
 0x1ca   :  { %vm1373_vm10 = vcmp.ge.f32.partialorder %v1360_v62, 0.0  ;;  %vm1374_vm11 = vcmp.ge.f32.partialorder %v1361_v5, 0.0  ;;  %vm1375_vm12 = vcmp.ge.f32.partialorder %v1362_v0, 0.0  ;;  %vm1376_vm13 = vcmp.ge.f32.partialorder %v1363_v3, 0.0 }
 0x1cb   :  { %v1377_v4 = vmul.f32 0.1, %v1351_v50  ;;  %v1378_v7 = vmul.f32 0.1, %v1352_v51  ;;  %v1379_v8 = vmul.f32 0.1, %v1353_v53 }
 0x1cc   :  { %v1380_v14 = vmul.f32 0.1, %v1354_v54  ;;  %v1381_v9 = vmul.f32 0.1, %v1355_v35  ;;  %v1382_v10 = vmul.f32 0.1, %v1356_v56 }
 0x1cd   :  { %v1383_v11 = vmul.f32 0.1, %v1357_v59  ;;  %v1384_v47 = vmul.f32 0.1, %v1358_v60  ;;  %v1385_v12 = vmul.f32 0.1, %v1359_v61  ;;  %v1390_v13 = vsel %vm1364_vm1, %v1351_v50, %v1377_v4 }
 0x1ce   :  { %v1386_v16 = vmul.f32 0.1, %v1360_v62  ;;  %v1387_v17 = vmul.f32 0.1, %v1361_v5  ;;  %v1388_v49 = vmul.f32 0.1, %v1362_v0  ;;  %v1391_v18 = vsel %vm1365_vm2, %v1352_v51, %v1378_v7  ;;  %1403 = vst [vmem:[%s2321_s4] sm:$0xff] %v1390_v13 }
 0x1cf   :  { %v1389_v22 = vmul.f32 0.1, %v1363_v3  ;;  %v1392_v23 = vsel %vm1366_vm3, %v1353_v53, %v1379_v8  ;;  %v1393_v24 = vsel %vm1367_vm4, %v1354_v54, %v1380_v14  ;;  %v1394_v25 = vsel %vm1368_vm5, %v1355_v35, %v1381_v9  ;;  %1404 = vst [vmem:[%s2321_s4 + $0x8] sm:$0xff] %v1391_v18 }
 0x1d0   :  { %v1395_v30 = vsel %vm1369_vm6, %v1356_v56, %v1382_v10  ;;  %v1396_v32 = vsel %vm1370_vm7, %v1357_v59, %v1383_v11  ;;  %v1397_v52 = vsel %vm1371_vm8, %v1358_v60, %v1384_v47  ;;  %v1398_v19 = vsel %vm1372_vm9, %v1359_v61, %v1385_v12  ;;  %1405 = vst [vmem:[%s2321_s4 + $0x10] sm:$0xff] %v1392_v23 }
 0x1d1   :  { %1406 = vst [vmem:[%s2321_s4 + $0x18] sm:$0xff] %v1393_v24  ;;  %1407 = vst [vmem:[%s2321_s4 + $0x20] sm:$0xff] %v1394_v25  ;;  %v1399_v58 = vsel %vm1373_vm10, %v1360_v62, %v1386_v16  ;;  %v1400_v15 = vsel %vm1374_vm11, %v1361_v5, %v1387_v17  ;;  %v1401_v26 = vsel %vm1375_vm12, %v1362_v0, %v1388_v49 }
 0x1d2   :  { %v1402_v20 = vsel %vm1376_vm13, %v1363_v3, %v1389_v22  ;;  %1408 = vst [vmem:[%s2321_s4 + $0x28] sm:$0xff] %v1395_v30  ;;  %1409 = vst [vmem:[%s2321_s4 + $0x30] sm:$0xff] %v1396_v32 }
 0x1d3   :  { %1410 = vst [vmem:[%s2321_s4 + $0x38] sm:$0xff] %v1397_v52  ;;  %1411 = vst [vmem:[%s2321_s4 + $0x40] sm:$0xff] %v1398_v19 }
 0x1d4   :  { %1412 = vst [vmem:[%s2321_s4 + $0x48] sm:$0xff] %v1399_v58  ;;  %1413 = vst [vmem:[%s2321_s4 + $0x50] sm:$0xff] %v1400_v15 }
 0x1d5   :  { %1414 = vst [vmem:[%s2321_s4 + $0x58] sm:$0xff] %v1401_v26  ;;  %1415 = vst [vmem:[%s2321_s4 + $0x60] sm:$0x3] %v1402_v20 }
 0x1d6   :  { %1420 = vsyncpa [#allocation3], 1 }
 0x1d7   :  { %1421 = vsyncpa [#allocation5], 1 }

// kernel: encoder_forward.7
= control target key start
LH: loop header
LB: loop body
LE: loop exit
PB: predicated region body
PF: predicated region fallthrough
CT: control target
= control target key end

     0   :  { %v146_v36 = vlaneseq  ;;  %v1406_v37 = vmov 1966171168   ;;  %s1845_s0 = inlined_call_operand.vmem [shape: bf16[2,1024], index: 0, kind: input, shape index: {}]   ;;  %s1846_s1 = inlined_call_operand.vmem [shape: bf16[1024,256], index: 1, kind: input, shape index: {}]   ;;  %s1847_s2 = inlined_call_operand.vmem [shape: f32[1,256], index: 2, kind: input, shape index: {}]   ;;  %s1848_s3 = inlined_call_operand.hbm [shape: f32[2,256], index: 3, kind: output, shape index: {}]  }
   0x1   :  { %v1189_v0 = vld [vmem:[%s1846_s1 + $0x4] ss:$8 sps:$4 sm:$0xff]   ;;  %v1193_v2 = vld [vmem:[%s1846_s1] ss:$8 sps:$4 sm:$0xff]   ;;  %v1195_v4 = vld [vmem:[%s1846_s1 + $0x14] ss:$8 sps:$4 sm:$0xff]   ;;  %v159_v38 = vunpack.c.l.s4 %v1406_v37 }
   0x2   :  { %v1191_v1 = vld [vmem:[%s1846_s1 + $0x204] ss:$8 sps:$4 sm:$0xff]   ;;  %854 = vmatprep.subr.bf16.mxu1 %v1189_v0  ;;  %v1194_v3 = vld [vmem:[%s1846_s1 + $0x200] ss:$8 sps:$4 sm:$0xff]   ;;  %v1197_v5 = vld [vmem:[%s1846_s1 + $0x214] ss:$8 sps:$4 sm:$0xff]  }
   0x3   :  { %936 = vmatprep.subr.bf16.mxu0 %v1191_v1  ;;  %855 = vmatpush1.bf16.msra.mxu1 %v1193_v2  ;;  %v1199_v6 = vld [vmem:[%s1846_s1 + $0x10] ss:$8 sps:$4 sm:$0xff]   ;;  %v1201_v8 = vld [vmem:[%s1846_s1 + $0x24] ss:$8 sps:$4 sm:$0xff]   ;;  %v1205_v10 = vld [vmem:[%s1846_s1 + $0x20] ss:$8 sps:$4 sm:$0xff]   ;;  %v160_v43 = vunpack.c.0.s8 %v159_v38 }
   0x4   :  { %937 = vmatpush1.bf16.msra.mxu0 %v1194_v3  ;;  %856 = vmatprep.subr.bf16.mxu1 %v1195_v4  ;;  %v1200_v7 = vld [vmem:[%s1846_s1 + $0x210] ss:$8 sps:$4 sm:$0xff]   ;;  %v1203_v9 = vld [vmem:[%s1846_s1 + $0x224] ss:$8 sps:$4 sm:$0xff]   ;;  %v1206_v11 = vld [vmem:[%s1846_s1 + $0x220] ss:$8 sps:$4 sm:$0xff]  }
   0x5   :  { %938 = vmatprep.subr.bf16.mxu0 %v1197_v5  ;;  %v1207_v12 = vld [vmem:[%s1846_s1 + $0x34] ss:$8 sps:$4 sm:$0xff]   ;;  %v1211_v14 = vld [vmem:[%s1846_s1 + $0x30] ss:$8 sps:$4 sm:$0xff]   ;;  %v1213_v16 = vld [vmem:[%s1846_s1 + $0x44] ss:$8 sps:$4 sm:$0xff]  }
   0x6   :  { %v1209_v13 = vld [vmem:[%s1846_s1 + $0x234] ss:$8 sps:$4 sm:$0xff]   ;;  %v1212_v15 = vld [vmem:[%s1846_s1 + $0x230] ss:$8 sps:$4 sm:$0xff]   ;;  %v1215_v17 = vld [vmem:[%s1846_s1 + $0x244] ss:$8 sps:$4 sm:$0xff]  }
   0x7   :  { %857 = vmatpush1.bf16.msra.mxu1 %v1199_v6  ;;  %v1217_v18 = vld [vmem:[%s1846_s1 + $0x40] ss:$8 sps:$4 sm:$0xff]   ;;  %v1219_v20 = vld [vmem:[%s1846_s1 + $0x54] ss:$8 sps:$4 sm:$0xff]   ;;  %v1223_v22 = vld [vmem:[%s1846_s1 + $0x50] ss:$8 sps:$4 sm:$0xff]  }
   0x8   :  { %939 = vmatpush1.bf16.msra.mxu0 %v1200_v7  ;;  %858 = vmatprep.subr.bf16.mxu1 %v1201_v8  ;;  %v1218_v19 = vld [vmem:[%s1846_s1 + $0x240] ss:$8 sps:$4 sm:$0xff]   ;;  %v1221_v21 = vld [vmem:[%s1846_s1 + $0x254] ss:$8 sps:$4 sm:$0xff]   ;;  %v1224_v23 = vld [vmem:[%s1846_s1 + $0x250] ss:$8 sps:$4 sm:$0xff]  }
   0x9   :  { %940 = vmatprep.subr.bf16.mxu0 %v1203_v9  ;;  %v1225_v24 = vld [vmem:[%s1846_s1 + $0x64] ss:$8 sps:$4 sm:$0xff]   ;;  %v1229_v26 = vld [vmem:[%s1846_s1 + $0x60] ss:$8 sps:$4 sm:$0xff]   ;;  %v1231_v28 = vld [vmem:[%s1846_s1 + $0x74] ss:$8 sps:$4 sm:$0xff]  }
   0xa   :  { %v1227_v25 = vld [vmem:[%s1846_s1 + $0x264] ss:$8 sps:$4 sm:$0xff]   ;;  %v1230_v27 = vld [vmem:[%s1846_s1 + $0x260] ss:$8 sps:$4 sm:$0xff]   ;;  %v1233_v29 = vld [vmem:[%s1846_s1 + $0x274] ss:$8 sps:$4 sm:$0xff]  }
   0xb   :  { %859 = vmatpush1.bf16.msra.mxu1 %v1205_v10  ;;  %v1235_v30 = vld [vmem:[%s1846_s1 + $0x70] ss:$8 sps:$4 sm:$0xff]   ;;  %v1237_v32 = vld [vmem:[%s1846_s1 + $0x84] ss:$8 sps:$4 sm:$0xff]   ;;  %v1241_v34 = vld [vmem:[%s1846_s1 + $0x80] ss:$8 sps:$4 sm:$0xff]  }
   0xc   :  { %941 = vmatpush1.bf16.msra.mxu0 %v1206_v11  ;;  %860 = vmatprep.subr.bf16.mxu1 %v1207_v12  ;;  %v1236_v31 = vld [vmem:[%s1846_s1 + $0x270] ss:$8 sps:$4 sm:$0xff]   ;;  %v1239_v33 = vld [vmem:[%s1846_s1 + $0x284] ss:$8 sps:$4 sm:$0xff]   ;;  %v1242_v35 = vld [vmem:[%s1846_s1 + $0x280] ss:$8 sps:$4 sm:$0xff]  }
   0xd   :  { %942 = vmatprep.subr.bf16.mxu0 %v1209_v13  ;;  %v1243_v39 = vld [vmem:[%s1846_s1 + $0x94] ss:$8 sps:$4 sm:$0xff]   ;;  %v1247_v41 = vld [vmem:[%s1846_s1 + $0x90] ss:$8 sps:$4 sm:$0xff]   ;;  %v1545_v42 = vshrl.u32 %v146_v36, 7  ;;  %v15_v52 = vld [vmem:[%s1845_s0] sm:$0xff] }
   0xe   :  { %v1245_v40 = vld [vmem:[%s1846_s1 + $0x294] ss:$8 sps:$4 sm:$0xff]   ;;  %v1248_v44 = vld [vmem:[%s1846_s1 + $0x290] ss:$8 sps:$4 sm:$0xff]   ;;  %v1249_v45 = vld [vmem:[%s1846_s1 + $0xa4] ss:$8 sps:$4 sm:$0xff]   ;;  %v157_v55 = vcombine.high %v15_v52, %v15_v52 }
   0xf   :  { %861 = vmatpush1.bf16.msra.mxu1 %v1211_v14  ;;  %v1251_v46 = vld [vmem:[%s1846_s1 + $0x2a4] ss:$8 sps:$4 sm:$0xff]   ;;  %v1253_v47 = vld [vmem:[%s1846_s1 + $0xa0] ss:$8 sps:$4 sm:$0xff]   ;;  %v163_v49 = vsub.s32 %v160_v43, %v1545_v42  ;;  %v1255_v50 = vld [vmem:[%s1846_s1 + $0xb4] ss:$8 sps:$4 sm:$0xff]  }
  0x10   :  { %943 = vmatpush1.bf16.msra.mxu0 %v1212_v15  ;;  %862 = vmatprep.subr.bf16.mxu1 %v1213_v16  ;;  %v1254_v48 = vld [vmem:[%s1846_s1 + $0x2a0] ss:$8 sps:$4 sm:$0xff]   ;;  %v1257_v51 = vld [vmem:[%s1846_s1 + $0x2b4] ss:$8 sps:$4 sm:$0xff]   ;;  %v1259_v53 = vld [vmem:[%s1846_s1 + $0xb0] ss:$8 sps:$4 sm:$0xff]  }
  0x11   :  { %944 = vmatprep.subr.bf16.mxu0 %v1215_v17  ;;  %v164_v54 = vrot.slane %v15_v52, %v163_v49  ;;  %v1260_v56 = vld [vmem:[%s1846_s1 + $0x2b0] ss:$8 sps:$4 sm:$0xff]   ;;  %v1261_v57 = vld [vmem:[%s1846_s1 + $0xc4] ss:$8 sps:$4 sm:$0xff]   ;;  %v171_v60 = vrot.slane %v157_v55, %v163_v49  ;;  %v1265_v61 = vld [vmem:[%s1846_s1 + $0xc0] ss:$8 sps:$4 sm:$0xff]  }
  0x12   :  { %v1263_v58 = vld [vmem:[%s1846_s1 + $0x2c4] ss:$8 sps:$4 sm:$0xff]   ;;  %v1266_v0 = vld [vmem:[%s1846_s1 + $0x2c0] ss:$8 sps:$4 sm:$0xff]   ;;  %v1267_v1 = vld [vmem:[%s1846_s1 + $0xd4] ss:$8 sps:$4 sm:$0xff]  }
  0x13   :  { %863 = vmatpush1.bf16.msra.mxu1 %v1217_v18  ;;  %v172_v59 = vcombine.high %v164_v54, %v164_v54  ;;  %v173_v63 = vcombine.high %v171_v60, %v171_v60  ;;  %v1269_v2 = vld [vmem:[%s1846_s1 + $0x2d4] ss:$8 sps:$4 sm:$0xff]   ;;  %v1271_v4 = vld [vmem:[%s1846_s1 + $0xd0] ss:$8 sps:$4 sm:$0xff]   ;;  %v1273_v6 = vld [vmem:[%s1846_s1 + $0xe4] ss:$8 sps:$4 sm:$0xff]   ;;  %v1635_v17 = vrot.slane %v164_v54, %v163_v49  ;;  %v1637_v18 = vrot.slane %v171_v60, %v163_v49 }
  0x14   :  { %945 = vmatpush1.bf16.msra.mxu0 %v1218_v19  ;;  %864 = vmatprep.subr.bf16.mxu1 %v1219_v20  ;;  %v1272_v5 = vld [vmem:[%s1846_s1 + $0x2d0] ss:$8 sps:$4 sm:$0xff]   ;;  %v1275_v7 = vld [vmem:[%s1846_s1 + $0x2e4] ss:$8 sps:$4 sm:$0xff]   ;;  %v1277_v8 = vld [vmem:[%s1846_s1 + $0xe0] ss:$8 sps:$4 sm:$0xff]  }
  0x15   :  { %946 = vmatprep.subr.bf16.mxu0 %v1221_v21  ;;  %v194_v62 = vrot.slane %v172_v59, %v163_v49  ;;  %v201_v3 = vrot.slane %v173_v63, %v163_v49  ;;  %v1278_v9 = vld [vmem:[%s1846_s1 + $0x2e0] ss:$8 sps:$4 sm:$0xff]   ;;  %v1279_v10 = vld [vmem:[%s1846_s1 + $0xf4] ss:$8 sps:$4 sm:$0xff]   ;;  %v1283_v12 = vld [vmem:[%s1846_s1 + $0xf0] ss:$8 sps:$4 sm:$0xff]  }
  0x16   :  { %v1281_v11 = vld [vmem:[%s1846_s1 + $0x2f4] ss:$8 sps:$4 sm:$0xff]   ;;  %v1284_v13 = vld [vmem:[%s1846_s1 + $0x2f0] ss:$8 sps:$4 sm:$0xff]   ;;  %v1287_v14 = vld [vmem:[%s1846_s1 + $0x104] ss:$8 sps:$4 sm:$0xff]  }
  0x17   :  { %865 = vmatpush1.bf16.msra.mxu1 %v1223_v22  ;;  %886 = vmatprep.mubr.bf16.mxu1 %v194_v62  ;;  %v1291_v15 = vld [vmem:[%s1846_s1 + $0x304] ss:$8 sps:$4 sm:$0xff]   ;;  %v1285_v16 = vld [vmem:[%s1846_s1 + $0x100] ss:$8 sps:$4 sm:$0xff]   ;;  %v1294_v20 = vld [vmem:[%s1846_s1 + $0x114] ss:$8 sps:$4 sm:$0xff]   ;;  %v204_v22 = vcombine.high %v194_v62, %v194_v62 }
  0x18   :  { %947 = vmatpush1.bf16.msra.mxu0 %v1224_v23  ;;  %866 = vmatprep.subr.bf16.mxu1 %v1225_v24  ;;  %v1289_v19 = vld [vmem:[%s1846_s1 + $0x300] ss:$8 sps:$4 sm:$0xff]   ;;  %v1297_v21 = vld [vmem:[%s1846_s1 + $0x314] ss:$8 sps:$4 sm:$0xff]   ;;  %v205_v23 = vcombine.high %v201_v3, %v201_v3  ;;  %v1292_v24 = vld [vmem:[%s1846_s1 + $0x110] ss:$8 sps:$4 sm:$0xff]  }
  0x19   :  { %948 = vmatprep.subr.bf16.mxu0 %v1227_v25  ;;  %968 = vmatprep.mubr.bf16.mxu0 %v201_v3  ;;  %v1295_v25 = vld [vmem:[%s1846_s1 + $0x310] ss:$8 sps:$4 sm:$0xff]   ;;  %v1310_v36 = vld [vmem:[%s1846_s1 + $0x140] ss:$8 sps:$4 sm:$0xff]   ;;  %v1318_v38 = vld [vmem:[%s1846_s1 + $0x154] ss:$8 sps:$4 sm:$0xff]  }
  0x1a   :  { %v1313_v37 = vld [vmem:[%s1846_s1 + $0x340] ss:$8 sps:$4 sm:$0xff]   ;;  %v1324_v43 = vld [vmem:[%s1846_s1 + $0x164] ss:$8 sps:$4 sm:$0xff]  }
  0x1b   :  { %867 = vmatpush1.bf16.msra.mxu1 %v1229_v26  ;;  %v1300_v26 = vld [vmem:[%s1846_s1 + $0x124] ss:$8 sps:$4 sm:$0xff]  }
  0x1c   :  { %949 = vmatpush1.bf16.msra.mxu0 %v1230_v27  ;;  %868 = vmatprep.subr.bf16.mxu1 %v1231_v28  ;;  %v1303_v27 = vld [vmem:[%s1846_s1 + $0x324] ss:$8 sps:$4 sm:$0xff]   ;;  %v1298_v28 = vld [vmem:[%s1846_s1 + $0x120] ss:$8 sps:$4 sm:$0xff]  }
  0x1d   :  { %950 = vmatprep.subr.bf16.mxu0 %v1233_v29  ;;  %v1301_v29 = vld [vmem:[%s1846_s1 + $0x320] ss:$8 sps:$4 sm:$0xff]  }
  0x1f   :  { %869 = vmatpush1.bf16.msra.mxu1 %v1235_v30  ;;  %v1306_v30 = vld [vmem:[%s1846_s1 + $0x134] ss:$8 sps:$4 sm:$0xff]  }
  0x20   :  { %951 = vmatpush1.bf16.msra.mxu0 %v1236_v31  ;;  %870 = vmatprep.subr.bf16.mxu1 %v1237_v32  ;;  %v1309_v31 = vld [vmem:[%s1846_s1 + $0x334] ss:$8 sps:$4 sm:$0xff]   ;;  %v1304_v32 = vld [vmem:[%s1846_s1 + $0x130] ss:$8 sps:$4 sm:$0xff]  }
  0x21   :  { %952 = vmatprep.subr.bf16.mxu0 %v1239_v33  ;;  %v1307_v33 = vld [vmem:[%s1846_s1 + $0x330] ss:$8 sps:$4 sm:$0xff]  }
  0x23   :  { %871 = vmatpush1.bf16.msra.mxu1 %v1241_v34  ;;  %v1312_v34 = vld [vmem:[%s1846_s1 + $0x144] ss:$8 sps:$4 sm:$0xff]  }
  0x24   :  { %953 = vmatpush1.bf16.msra.mxu0 %v1242_v35  ;;  %872 = vmatprep.subr.bf16.mxu1 %v1243_v39  ;;  %v1315_v35 = vld [vmem:[%s1846_s1 + $0x344] ss:$8 sps:$4 sm:$0xff]   ;;  %v1321_v39 = vld [vmem:[%s1846_s1 + $0x354] ss:$8 sps:$4 sm:$0xff]  }
  0x25   :  { %954 = vmatprep.subr.bf16.mxu0 %v1245_v40  ;;  %v1316_v40 = vld [vmem:[%s1846_s1 + $0x150] ss:$8 sps:$4 sm:$0xff]  }
  0x27   :  { %873 = vmatpush1.bf16.msra.mxu1 %v1247_v41  ;;  %v1319_v41 = vld [vmem:[%s1846_s1 + $0x350] ss:$8 sps:$4 sm:$0xff]  }
  0x28   :  { %955 = vmatpush1.bf16.msra.mxu0 %v1248_v44  ;;  %874 = vmatprep.subr.bf16.mxu1 %v1249_v45  ;;  %v1327_v44 = vld [vmem:[%s1846_s1 + $0x364] ss:$8 sps:$4 sm:$0xff]  }
  0x29   :  { %956 = vmatprep.subr.bf16.mxu0 %v1251_v46 }
  0x2b   :  { %875 = vmatpush1.bf16.msra.mxu1 %v1253_v47 }
  0x2c   :  { %957 = vmatpush1.bf16.msra.mxu0 %v1254_v48  ;;  %876 = vmatprep.subr.bf16.mxu1 %v1255_v50 }
  0x2d   :  { %958 = vmatprep.subr.bf16.mxu0 %v1257_v51 }
  0x2f   :  { %877 = vmatpush1.bf16.msra.mxu1 %v1259_v53 }
  0x30   :  { %959 = vmatpush1.bf16.msra.mxu0 %v1260_v56  ;;  %878 = vmatprep.subr.bf16.mxu1 %v1261_v57 }
  0x31   :  { %960 = vmatprep.subr.bf16.mxu0 %v1263_v58 }
  0x33   :  { %879 = vmatpush1.bf16.msra.mxu1 %v1265_v61 }
  0x34   :  { %961 = vmatpush1.bf16.msra.mxu0 %v1266_v0  ;;  %880 = vmatprep.subr.bf16.mxu1 %v1267_v1 }
  0x35   :  { %962 = vmatprep.subr.bf16.mxu0 %v1269_v2 }
  0x37   :  { %881 = vmatpush1.bf16.msra.mxu1 %v1271_v4 }
  0x38   :  { %963 = vmatpush1.bf16.msra.mxu0 %v1272_v5  ;;  %882 = vmatprep.subr.bf16.mxu1 %v1273_v6 }
  0x39   :  { %964 = vmatprep.subr.bf16.mxu0 %v1275_v7 }
  0x3b   :  { %883 = vmatpush1.bf16.msra.mxu1 %v1277_v8 }
  0x3c   :  { %965 = vmatpush1.bf16.msra.mxu0 %v1278_v9  ;;  %884 = vmatprep.subr.bf16.mxu1 %v1279_v10 }
  0x3d   :  { %966 = vmatprep.subr.bf16.mxu0 %v1281_v11 }
  0x3f   :  { %885 = vmatpush1.bf16.msra.mxu1 %v1283_v12 }
  0x40   :  { %967 = vmatpush1.bf16.msra.mxu0 %v1284_v13  ;;  %895 = vmatprep.subr.bf16.mxu1 %v1287_v14 }
  0x41   :  { %977 = vmatprep.subr.bf16.mxu0 %v1291_v15 }
  0x42   :  { %887 = vmatmul.mubr.bf16.vlgmr.msra.gmra.mrb[0].mxu1 %v1635_v17 }
  0x43   :  { %969 = vmatmul.mubr.bf16.vlgmr.msra.gmra.mrb[0].mxu0 %v1637_v18  ;;  %896 = vmatpush1.bf16.msra.mxu1 %v1285_v16 }
  0x44   :  { %978 = vmatpush1.bf16.msra.mxu0 %v1289_v19  ;;  %897 = vmatprep.subr.bf16.mxu1 %v1294_v20 }
  0x45   :  { %979 = vmatprep.subr.bf16.mxu0 %v1297_v21  ;;  %927 = vmatprep.mubr.bf16.mxu1 %v204_v22 }
  0x46   :  { %1009 = vmatprep.mubr.bf16.mxu0 %v205_v23 }
  0x47   :  { %898 = vmatpush1.bf16.msra.mxu1 %v1292_v24 }
  0x48   :  { %980 = vmatpush1.bf16.msra.mxu0 %v1295_v25  ;;  %899 = vmatprep.subr.bf16.mxu1 %v1300_v26 }
  0x49   :  { %981 = vmatprep.subr.bf16.mxu0 %v1303_v27 }
  0x4b   :  { %900 = vmatpush1.bf16.msra.mxu1 %v1298_v28 }
  0x4c   :  { %982 = vmatpush1.bf16.msra.mxu0 %v1301_v29  ;;  %901 = vmatprep.subr.bf16.mxu1 %v1306_v30 }
  0x4d   :  { %983 = vmatprep.subr.bf16.mxu0 %v1309_v31 }
  0x4f   :  { %902 = vmatpush1.bf16.msra.mxu1 %v1304_v32 }
  0x50   :  { %984 = vmatpush1.bf16.msra.mxu0 %v1307_v33  ;;  %903 = vmatprep.subr.bf16.mxu1 %v1312_v34 }
  0x51   :  { %985 = vmatprep.subr.bf16.mxu0 %v1315_v35 }
  0x53   :  { %904 = vmatpush1.bf16.msra.mxu1 %v1310_v36 }
  0x54   :  { %986 = vmatpush1.bf16.msra.mxu0 %v1313_v37  ;;  %905 = vmatprep.subr.bf16.mxu1 %v1318_v38 }
  0x55   :  { %987 = vmatprep.subr.bf16.mxu0 %v1321_v39 }
  0x56   :  { %8 = vsyncpa [#allocation3], 0  ;;  %v1322_v45 = vld [vmem:[%s1846_s1 + $0x160] ss:$8 sps:$4 sm:$0xff]   ;;  %v1330_v47 = vld [vmem:[%s1846_s1 + $0x174] ss:$8 sps:$4 sm:$0xff]   ;;  %v202_v21 = vcombine.high %v1635_v17, %v1635_v17  ;;  %v203_v22 = vcombine.high %v1637_v18, %v1637_v18 }
  0x57   :  { %906 = vmatpush1.bf16.msra.mxu1 %v1316_v40  ;;  %v1325_v46 = vld [vmem:[%s1846_s1 + $0x360] ss:$8 sps:$4 sm:$0xff]   ;;  %v1333_v48 = vld [vmem:[%s1846_s1 + $0x374] ss:$8 sps:$4 sm:$0xff]   ;;  %v1328_v49 = vld [vmem:[%s1846_s1 + $0x170] ss:$8 sps:$4 sm:$0xff]  }
  0x58   :  { %988 = vmatpush1.bf16.msra.mxu0 %v1319_v41  ;;  %907 = vmatprep.subr.bf16.mxu1 %v1324_v43  ;;  %v1331_v50 = vld [vmem:[%s1846_s1 + $0x370] ss:$8 sps:$4 sm:$0xff]   ;;  %v1336_v51 = vld [vmem:[%s1846_s1 + $0x184] ss:$8 sps:$4 sm:$0xff]   ;;  %v1334_v53 = vld [vmem:[%s1846_s1 + $0x180] ss:$8 sps:$4 sm:$0xff]  }
  0x59   :  { %989 = vmatprep.subr.bf16.mxu0 %v1327_v44  ;;  %v1339_v52 = vld [vmem:[%s1846_s1 + $0x384] ss:$8 sps:$4 sm:$0xff]   ;;  %v1337_v54 = vld [vmem:[%s1846_s1 + $0x380] ss:$8 sps:$4 sm:$0xff]   ;;  %v1342_v55 = vld [vmem:[%s1846_s1 + $0x194] ss:$8 sps:$4 sm:$0xff]  }
  0x5a   :  { %v1345_v56 = vld [vmem:[%s1846_s1 + $0x394] ss:$8 sps:$4 sm:$0xff]   ;;  %v1340_v57 = vld [vmem:[%s1846_s1 + $0x190] ss:$8 sps:$4 sm:$0xff]   ;;  %v1348_v59 = vld [vmem:[%s1846_s1 + $0x1a4] ss:$8 sps:$4 sm:$0xff]  }
  0x5b   :  { %908 = vmatpush1.bf16.msra.mxu1 %v1322_v45  ;;  %v1343_v58 = vld [vmem:[%s1846_s1 + $0x390] ss:$8 sps:$4 sm:$0xff]   ;;  %v1351_v60 = vld [vmem:[%s1846_s1 + $0x3a4] ss:$8 sps:$4 sm:$0xff]   ;;  %v1346_v61 = vld [vmem:[%s1846_s1 + $0x1a0] ss:$8 sps:$4 sm:$0xff]  }
  0x5c   :  { %990 = vmatpush1.bf16.msra.mxu0 %v1325_v46  ;;  %909 = vmatprep.subr.bf16.mxu1 %v1330_v47  ;;  %v1349_v62 = vld [vmem:[%s1846_s1 + $0x3a0] ss:$8 sps:$4 sm:$0xff]   ;;  %v1354_v63 = vld [vmem:[%s1846_s1 + $0x1b4] ss:$8 sps:$4 sm:$0xff]   ;;  %v1352_v1 = vld [vmem:[%s1846_s1 + $0x1b0] ss:$8 sps:$4 sm:$0xff]  }
  0x5d   :  { %991 = vmatprep.subr.bf16.mxu0 %v1333_v48  ;;  %v1357_v0 = vld [vmem:[%s1846_s1 + $0x3b4] ss:$8 sps:$4 sm:$0xff]   ;;  %v1355_v2 = vld [vmem:[%s1846_s1 + $0x3b0] ss:$8 sps:$4 sm:$0xff]   ;;  %v1360_v3 = vld [vmem:[%s1846_s1 + $0x1c4] ss:$8 sps:$4 sm:$0xff]  }
  0x5e   :  { %v1363_v4 = vld [vmem:[%s1846_s1 + $0x3c4] ss:$8 sps:$4 sm:$0xff]   ;;  %v1358_v5 = vld [vmem:[%s1846_s1 + $0x1c0] ss:$8 sps:$4 sm:$0xff]   ;;  %v1366_v7 = vld [vmem:[%s1846_s1 + $0x1d4] ss:$8 sps:$4 sm:$0xff]  }
  0x5f   :  { %910 = vmatpush1.bf16.msra.mxu1 %v1328_v49  ;;  %v1361_v6 = vld [vmem:[%s1846_s1 + $0x3c0] ss:$8 sps:$4 sm:$0xff]   ;;  %v1369_v8 = vld [vmem:[%s1846_s1 + $0x3d4] ss:$8 sps:$4 sm:$0xff]   ;;  %v1364_v9 = vld [vmem:[%s1846_s1 + $0x1d0] ss:$8 sps:$4 sm:$0xff]  }
  0x60   :  { %992 = vmatpush1.bf16.msra.mxu0 %v1331_v50  ;;  %911 = vmatprep.subr.bf16.mxu1 %v1336_v51  ;;  %v1367_v10 = vld [vmem:[%s1846_s1 + $0x3d0] ss:$8 sps:$4 sm:$0xff]   ;;  %v1372_v11 = vld [vmem:[%s1846_s1 + $0x1e4] ss:$8 sps:$4 sm:$0xff]   ;;  %v1370_v13 = vld [vmem:[%s1846_s1 + $0x1e0] ss:$8 sps:$4 sm:$0xff]  }
  0x61   :  { %993 = vmatprep.subr.bf16.mxu0 %v1339_v52  ;;  %v1375_v12 = vld [vmem:[%s1846_s1 + $0x3e4] ss:$8 sps:$4 sm:$0xff]   ;;  %v1373_v14 = vld [vmem:[%s1846_s1 + $0x3e0] ss:$8 sps:$4 sm:$0xff]   ;;  %v1378_v15 = vld [vmem:[%s1846_s1 + $0x1f4] ss:$8 sps:$4 sm:$0xff]  }
  0x62   :  { %v1381_v16 = vld [vmem:[%s1846_s1 + $0x3f4] ss:$8 sps:$4 sm:$0xff]   ;;  %v1376_v19 = vld [vmem:[%s1846_s1 + $0x1f0] ss:$8 sps:$4 sm:$0xff]   ;;  %v148_v23 = vsub.s32 0, %v1545_v42  ;;  %v152_v25 = vsub.s32 1, %v1545_v42 }
  0x63   :  { %912 = vmatpush1.bf16.msra.mxu1 %v1334_v53  ;;  %v1379_v20 = vld [vmem:[%s1846_s1 + $0x3f0] ss:$8 sps:$4 sm:$0xff]   ;;  %v144_v24 = vld [vmem:[%s1847_s2] sm:$0x3]  ;;  %s1407_s1 = smov [#allocation2]  }
  0x64   :  { %994 = vmatpush1.bf16.msra.mxu0 %v1337_v54  ;;  %913 = vmatprep.subr.bf16.mxu1 %v1342_v55  ;;  %v149_v26 = vrot.slane %v144_v24, %v148_v23  ;;  %v153_v27 = vrot.slane %v144_v24, %v152_v25  ;;  %s1038_s23 = sshll.u32 %s1407_s1, 4  ;;  %s1039_s23 = int_to_ptr.vmem [resolvable:$true] %s1038_s23 }
  0x65   :  { %995 = vmatprep.subr.bf16.mxu0 %v1345_v56  ;;  %s1382_s2 = scalar_lea.vmem %s1039_s23, 64  ;;  %p1387_p1 = scmp.lt.s32.totalorder %s1039_s23, %s1039_s23 }
  0x66   :  { %p1383_p0 = scmp.ne.s32.totalorder %s1039_s23, %s1382_s2  ;;  %p1388_p2 = scmp.lt.s32.totalorder %s1382_s2, %s1382_s2 }
  0x67   :  { %914 = vmatpush1.bf16.msra.mxu1 %v1340_v57 }
  0x68   :  { %996 = vmatpush1.bf16.msra.mxu0 %v1343_v58  ;;  %915 = vmatprep.subr.bf16.mxu1 %v1348_v59  ;;  %p1389_p3 = por %p1388_p2, %p1387_p1 }
  0x69   :  { %997 = vmatprep.subr.bf16.mxu0 %v1351_v60 }
  0x6a   :  { %p1390_p4 = pnand %p1389_p3, %p1383_p0 }
  0x6b   :  { %916 = vmatpush1.bf16.msra.mxu1 %v1346_v61 }
  0x6c   :  { %998 = vmatpush1.bf16.msra.mxu0 %v1349_v62  ;;  %917 = vmatprep.subr.bf16.mxu1 %v1354_v63 }
  0x6d   :  { %999 = vmatprep.subr.bf16.mxu0 %v1357_v0 }
  0x6f   :  { %918 = vmatpush1.bf16.msra.mxu1 %v1352_v1 }
  0x70   :  { %1000 = vmatpush1.bf16.msra.mxu0 %v1355_v2  ;;  %919 = vmatprep.subr.bf16.mxu1 %v1360_v3 }
  0x71   :  { %1001 = vmatprep.subr.bf16.mxu0 %v1363_v4 }
  0x73   :  { %920 = vmatpush1.bf16.msra.mxu1 %v1358_v5 }
  0x74   :  { %1002 = vmatpush1.bf16.msra.mxu0 %v1361_v6  ;;  %921 = vmatprep.subr.bf16.mxu1 %v1366_v7 }
  0x75   :  { %1003 = vmatprep.subr.bf16.mxu0 %v1369_v8 }
  0x77   :  { %922 = vmatpush1.bf16.msra.mxu1 %v1364_v9 }
  0x78   :  { %1004 = vmatpush1.bf16.msra.mxu0 %v1367_v10  ;;  %923 = vmatprep.subr.bf16.mxu1 %v1372_v11 }
  0x79   :  { %1005 = vmatprep.subr.bf16.mxu0 %v1375_v12 }
  0x7b   :  { %924 = vmatpush1.bf16.msra.mxu1 %v1370_v13 }
  0x7c   :  { %1006 = vmatpush1.bf16.msra.mxu0 %v1373_v14  ;;  %925 = vmatprep.subr.bf16.mxu1 %v1378_v15 }
  0x7d   :  { %1007 = vmatprep.subr.bf16.mxu0 %v1381_v16 }
  0x7f   :  { %926 = vmatpush1.bf16.msra.mxu1 %v1376_v19 }
  0x80   :  { %1008 = vmatpush1.bf16.msra.mxu0 %v1379_v20 }
  0x82   :  { %928 = vmatmul.mubr.bf16.vlgmr.msra.gmra.mrb[0].mxu1 %v202_v21 }
  0x83   :  { %1010 = vmatmul.mubr.bf16.vlgmr.msra.gmra.mrb[0].mxu0 %v203_v22 }
 0x155   :  { %v929_v28 = vpop.f32.mrb[0].mxu1 }
 0x156   :  { %v1011_v29 = vpop.f32.mrb[0].mxu0  ;;  %v1175_v17 = vadd.f32 %v929_v28, %v149_v26  ;;  %v931_v30 = vpop.f32.mrb[1].mxu1 }
 0x157   :  { %v1013_v31 = vpop.f32.mrb[1].mxu0  ;;  %v1177_v18 = vadd.f32 %v931_v30, %v153_v27  ;;  %v933_v32 = vpop.f32.mrb[2].mxu1 }
 0x158   :  { %v1015_v33 = vpop.f32.mrb[2].mxu0  ;;  %v1176_v34 = vadd.f32 %v1175_v17, %v1011_v29  ;;  %v934_v35 = vpop.f32.mrb[3].mxu1 }
 0x159   :  { %v1016_v36 = vpop.f32.mrb[3].mxu0  ;;  %v1178_v37 = vadd.f32 %v1177_v18, %v1013_v31 }
 0x15a   :  { %v1018_v38 = vmax.f32 %v1176_v34, 0.0 }
 0x15b   :  { %v1019_v39 = vmax.f32 %v1178_v37, 0.0 }
 0x15d   :  { %v1022_v40 = vcombine.low %v1018_v38, %v1019_v39 }
 0x15f   :  { %1174 = vst.sshfl [vmem:[#allocation2] sm:$0x33 pattern:$0x76325410] %v1022_v40 }
 0x160   :  { %1393 = shalt.err (!%p1390_p4)
}
 0x161   :  { %s1394_s26 = scalar_lea.hbm %s1848_s3, 64 }
 0x162   :  { %p1395_p5 = scmp.ne.s32.totalorder %s1848_s3, %s1394_s26  ;;  %p1398_p6 = scmp.lt.u32.totalorder %s1394_s26, %s1848_s3 }
 0x164   :  { %p1400_p7 = pnand %p1398_p6, %p1395_p5 }
 0x166   :  { %1403 = shalt.err (!%p1400_p7)
}
 0x167   :  { %1041 = dma.vmem_to_hbm [thread:$0]  %s1039_s23, 64, %s1848_s3, [#allocation3]  }
 0x168   :  { %1404 = dma.done.wait [#allocation3], 64  }
 0x169   :  { %1405 = vsyncadd [#allocation3], 4294967232 }
 0x16a   :  { %1045 = vsyncpa [#allocation3], 1 }

// kernel: encoder_forward.6
= control target key start
LH: loop header
LB: loop body
LE: loop exit
PB: predicated region body
PF: predicated region fallthrough
CT: control target
= control target key end

     0   :  { %9 = vsyncpa [#allocation3], 0  ;;  %s10149_s0 = inlined_call_operand.vmem [shape: bf16[2,6272], index: 0, kind: input, shape index: {}]   ;;  %s10150_s1 = inlined_call_operand.hbm [shape: bf16[6272,1024], index: 1, kind: input, shape index: {}]   ;;  %s10151_s2 = inlined_call_operand.hbm [shape: f32[1,1024], index: 2, kind: input, shape index: {}]   ;;  %s10152_s3 = inlined_call_operand.hbm [shape: f32[1,1024], index: 3, kind: input, shape index: {}]   ;;  %s10153_s4 = inlined_call_operand.vmem [shape: f32[2,1024], index: 4, kind: output, shape index: {}]  }
   0x1   :  { %11 = vsyncpa [#allocation3 + $0x1], 0 }
   0x2   :  { %12 = vsyncpa [#allocation5], 0 }
   0x3   :  { %14 = vsyncpa [#allocation5 + $0x1], 0  ;;  %s8911_s15 = smov 0   ;;  %s8913_s16 = smov 0  }
   0x4   :  { %s8915_s17 = smov 0   ;;  %s8917_s18 = smov 0  }
   0x5 LB: > { %s8930_s19 = sadd.s32 4294967295, %s8876_s18   ;;  %s8933_s20 = sadd.s32 1, %s8876_s18   ;;  %s8876_s18 = sphi %s8917_s18, %s10166_s18   ;;  %s8872_s17 = sphi %s8915_s17, %s10165_s17   ;;  %s8868_s16 = sphi %s8913_s16, %s10164_s16   ;;  %s8864_s15 = sphi %s8911_s15, %s10163_s15  }
   0x6   : > { %s45_s21 = ssub.s32 %s8876_s18, %s8933_s20  ;;  %s48_s22 = sadd.s32 1, %s8872_s17 }
   0x7   : > { %p46_p0 = scmp.eq.s32.totalorder %s45_s21, 0  ;;  %p55_p1 = scmp.ne.s32.totalorder %s8872_s17, %s8868_s16 }
   0x8   : > { %p56_p2 = scmp.eq.s32.totalorder %s8876_s18, 0  ;;  %p61_p3 = scmp.ne.s32.totalorder %s8868_s16, %s8864_s15 }
   0x9   : > { %s8943_s23 = scalar_select %p46_p0, %s8872_s17, %s48_s22  }
   0xa   : > { %p57_p4 = por %p56_p2, %p55_p1  ;;  %p62_p5 = scmp.eq.s32.totalorder %s8930_s19, 0 }
   0xb   : > { %p7520_p6 = scmp.lt.s32.totalorder %s8876_s18, 4  ;;  %s8952_s25 = sand.u32 1, %s8872_s17  }
   0xc   : > { %p8947_p7 = por %p62_p5, %p61_p3  ;;  %s7502_s26 = smul.u32 6272, %s8952_s25 }
   0xd   : > { %p8955_p8 = pnand %p7520_p6, %p57_p4  ;;  %s187_s28 = sand.u32 1, %s8876_s18  }
   0xe   : > { %s10156_s24 = scalar_select %p8947_p7, 1, 0 }
   0xf   : > { %s10157_s27 = scalar_select %p8955_p8, 1, 0 }
  0x10   : > { %s170_s29 = scalar_lea.vmem [#allocation2], %s7502_s26  ;;  %s6606_s5 = sshll.u32 %s8952_s25, 1 }
  0x11   : > { %s177_s30 = sshll.u32 %s170_s29, 4  ;;  %s7406_s6 = sshll.u32 %s8876_s18, 5  ;;  %s8960_s30 = int_to_ptr.vmem [resolvable:$true] %s177_s30 }
  0x12   : > { %s8969_s9 = scalar_lea.hbm %s10151_s2, %s7406_s6  ;;  %s191_s10 = scalar_lea.vmem [#allocation4], %s6606_s5 }
  0x13   : > { %s199_s11 = sshll.u32 %s191_s10, 4  ;;  %s8975_s12 = scalar_lea.sflag [#allocation5], %s187_s28  ;;  %s8973_s11 = int_to_ptr.vmem [resolvable:$true] %s199_s11 }
  0x14   : > { %s8748_s13 = scalar_lea.hbm %s8969_s9, 32  ;;  %p8981_p10 = pneg %p8955_p8 }
  0x15   : > { %p8749_p9 = scmp.ne.s32.totalorder %s8969_s9, %s8748_s13  ;;  %s8753_s22 = scalar_lea.hbm %s10151_s2, 128 }
  0x16   : > { %p8754_p13 = scmp.lt.u32.totalorder %s8969_s9, %s10151_s2  ;;  %p8755_p0 = scmp.lt.u32.totalorder %s8753_s22, %s8748_s13 }
  0x17   : > { %p8751_p11 = pnand %p8981_p10, %p8749_p9  ;;  %p8757_p2 = scmp.lt.u32.totalorder %s8748_s13, %s8969_s9 }
  0x18   : > { %p8756_p1 = por %p8755_p0, %p8754_p13 }
  0x19   : > { %p8752_p12 = pneg %p8751_p11 }
  0x1a   : > { %p8758_p3 = por %p8757_p2, %p8756_p1 }
  0x1c   : > { %p8759_p4 = pnand %p8758_p3, %p8752_p12 }
  0x1e   : > { %8762 = shalt.err (!%p8759_p4)
}
  0x1f   : > { %s8763_s28 = scalar_lea.vmem %s8973_s11, 32  ;;  %s8878_s7 = smov [#allocation4]  }
  0x20   : > { %p8764_p5 = scmp.ne.s32.totalorder %s8973_s11, %s8763_s28  ;;  %s8768_s8 = sshll.u32 %s8878_s7, 4  ;;  %s8769_s8 = int_to_ptr.vmem [resolvable:$false] %s8768_s8 }
  0x21   : > { %s8770_s10 = scalar_lea.vmem %s8769_s8, 64  ;;  %p8771_p11 = scmp.lt.s32.totalorder %s8973_s11, %s8769_s8 }
  0x22   : > { %p8766_p6 = pnand %p8764_p5, %p8981_p10  ;;  %p8772_p7 = scmp.lt.s32.totalorder %s8770_s10, %s8763_s28 }
  0x24   : > { %p8767_p9 = pneg %p8766_p6  ;;  %p8773_p13 = por %p8772_p7, %p8771_p11 }
  0x26   : > { %p8774_p0 = pnand %p8773_p13, %p8767_p9 }
  0x28   : > { %8777 = shalt.err (!%p8774_p0)
}
  0x29   : > { %7516 = dma.hbm_to_vmem [thread:$0]  (!%p8955_p8), %s8969_s9, 32, %s8973_s11, %s8975_s12  }
  0x2a   : > { %s9010_s21 = scalar_lea.hbm %s10152_s3, %s7406_s6  ;;  %p6612_p7 = scmp.ge.s32.totalorder %s8876_s18, 1 }
  0x2b   : > { %p223_p12 = scmp.lt.s32.totalorder %s8876_s18, 5  ;;  %s7405_s22 = sshll.u32 %s8876_s18, 7 }
  0x2c   : > { %s9018_s28 = scalar_lea.hbm %s10150_s1, %s7405_s22  ;;  %s9026_s11 = scalar_lea.vmem [#allocation6], %s6606_s5 }
  0x2d   : > { %p9020_p1 = pnand %p6612_p7, %p223_p12  ;;  %s218_s6 = sshll.u32 %s9026_s11, 4  ;;  %s219_s6 = int_to_ptr.vmem [resolvable:$true] %s218_s6 }
  0x2e   : > { %s167_s7 = scalar_lea.sflag [#allocation3], %s8952_s25  ;;  %s8778_s18 = scalar_lea.hbm %s9018_s28, 100352 }
  0x2f   : > { %s10159_s9 = scalar_select %p9020_p1, 1, 0 }
  0x30   : > { %p8779_p2 = scmp.ne.s32.totalorder %s9018_s28, %s8778_s18  ;;  %s8783_s13 = scalar_lea.hbm %s10150_s1, 401408 }
  0x31   : > { %p8784_p5 = scmp.lt.u32.totalorder %s9018_s28, %s10150_s1  ;;  %p8785_p6 = scmp.lt.u32.totalorder %s8783_s13, %s8778_s18 }
  0x32   : > { %p8781_p3 = pnand %p8779_p2, %p8981_p10  ;;  %p8787_p11 = scmp.lt.u32.totalorder %s8778_s18, %s9018_s28 }
  0x33   : > { %p8786_p9 = por %p8785_p6, %p8784_p5 }
  0x34   : > { %p8782_p4 = pneg %p8781_p3 }
  0x35   : > { %p8788_p13 = por %p8787_p11, %p8786_p9 }
  0x37   : > { %p8789_p0 = pnand %p8788_p13, %p8782_p4 }
  0x39   : > { %8792 = shalt.err (!%p8789_p0)
}
  0x3a   : > { %s8793_s5 = scalar_lea.vmem %s8960_s30, 100352  ;;  %s8879_s26 = smov [#allocation2]  }
  0x3b   : > { %p8794_p7 = scmp.ne.s32.totalorder %s8960_s30, %s8793_s5  ;;  %s8798_s29 = sshll.u32 %s8879_s26, 4  ;;  %s8799_s29 = int_to_ptr.vmem [resolvable:$false] %s8798_s29 }
  0x3c   : > { %s8800_s8 = scalar_lea.vmem %s8799_s29, 200704  ;;  %p8801_p3 = scmp.lt.s32.totalorder %s8960_s30, %s8799_s29 }
  0x3d   : > { %p8796_p12 = pnand %p8794_p7, %p8981_p10  ;;  %p8802_p1 = scmp.lt.s32.totalorder %s8800_s8, %s8793_s5 }
  0x3f   : > { %p8797_p2 = pneg %p8796_p12  ;;  %p8803_p5 = por %p8802_p1, %p8801_p3 }
  0x41   : > { %p8804_p6 = pnand %p8803_p5, %p8797_p2 }
  0x43   : > { %8807 = shalt.err (!%p8804_p6)
}
  0x44   : > { %s8880_s18 = smov 512   ;;  %s8881_s10 = smov 128  }
  0x45   : > { %s8882_s13 = smov 8   ;;  %s8808_s15 = scalar_lea.hbm %s9010_s21, 32 }
  0x46   : > { %7513 = dma.hbm_to_vmem [thread:$0]  (!%p8955_p8), %s9018_s28, 100352, %s8960_s30, %s167_s7, %s8880_s18, %s8881_s10, %s8882_s13  }
  0x47   : > { %p8809_p1 = scmp.ne.s32.totalorder %s9010_s21, %s8808_s15  ;;  %s8813_s26 = scalar_lea.hbm %s10152_s3, 128 }
  0x48   : > { %p8814_p11 = scmp.lt.u32.totalorder %s9010_s21, %s10152_s3  ;;  %p8815_p13 = scmp.lt.u32.totalorder %s8813_s26, %s8808_s15 }
  0x49   : > { %p8811_p4 = pnand %p8809_p1, %p8981_p10  ;;  %p8817_p7 = scmp.lt.u32.totalorder %s8808_s15, %s9010_s21 }
  0x4a   : > { %p8816_p0 = por %p8815_p13, %p8814_p11 }
  0x4b   : > { %p8812_p9 = pneg %p8811_p4 }
  0x4c   : > { %p8818_p12 = por %p8817_p7, %p8816_p0 }
  0x4e   : > { %p8819_p2 = pnand %p8818_p12, %p8812_p9 }
  0x50   : > { %8822 = shalt.err (!%p8819_p2)
}
  0x51   : > { %s8823_s25 = scalar_lea.vmem %s219_s6, 32  ;;  %s8883_s30 = smov [#allocation6]  }
  0x52   : > { %p8824_p3 = scmp.ne.s32.totalorder %s219_s6, %s8823_s25  ;;  %s8828_s28 = sshll.u32 %s8883_s30, 4  ;;  %s8829_s28 = int_to_ptr.vmem [resolvable:$false] %s8828_s28 }
  0x53   : > { %s8830_s11 = scalar_lea.vmem %s8829_s28, 64  ;;  %p8831_p1 = scmp.lt.s32.totalorder %s219_s6, %s8829_s28 }
  0x54   : > { %p8826_p5 = pnand %p8824_p3, %p8981_p10  ;;  %p8832_p4 = scmp.lt.s32.totalorder %s8830_s11, %s8823_s25 }
  0x56   : > { %p8827_p6 = pneg %p8826_p5  ;;  %p8833_p8 = por %p8832_p4, %p8831_p1 }
  0x58   : > { %p8834_p11 = pnand %p8833_p8, %p8827_p6 }
  0x5a   : > { %8837 = shalt.err (!%p8834_p11)
}
  0x5b   : > { %p10160_p13 = scmp.ne.s32.totalorder %s10157_s27, 0  ;;  %p10161_p9 = scmp.ne.s32.totalorder %s10159_s9, 0 }
  0x5c   : > { %s9076_s14 = sand.u32 (!%p10161_p9), 1, %s8868_s16   ;;  %p10162_p8 = scmp.ne.s32.totalorder (!%p10161_p9), %s10156_s24, 0 }
  0x5d   : > { %7519 = dma.hbm_to_vmem [thread:$0]  (!%p10160_p13), %s9010_s21, 32, %s219_s6, %s8975_s12  }
  0x5e   : > { %227 = sbr.rel (%p10161_p9) target bundleno = 1166 (0x48e), region = 36  ;;  %s230_s18 = scalar_lea.sflag (!%p10161_p9), [#allocation3], %s9076_s14 }
  0x5f   : > { %s7503_s7 = smul.u32 (!%p10161_p9), 6272, %s9076_s14 }
  0x61   : > { %s9080_s10 = scalar_lea.vmem (!%p10161_p9), [#allocation2], %s7503_s7 }
  0x65   : > { %8855 = dma.done.wait (%p10162_p8), %s230_s18, 100352  }
  0x66   : > { %8857 = vsyncadd (%p10162_p8), %s230_s18, 4294866944  ;;  %s238_s27 = sand.u32 1, %s8930_s19   ;;  %s6613_s12 = sshll.u32 %s9076_s14, 1 }
  0x67   : > { %s239_s21 = scalar_lea.sflag [#allocation5], %s238_s27  ;;  %s9090_s9 = scalar_lea.vmem [#allocation4], %s6613_s12 }
  0x68   : > { %8859 = dma.done.wait (%p10162_p8), %s239_s21, 64  }
  0x69   : > { %8861 = vsyncadd (%p10162_p8), %s239_s21, 4294967232  ;;  %v7558_v0 = vld [vmem:[%s9080_s10 + $0x4] ss:$8 sps:$4 sm:$0xff]   ;;  %v7562_v2 = vld [vmem:[%s9080_s10] ss:$8 sps:$4 sm:$0xff]   ;;  %v1098_v38 = vlaneseq  ;;  %vm6396_vm0 = vcmask 1041408  }
  0x6a   : > { %v7560_v1 = vld [vmem:[%s9080_s10 + $0xc04] ss:$8 sps:$4 sm:$0xff]   ;;  %5371 = vmatprep.subr.bf16.mxu1 %v7558_v0  ;;  %v7563_v3 = vld [vmem:[%s9080_s10 + $0xc00] ss:$8 sps:$4 sm:$0xff]   ;;  %v7564_v4 = vld [vmem:[%s9080_s10 + $0x14] ss:$8 sps:$4 sm:$0xff]  }
  0x6b   : > { %5863 = vmatprep.subr.bf16.mxu0 %v7560_v1  ;;  %5372 = vmatpush1.bf16.msra.mxu1 %v7562_v2  ;;  %v7566_v5 = vld [vmem:[%s9080_s10 + $0xc14] ss:$8 sps:$4 sm:$0xff]   ;;  %v7568_v6 = vld [vmem:[%s9080_s10 + $0x10] ss:$8 sps:$4 sm:$0xff]   ;;  %v7570_v8 = vld [vmem:[%s9080_s10 + $0x24] ss:$8 sps:$4 sm:$0xff]  }
  0x6c   : > { %5864 = vmatpush1.bf16.msra.mxu0 %v7563_v3  ;;  %5373 = vmatprep.subr.bf16.mxu1 %v7564_v4  ;;  %v7569_v7 = vld [vmem:[%s9080_s10 + $0xc10] ss:$8 sps:$4 sm:$0xff]   ;;  %v7572_v9 = vld [vmem:[%s9080_s10 + $0xc24] ss:$8 sps:$4 sm:$0xff]   ;;  %v7574_v10 = vld [vmem:[%s9080_s10 + $0x20] ss:$8 sps:$4 sm:$0xff]  }
  0x6d   : > { %5865 = vmatprep.subr.bf16.mxu0 %v7566_v5  ;;  %v7575_v11 = vld [vmem:[%s9080_s10 + $0xc20] ss:$8 sps:$4 sm:$0xff]   ;;  %v7576_v12 = vld [vmem:[%s9080_s10 + $0x34] ss:$8 sps:$4 sm:$0xff]   ;;  %v7580_v14 = vld [vmem:[%s9080_s10 + $0x30] ss:$8 sps:$4 sm:$0xff]  }
  0x6e   : > { %v7578_v13 = vld [vmem:[%s9080_s10 + $0xc34] ss:$8 sps:$4 sm:$0xff]   ;;  %v7581_v15 = vld [vmem:[%s9080_s10 + $0xc30] ss:$8 sps:$4 sm:$0xff]   ;;  %v7582_v16 = vld [vmem:[%s9080_s10 + $0x44] ss:$8 sps:$4 sm:$0xff]  }
  0x6f   : > { %5374 = vmatpush1.bf16.msra.mxu1 %v7568_v6  ;;  %v7584_v17 = vld [vmem:[%s9080_s10 + $0xc44] ss:$8 sps:$4 sm:$0xff]   ;;  %v7586_v18 = vld [vmem:[%s9080_s10 + $0x40] ss:$8 sps:$4 sm:$0xff]   ;;  %v7588_v20 = vld [vmem:[%s9080_s10 + $0x54] ss:$8 sps:$4 sm:$0xff]  }
  0x70   : > { %5866 = vmatpush1.bf16.msra.mxu0 %v7569_v7  ;;  %5375 = vmatprep.subr.bf16.mxu1 %v7570_v8  ;;  %v7587_v19 = vld [vmem:[%s9080_s10 + $0xc40] ss:$8 sps:$4 sm:$0xff]   ;;  %v7590_v21 = vld [vmem:[%s9080_s10 + $0xc54] ss:$8 sps:$4 sm:$0xff]   ;;  %v7592_v22 = vld [vmem:[%s9080_s10 + $0x50] ss:$8 sps:$4 sm:$0xff]  }
  0x71   : > { %5867 = vmatprep.subr.bf16.mxu0 %v7572_v9  ;;  %v7593_v23 = vld [vmem:[%s9080_s10 + $0xc50] ss:$8 sps:$4 sm:$0xff]   ;;  %v7594_v24 = vld [vmem:[%s9080_s10 + $0x64] ss:$8 sps:$4 sm:$0xff]   ;;  %v7598_v26 = vld [vmem:[%s9080_s10 + $0x60] ss:$8 sps:$4 sm:$0xff]  }
  0x72   : > { %v7596_v25 = vld [vmem:[%s9080_s10 + $0xc64] ss:$8 sps:$4 sm:$0xff]   ;;  %v7599_v27 = vld [vmem:[%s9080_s10 + $0xc60] ss:$8 sps:$4 sm:$0xff]   ;;  %v7600_v28 = vld [vmem:[%s9080_s10 + $0x74] ss:$8 sps:$4 sm:$0xff]  }
  0x73   : > { %5376 = vmatpush1.bf16.msra.mxu1 %v7574_v10  ;;  %v7602_v29 = vld [vmem:[%s9080_s10 + $0xc74] ss:$8 sps:$4 sm:$0xff]   ;;  %v7604_v30 = vld [vmem:[%s9080_s10 + $0x70] ss:$8 sps:$4 sm:$0xff]   ;;  %v7606_v32 = vld [vmem:[%s9080_s10 + $0x84] ss:$8 sps:$4 sm:$0xff]  }
  0x74   : > { %5868 = vmatpush1.bf16.msra.mxu0 %v7575_v11  ;;  %5377 = vmatprep.subr.bf16.mxu1 %v7576_v12  ;;  %v7605_v31 = vld [vmem:[%s9080_s10 + $0xc70] ss:$8 sps:$4 sm:$0xff]   ;;  %v7608_v33 = vld [vmem:[%s9080_s10 + $0xc84] ss:$8 sps:$4 sm:$0xff]   ;;  %v7610_v34 = vld [vmem:[%s9080_s10 + $0x80] ss:$8 sps:$4 sm:$0xff]  }
  0x75   : > { %5869 = vmatprep.subr.bf16.mxu0 %v7578_v13  ;;  %v7611_v35 = vld [vmem:[%s9080_s10 + $0xc80] ss:$8 sps:$4 sm:$0xff]   ;;  %v8884_v36 = vmov 1966171168   ;;  %v7612_v39 = vld [vmem:[%s9080_s10 + $0x94] ss:$8 sps:$4 sm:$0xff]  }
  0x76   : > { %v1096_v37 = vunpack.c.l.s4 %v8884_v36  ;;  %v7614_v40 = vld [vmem:[%s9080_s10 + $0xc94] ss:$8 sps:$4 sm:$0xff]   ;;  %v7616_v41 = vld [vmem:[%s9080_s10 + $0x90] ss:$8 sps:$4 sm:$0xff]   ;;  %v9135_v43 = vshrl.u32 %v1098_v38, 7  ;;  %v9150_v52 = vld [vmem:[%s10149_s0] sm:$0xff] }
  0x77   : > { %5378 = vmatpush1.bf16.msra.mxu1 %v7580_v14  ;;  %v7617_v44 = vld [vmem:[%s9080_s10 + $0xc90] ss:$8 sps:$4 sm:$0xff]   ;;  %v7618_v45 = vld [vmem:[%s9080_s10 + $0xa4] ss:$8 sps:$4 sm:$0xff]   ;;  %v7622_v47 = vld [vmem:[%s9080_s10 + $0xa0] ss:$8 sps:$4 sm:$0xff]  }
  0x78   : > { %5870 = vmatpush1.bf16.msra.mxu0 %v7581_v15  ;;  %5379 = vmatprep.subr.bf16.mxu1 %v7582_v16  ;;  %v1097_v42 = vunpack.c.0.s8 %v1096_v37  ;;  %v7620_v46 = vld [vmem:[%s9080_s10 + $0xca4] ss:$8 sps:$4 sm:$0xff]   ;;  %v7623_v48 = vld [vmem:[%s9080_s10 + $0xca0] ss:$8 sps:$4 sm:$0xff]   ;;  %v7624_v50 = vld [vmem:[%s9080_s10 + $0xb4] ss:$8 sps:$4 sm:$0xff]  }
  0x79   : > { %5871 = vmatprep.subr.bf16.mxu0 %v7584_v17  ;;  %v7626_v51 = vld [vmem:[%s9080_s10 + $0xcb4] ss:$8 sps:$4 sm:$0xff]   ;;  %v7628_v53 = vld [vmem:[%s9080_s10 + $0xb0] ss:$8 sps:$4 sm:$0xff]   ;;  %v7630_v57 = vld [vmem:[%s9080_s10 + $0xc4] ss:$8 sps:$4 sm:$0xff]  }
  0x7a   : > { %v9143_v49 = vsub.s32 %v1097_v42, %v9135_v43  ;;  %v7629_v55 = vld [vmem:[%s9080_s10 + $0xcb0] ss:$8 sps:$4 sm:$0xff]   ;;  %v7632_v58 = vld [vmem:[%s9080_s10 + $0xcc4] ss:$8 sps:$4 sm:$0xff]   ;;  %v7634_v63 = vld [vmem:[%s9080_s10 + $0xc0] ss:$8 sps:$4 sm:$0xff]  }
  0x7b   : > { %5380 = vmatpush1.bf16.msra.mxu1 %v7586_v18  ;;  %v9159_v56 = vld [vmem:[%s10149_s0 + $0x18] sm:$0xff]  ;;  %v7635_v0 = vld [vmem:[%s9080_s10 + $0xcc0] ss:$8 sps:$4 sm:$0xff]   ;;  %v7642_v6 = vld [vmem:[%s9080_s10 + $0xe4] ss:$8 sps:$4 sm:$0xff]   ;;  %s251_s6 = scalar_lea.vmem [#allocation6], %s6613_s12 }
  0x7c   : > { %5872 = vmatpush1.bf16.msra.mxu0 %v7587_v19  ;;  %5381 = vmatprep.subr.bf16.mxu1 %v7588_v20  ;;  %v1101_v54 = vrot.slane %v9150_v52, %v9143_v49  ;;  %v1248_v60 = vrot.slane %v9159_v56, %v9143_v49  ;;  %v7636_v1 = vld [vmem:[%s9080_s10 + $0xd4] ss:$8 sps:$4 sm:$0xff]   ;;  %v7640_v4 = vld [vmem:[%s9080_s10 + $0xd0] ss:$8 sps:$4 sm:$0xff]   ;;  %v7644_v7 = vld [vmem:[%s9080_s10 + $0xce4] ss:$8 sps:$4 sm:$0xff]  }
  0x7d   : > { %5873 = vmatprep.subr.bf16.mxu0 %v7590_v21  ;;  %v7638_v2 = vld [vmem:[%s9080_s10 + $0xcd4] ss:$8 sps:$4 sm:$0xff]   ;;  %v7641_v5 = vld [vmem:[%s9080_s10 + $0xcd0] ss:$8 sps:$4 sm:$0xff]   ;;  %v7646_v8 = vld [vmem:[%s9080_s10 + $0xe0] ss:$8 sps:$4 sm:$0xff]  }
  0x7e   : > { %v1109_v59 = vcombine.high %v1101_v54, %v1101_v54  ;;  %v1256_v62 = vcombine.high %v1248_v60, %v1248_v60  ;;  %v7647_v9 = vld [vmem:[%s9080_s10 + $0xce0] ss:$8 sps:$4 sm:$0xff]   ;;  %v7648_v10 = vld [vmem:[%s9080_s10 + $0xf4] ss:$8 sps:$4 sm:$0xff]   ;;  %v7652_v12 = vld [vmem:[%s9080_s10 + $0xf0] ss:$8 sps:$4 sm:$0xff]   ;;  %v9184_v16 = vrot.slane %v1101_v54, %v9143_v49  ;;  %v9187_v17 = vrot.slane %v1248_v60, %v9143_v49 }
  0x7f   : > { %5382 = vmatpush1.bf16.msra.mxu1 %v7592_v22  ;;  %v7650_v11 = vld [vmem:[%s9080_s10 + $0xcf4] ss:$8 sps:$4 sm:$0xff]   ;;  %v7653_v13 = vld [vmem:[%s9080_s10 + $0xcf0] ss:$8 sps:$4 sm:$0xff]   ;;  %v7657_v14 = vld [vmem:[%s9080_s10 + $0x104] ss:$8 sps:$4 sm:$0xff]  }
  0x80   : > { %5874 = vmatpush1.bf16.msra.mxu0 %v7593_v23  ;;  %5383 = vmatprep.subr.bf16.mxu1 %v7594_v24  ;;  %v1131_v61 = vrot.slane %v1109_v59, %v9143_v49  ;;  %v1278_v3 = vrot.slane %v1256_v62, %v9143_v49  ;;  %v7661_v15 = vld [vmem:[%s9080_s10 + $0xd04] ss:$8 sps:$4 sm:$0xff]   ;;  %v7655_v18 = vld [vmem:[%s9080_s10 + $0x100] ss:$8 sps:$4 sm:$0xff]   ;;  %v7664_v20 = vld [vmem:[%s9080_s10 + $0x114] ss:$8 sps:$4 sm:$0xff]  }
  0x81   : > { %5875 = vmatprep.subr.bf16.mxu0 %v7596_v25  ;;  %v7659_v19 = vld [vmem:[%s9080_s10 + $0xd00] ss:$8 sps:$4 sm:$0xff]   ;;  %v7667_v21 = vld [vmem:[%s9080_s10 + $0xd14] ss:$8 sps:$4 sm:$0xff]   ;;  %v7662_v24 = vld [vmem:[%s9080_s10 + $0x110] ss:$8 sps:$4 sm:$0xff]  }
  0x82   : > { %5403 = vmatprep.mubr.bf16.mxu1 %v1131_v61  ;;  %5895 = vmatprep.mubr.bf16.mxu0 %v1278_v3  ;;  %v1141_v22 = vcombine.high %v1131_v61, %v1131_v61  ;;  %v1288_v23 = vcombine.high %v1278_v3, %v1278_v3  ;;  %v7665_v25 = vld [vmem:[%s9080_s10 + $0xd10] ss:$8 sps:$4 sm:$0xff]   ;;  %v7680_v36 = vld [vmem:[%s9080_s10 + $0x140] ss:$8 sps:$4 sm:$0xff]   ;;  %v7688_v38 = vld [vmem:[%s9080_s10 + $0x154] ss:$8 sps:$4 sm:$0xff]  }
  0x83   : > { %5384 = vmatpush1.bf16.msra.mxu1 %v7598_v26  ;;  %v7670_v26 = vld [vmem:[%s9080_s10 + $0x124] ss:$8 sps:$4 sm:$0xff]   ;;  %v7683_v37 = vld [vmem:[%s9080_s10 + $0xd40] ss:$8 sps:$4 sm:$0xff]   ;;  %v7715_v59 = vld [vmem:[%s9080_s10 + $0xd94] ss:$8 sps:$4 sm:$0xff]  }
  0x84   : > { %5876 = vmatpush1.bf16.msra.mxu0 %v7599_v27  ;;  %5385 = vmatprep.subr.bf16.mxu1 %v7600_v28  ;;  %v7673_v27 = vld [vmem:[%s9080_s10 + $0xd24] ss:$8 sps:$4 sm:$0xff]   ;;  %v7668_v28 = vld [vmem:[%s9080_s10 + $0x120] ss:$8 sps:$4 sm:$0xff]   ;;  %v7710_v60 = vld [vmem:[%s9080_s10 + $0x190] ss:$8 sps:$4 sm:$0xff]  }
  0x85   : > { %5877 = vmatprep.subr.bf16.mxu0 %v7602_v29  ;;  %v7671_v29 = vld [vmem:[%s9080_s10 + $0xd20] ss:$8 sps:$4 sm:$0xff]   ;;  %v7694_v42 = vld [vmem:[%s9080_s10 + $0x164] ss:$8 sps:$4 sm:$0xff]   ;;  %v7713_v61 = vld [vmem:[%s9080_s10 + $0xd90] ss:$8 sps:$4 sm:$0xff]  }
  0x86   : > { %v7709_v54 = vld [vmem:[%s9080_s10 + $0xd84] ss:$8 sps:$4 sm:$0xff]   ;;  %v7727_v3 = vld [vmem:[%s9080_s10 + $0xdb4] ss:$8 sps:$4 sm:$0xff]  }
  0x87   : > { %5386 = vmatpush1.bf16.msra.mxu1 %v7604_v30  ;;  %v7676_v30 = vld [vmem:[%s9080_s10 + $0x134] ss:$8 sps:$4 sm:$0xff]   ;;  %v7718_v62 = vld [vmem:[%s9080_s10 + $0x1a4] ss:$8 sps:$4 sm:$0xff]  }
  0x88   : > { %5878 = vmatpush1.bf16.msra.mxu0 %v7605_v31  ;;  %5387 = vmatprep.subr.bf16.mxu1 %v7606_v32  ;;  %v7679_v31 = vld [vmem:[%s9080_s10 + $0xd34] ss:$8 sps:$4 sm:$0xff]   ;;  %v7674_v32 = vld [vmem:[%s9080_s10 + $0x130] ss:$8 sps:$4 sm:$0xff]  }
  0x89   : > { %5879 = vmatprep.subr.bf16.mxu0 %v7608_v33  ;;  %v7677_v33 = vld [vmem:[%s9080_s10 + $0xd30] ss:$8 sps:$4 sm:$0xff]  }
  0x8b   : > { %5388 = vmatpush1.bf16.msra.mxu1 %v7610_v34  ;;  %v7682_v34 = vld [vmem:[%s9080_s10 + $0x144] ss:$8 sps:$4 sm:$0xff]  }
  0x8c   : > { %5880 = vmatpush1.bf16.msra.mxu0 %v7611_v35  ;;  %5389 = vmatprep.subr.bf16.mxu1 %v7612_v39  ;;  %v7685_v35 = vld [vmem:[%s9080_s10 + $0xd44] ss:$8 sps:$4 sm:$0xff]   ;;  %v7691_v39 = vld [vmem:[%s9080_s10 + $0xd54] ss:$8 sps:$4 sm:$0xff]  }
  0x8d   : > { %5881 = vmatprep.subr.bf16.mxu0 %v7614_v40  ;;  %v7686_v40 = vld [vmem:[%s9080_s10 + $0x150] ss:$8 sps:$4 sm:$0xff]  }
  0x8f   : > { %5390 = vmatpush1.bf16.msra.mxu1 %v7616_v41  ;;  %v7689_v41 = vld [vmem:[%s9080_s10 + $0xd50] ss:$8 sps:$4 sm:$0xff]  }
  0x90   : > { %5882 = vmatpush1.bf16.msra.mxu0 %v7617_v44  ;;  %5391 = vmatprep.subr.bf16.mxu1 %v7618_v45  ;;  %v7697_v44 = vld [vmem:[%s9080_s10 + $0xd64] ss:$8 sps:$4 sm:$0xff]   ;;  %v7692_v45 = vld [vmem:[%s9080_s10 + $0x160] ss:$8 sps:$4 sm:$0xff]  }
  0x91   : > { %5883 = vmatprep.subr.bf16.mxu0 %v7620_v46  ;;  %v7695_v46 = vld [vmem:[%s9080_s10 + $0xd60] ss:$8 sps:$4 sm:$0xff]  }
  0x93   : > { %5392 = vmatpush1.bf16.msra.mxu1 %v7622_v47  ;;  %v7700_v47 = vld [vmem:[%s9080_s10 + $0x174] ss:$8 sps:$4 sm:$0xff]  }
  0x94   : > { %5884 = vmatpush1.bf16.msra.mxu0 %v7623_v48  ;;  %5393 = vmatprep.subr.bf16.mxu1 %v7624_v50  ;;  %v7703_v48 = vld [vmem:[%s9080_s10 + $0xd74] ss:$8 sps:$4 sm:$0xff]   ;;  %v7698_v50 = vld [vmem:[%s9080_s10 + $0x170] ss:$8 sps:$4 sm:$0xff]  }
  0x95   : > { %5885 = vmatprep.subr.bf16.mxu0 %v7626_v51  ;;  %v7701_v51 = vld [vmem:[%s9080_s10 + $0xd70] ss:$8 sps:$4 sm:$0xff]  }
  0x97   : > { %5394 = vmatpush1.bf16.msra.mxu1 %v7628_v53  ;;  %v7706_v53 = vld [vmem:[%s9080_s10 + $0x184] ss:$8 sps:$4 sm:$0xff]  }
  0x98   : > { %5886 = vmatpush1.bf16.msra.mxu0 %v7629_v55  ;;  %5395 = vmatprep.subr.bf16.mxu1 %v7630_v57  ;;  %v7704_v55 = vld [vmem:[%s9080_s10 + $0x180] ss:$8 sps:$4 sm:$0xff]  }
  0x99   : > { %5887 = vmatprep.subr.bf16.mxu0 %v7632_v58  ;;  %v7707_v57 = vld [vmem:[%s9080_s10 + $0xd80] ss:$8 sps:$4 sm:$0xff]   ;;  %v7712_v58 = vld [vmem:[%s9080_s10 + $0x194] ss:$8 sps:$4 sm:$0xff]  }
  0x9b   : > { %5396 = vmatpush1.bf16.msra.mxu1 %v7634_v63  ;;  %v7721_v63 = vld [vmem:[%s9080_s10 + $0xda4] ss:$8 sps:$4 sm:$0xff]  }
  0x9c   : > { %5888 = vmatpush1.bf16.msra.mxu0 %v7635_v0  ;;  %5397 = vmatprep.subr.bf16.mxu1 %v7636_v1  ;;  %v7716_v0 = vld [vmem:[%s9080_s10 + $0x1a0] ss:$8 sps:$4 sm:$0xff]  }
  0x9d   : > { %5889 = vmatprep.subr.bf16.mxu0 %v7638_v2  ;;  %v7719_v1 = vld [vmem:[%s9080_s10 + $0xda0] ss:$8 sps:$4 sm:$0xff]   ;;  %v7724_v2 = vld [vmem:[%s9080_s10 + $0x1b4] ss:$8 sps:$4 sm:$0xff]  }
  0x9f   : > { %5398 = vmatpush1.bf16.msra.mxu1 %v7640_v4  ;;  %v7722_v4 = vld [vmem:[%s9080_s10 + $0x1b0] ss:$8 sps:$4 sm:$0xff]  }
  0xa0   : > { %5890 = vmatpush1.bf16.msra.mxu0 %v7641_v5  ;;  %5399 = vmatprep.subr.bf16.mxu1 %v7642_v6  ;;  %v7725_v5 = vld [vmem:[%s9080_s10 + $0xdb0] ss:$8 sps:$4 sm:$0xff]   ;;  %v7730_v6 = vld [vmem:[%s9080_s10 + $0x1c4] ss:$8 sps:$4 sm:$0xff]  }
  0xa1   : > { %5891 = vmatprep.subr.bf16.mxu0 %v7644_v7  ;;  %v7733_v7 = vld [vmem:[%s9080_s10 + $0xdc4] ss:$8 sps:$4 sm:$0xff]  }
  0xa3   : > { %5400 = vmatpush1.bf16.msra.mxu1 %v7646_v8  ;;  %v7728_v8 = vld [vmem:[%s9080_s10 + $0x1c0] ss:$8 sps:$4 sm:$0xff]  }
  0xa4   : > { %5892 = vmatpush1.bf16.msra.mxu0 %v7647_v9  ;;  %5401 = vmatprep.subr.bf16.mxu1 %v7648_v10  ;;  %v7731_v9 = vld [vmem:[%s9080_s10 + $0xdc0] ss:$8 sps:$4 sm:$0xff]   ;;  %v7736_v10 = vld [vmem:[%s9080_s10 + $0x1d4] ss:$8 sps:$4 sm:$0xff]  }
  0xa5   : > { %5893 = vmatprep.subr.bf16.mxu0 %v7650_v11  ;;  %v7739_v11 = vld [vmem:[%s9080_s10 + $0xdd4] ss:$8 sps:$4 sm:$0xff]  }
  0xa7   : > { %5402 = vmatpush1.bf16.msra.mxu1 %v7652_v12  ;;  %v7734_v12 = vld [vmem:[%s9080_s10 + $0x1d0] ss:$8 sps:$4 sm:$0xff]  }
  0xa8   : > { %5894 = vmatpush1.bf16.msra.mxu0 %v7653_v13  ;;  %5412 = vmatprep.subr.bf16.mxu1 %v7657_v14  ;;  %v7737_v13 = vld [vmem:[%s9080_s10 + $0xdd0] ss:$8 sps:$4 sm:$0xff]   ;;  %v7742_v14 = vld [vmem:[%s9080_s10 + $0x1e4] ss:$8 sps:$4 sm:$0xff]  }
  0xa9   : > { %5904 = vmatprep.subr.bf16.mxu0 %v7661_v15  ;;  %v7745_v15 = vld [vmem:[%s9080_s10 + $0xde4] ss:$8 sps:$4 sm:$0xff]  }
  0xaa   : > { %5404 = vmatmul.mubr.bf16.vlgmr.msra.gmra.mrb[0].mxu1 %v9184_v16 }
  0xab   : > { %5896 = vmatmul.mubr.bf16.vlgmr.msra.gmra.mrb[0].mxu0 %v9187_v17  ;;  %5413 = vmatpush1.bf16.msra.mxu1 %v7655_v18  ;;  %v1094_v18 = vcombine.high %v9150_v52, %v9150_v52  ;;  %v7746_v52 = vld [vmem:[%s9080_s10 + $0x1f0] ss:$8 sps:$4 sm:$0xff]  }
  0xac   : > { %5905 = vmatpush1.bf16.msra.mxu0 %v7659_v19  ;;  %5414 = vmatprep.subr.bf16.mxu1 %v7664_v20  ;;  %v1241_v19 = vcombine.high %v9159_v56, %v9159_v56  ;;  %v7740_v20 = vld [vmem:[%s9080_s10 + $0x1e0] ss:$8 sps:$4 sm:$0xff]   ;;  %v7749_v56 = vld [vmem:[%s9080_s10 + $0xdf0] ss:$8 sps:$4 sm:$0xff]  }
  0xad   : > { %5906 = vmatprep.subr.bf16.mxu0 %v7667_v21  ;;  %5444 = vmatprep.mubr.bf16.mxu1 %v1141_v22  ;;  %v7743_v21 = vld [vmem:[%s9080_s10 + $0xde0] ss:$8 sps:$4 sm:$0xff]   ;;  %v7748_v22 = vld [vmem:[%s9080_s10 + $0x1f4] ss:$8 sps:$4 sm:$0xff]  }
  0xae   : > { %5936 = vmatprep.mubr.bf16.mxu0 %v1288_v23  ;;  %v7751_v23 = vld [vmem:[%s9080_s10 + $0xdf4] ss:$8 sps:$4 sm:$0xff]  }
  0xaf   : > { %5415 = vmatpush1.bf16.msra.mxu1 %v7662_v24  ;;  %v9256_v24 = vrot.slane %v1094_v18, %v9143_v49  ;;  %v7818_v18 = vld [vmem:[%s9080_s10 + $0x2b0] ss:$8 sps:$4 sm:$0xff]  }
  0xb0   : > { %5907 = vmatpush1.bf16.msra.mxu0 %v7665_v25  ;;  %5416 = vmatprep.subr.bf16.mxu1 %v7670_v26  ;;  %v9259_v25 = vrot.slane %v1241_v19, %v9143_v49  ;;  %v7754_v26 = vld [vmem:[%s9080_s10 + $0x204] ss:$8 sps:$4 sm:$0xff]   ;;  %v7821_v19 = vld [vmem:[%s9080_s10 + $0xeb0] ss:$8 sps:$4 sm:$0xff]  }
  0xb1   : > { %5908 = vmatprep.subr.bf16.mxu0 %v7673_v27  ;;  %v7757_v27 = vld [vmem:[%s9080_s10 + $0xe04] ss:$8 sps:$4 sm:$0xff]  }
  0xb3   : > { %5417 = vmatpush1.bf16.msra.mxu1 %v7668_v28  ;;  %v1110_v28 = vcombine.high %v9256_v24, %v9256_v24 }
  0xb4   : > { %5909 = vmatpush1.bf16.msra.mxu0 %v7671_v29  ;;  %5418 = vmatprep.subr.bf16.mxu1 %v7676_v30  ;;  %v1257_v29 = vcombine.high %v9259_v25, %v9259_v25  ;;  %v1139_v30 = vcombine.high %v9184_v16, %v9184_v16 }
  0xb5   : > { %5910 = vmatprep.subr.bf16.mxu0 %v7679_v31  ;;  %v1286_v31 = vcombine.high %v9187_v17, %v9187_v17  ;;  %v7758_v17 = vld [vmem:[%s9080_s10 + $0x210] ss:$8 sps:$4 sm:$0xff]  }
  0xb6   : > { %v9281_v16 = vrot.slane %v1257_v29, %v9143_v49  ;;  %v7841_v29 = vld [vmem:[%s9080_s10 + $0xee4] ss:$8 sps:$4 sm:$0xff]  }
  0xb7   : > { %5419 = vmatpush1.bf16.msra.mxu1 %v7674_v32  ;;  %v7752_v32 = vld [vmem:[%s9080_s10 + $0x200] ss:$8 sps:$4 sm:$0xff]  }
  0xb8   : > { %5911 = vmatpush1.bf16.msra.mxu0 %v7677_v33  ;;  %5420 = vmatprep.subr.bf16.mxu1 %v7682_v34  ;;  %v7755_v33 = vld [vmem:[%s9080_s10 + $0xe00] ss:$8 sps:$4 sm:$0xff]   ;;  %v7760_v34 = vld [vmem:[%s9080_s10 + $0x214] ss:$8 sps:$4 sm:$0xff]  }
  0xb9   : > { %5912 = vmatprep.subr.bf16.mxu0 %v7685_v35  ;;  %v7763_v35 = vld [vmem:[%s9080_s10 + $0xe14] ss:$8 sps:$4 sm:$0xff]  }
  0xbb   : > { %5421 = vmatpush1.bf16.msra.mxu1 %v7680_v36  ;;  %v9278_v36 = vrot.slane %v1110_v28, %v9143_v49  ;;  %v7838_v28 = vld [vmem:[%s9080_s10 + $0x2e4] ss:$8 sps:$4 sm:$0xff]  }
  0xbc   : > { %5913 = vmatpush1.bf16.msra.mxu0 %v7683_v37  ;;  %5422 = vmatprep.subr.bf16.mxu1 %v7688_v38  ;;  %v7761_v37 = vld [vmem:[%s9080_s10 + $0xe10] ss:$8 sps:$4 sm:$0xff]   ;;  %v7766_v38 = vld [vmem:[%s9080_s10 + $0x224] ss:$8 sps:$4 sm:$0xff]  }
  0xbd   : > { %5914 = vmatprep.subr.bf16.mxu0 %v7691_v39  ;;  %v7769_v39 = vld [vmem:[%s9080_s10 + $0xe24] ss:$8 sps:$4 sm:$0xff]  }
  0xbf   : > { %5423 = vmatpush1.bf16.msra.mxu1 %v7686_v40  ;;  %v7764_v40 = vld [vmem:[%s9080_s10 + $0x220] ss:$8 sps:$4 sm:$0xff]  }
  0xc0   : > { %5915 = vmatpush1.bf16.msra.mxu0 %v7689_v41  ;;  %5424 = vmatprep.subr.bf16.mxu1 %v7694_v42  ;;  %v7767_v41 = vld [vmem:[%s9080_s10 + $0xe20] ss:$8 sps:$4 sm:$0xff]   ;;  %v7772_v42 = vld [vmem:[%s9080_s10 + $0x234] ss:$8 sps:$4 sm:$0xff]  }
  0xc1   : > { %5916 = vmatprep.subr.bf16.mxu0 %v7697_v44  ;;  %v7775_v44 = vld [vmem:[%s9080_s10 + $0xe34] ss:$8 sps:$4 sm:$0xff]  }
  0xc3   : > { %5425 = vmatpush1.bf16.msra.mxu1 %v7692_v45  ;;  %v7770_v45 = vld [vmem:[%s9080_s10 + $0x230] ss:$8 sps:$4 sm:$0xff]  }
  0xc4   : > { %5917 = vmatpush1.bf16.msra.mxu0 %v7695_v46  ;;  %5426 = vmatprep.subr.bf16.mxu1 %v7700_v47  ;;  %v7773_v46 = vld [vmem:[%s9080_s10 + $0xe30] ss:$8 sps:$4 sm:$0xff]   ;;  %v7778_v47 = vld [vmem:[%s9080_s10 + $0x244] ss:$8 sps:$4 sm:$0xff]  }
  0xc5   : > { %5918 = vmatprep.subr.bf16.mxu0 %v7703_v48  ;;  %v7781_v48 = vld [vmem:[%s9080_s10 + $0xe44] ss:$8 sps:$4 sm:$0xff]  }
  0xc7   : > { %5427 = vmatpush1.bf16.msra.mxu1 %v7698_v50  ;;  %v7776_v50 = vld [vmem:[%s9080_s10 + $0x240] ss:$8 sps:$4 sm:$0xff]  }
  0xc8   : > { %5919 = vmatpush1.bf16.msra.mxu0 %v7701_v51  ;;  %5428 = vmatprep.subr.bf16.mxu1 %v7706_v53  ;;  %v7779_v51 = vld [vmem:[%s9080_s10 + $0xe40] ss:$8 sps:$4 sm:$0xff]   ;;  %v7784_v53 = vld [vmem:[%s9080_s10 + $0x254] ss:$8 sps:$4 sm:$0xff]  }
  0xc9   : > { %5920 = vmatprep.subr.bf16.mxu0 %v7709_v54  ;;  %v7787_v54 = vld [vmem:[%s9080_s10 + $0xe54] ss:$8 sps:$4 sm:$0xff]  }
  0xcb   : > { %5429 = vmatpush1.bf16.msra.mxu1 %v7704_v55  ;;  %v7782_v55 = vld [vmem:[%s9080_s10 + $0x250] ss:$8 sps:$4 sm:$0xff]  }
  0xcc   : > { %5921 = vmatpush1.bf16.msra.mxu0 %v7707_v57  ;;  %5430 = vmatprep.subr.bf16.mxu1 %v7712_v58  ;;  %v7785_v57 = vld [vmem:[%s9080_s10 + $0xe50] ss:$8 sps:$4 sm:$0xff]   ;;  %v7790_v58 = vld [vmem:[%s9080_s10 + $0x264] ss:$8 sps:$4 sm:$0xff]  }
  0xcd   : > { %5922 = vmatprep.subr.bf16.mxu0 %v7715_v59  ;;  %v7793_v59 = vld [vmem:[%s9080_s10 + $0xe64] ss:$8 sps:$4 sm:$0xff]  }
  0xcf   : > { %5431 = vmatpush1.bf16.msra.mxu1 %v7710_v60  ;;  %v7788_v60 = vld [vmem:[%s9080_s10 + $0x260] ss:$8 sps:$4 sm:$0xff]  }
  0xd0   : > { %5923 = vmatpush1.bf16.msra.mxu0 %v7713_v61  ;;  %5432 = vmatprep.subr.bf16.mxu1 %v7718_v62  ;;  %v7791_v61 = vld [vmem:[%s9080_s10 + $0xe60] ss:$8 sps:$4 sm:$0xff]   ;;  %v7796_v62 = vld [vmem:[%s9080_s10 + $0x274] ss:$8 sps:$4 sm:$0xff]  }
  0xd1   : > { %5924 = vmatprep.subr.bf16.mxu0 %v7721_v63  ;;  %v7799_v63 = vld [vmem:[%s9080_s10 + $0xe74] ss:$8 sps:$4 sm:$0xff]  }
  0xd3   : > { %5433 = vmatpush1.bf16.msra.mxu1 %v7716_v0  ;;  %v7794_v0 = vld [vmem:[%s9080_s10 + $0x270] ss:$8 sps:$4 sm:$0xff]  }
  0xd4   : > { %5925 = vmatpush1.bf16.msra.mxu0 %v7719_v1  ;;  %5434 = vmatprep.subr.bf16.mxu1 %v7724_v2  ;;  %v7797_v1 = vld [vmem:[%s9080_s10 + $0xe70] ss:$8 sps:$4 sm:$0xff]   ;;  %v7802_v2 = vld [vmem:[%s9080_s10 + $0x284] ss:$8 sps:$4 sm:$0xff]  }
  0xd5   : > { %5926 = vmatprep.subr.bf16.mxu0 %v7727_v3  ;;  %v7805_v3 = vld [vmem:[%s9080_s10 + $0xe84] ss:$8 sps:$4 sm:$0xff]  }
  0xd7   : > { %5435 = vmatpush1.bf16.msra.mxu1 %v7722_v4  ;;  %v7800_v4 = vld [vmem:[%s9080_s10 + $0x280] ss:$8 sps:$4 sm:$0xff]  }
  0xd8   : > { %5927 = vmatpush1.bf16.msra.mxu0 %v7725_v5  ;;  %5436 = vmatprep.subr.bf16.mxu1 %v7730_v6  ;;  %v7803_v5 = vld [vmem:[%s9080_s10 + $0xe80] ss:$8 sps:$4 sm:$0xff]   ;;  %v7808_v6 = vld [vmem:[%s9080_s10 + $0x294] ss:$8 sps:$4 sm:$0xff]  }
  0xd9   : > { %5928 = vmatprep.subr.bf16.mxu0 %v7733_v7  ;;  %v7811_v7 = vld [vmem:[%s9080_s10 + $0xe94] ss:$8 sps:$4 sm:$0xff]  }
  0xdb   : > { %5437 = vmatpush1.bf16.msra.mxu1 %v7728_v8  ;;  %v7806_v8 = vld [vmem:[%s9080_s10 + $0x290] ss:$8 sps:$4 sm:$0xff]  }
  0xdc   : > { %5929 = vmatpush1.bf16.msra.mxu0 %v7731_v9  ;;  %5438 = vmatprep.subr.bf16.mxu1 %v7736_v10  ;;  %v7809_v9 = vld [vmem:[%s9080_s10 + $0xe90] ss:$8 sps:$4 sm:$0xff]   ;;  %v7814_v10 = vld [vmem:[%s9080_s10 + $0x2a4] ss:$8 sps:$4 sm:$0xff]  }
  0xdd   : > { %5930 = vmatprep.subr.bf16.mxu0 %v7739_v11  ;;  %v7817_v11 = vld [vmem:[%s9080_s10 + $0xea4] ss:$8 sps:$4 sm:$0xff]  }
  0xdf   : > { %5439 = vmatpush1.bf16.msra.mxu1 %v7734_v12  ;;  %v7812_v12 = vld [vmem:[%s9080_s10 + $0x2a0] ss:$8 sps:$4 sm:$0xff]  }
  0xe0   : > { %5931 = vmatpush1.bf16.msra.mxu0 %v7737_v13  ;;  %5440 = vmatprep.subr.bf16.mxu1 %v7742_v14  ;;  %v7815_v13 = vld [vmem:[%s9080_s10 + $0xea0] ss:$8 sps:$4 sm:$0xff]   ;;  %v7820_v14 = vld [vmem:[%s9080_s10 + $0x2b4] ss:$8 sps:$4 sm:$0xff]  }
  0xe1   : > { %5932 = vmatprep.subr.bf16.mxu0 %v7745_v15  ;;  %v7823_v15 = vld [vmem:[%s9080_s10 + $0xeb4] ss:$8 sps:$4 sm:$0xff]  }
  0xe3   : > { %5441 = vmatpush1.bf16.msra.mxu1 %v7740_v20  ;;  %v7826_v20 = vld [vmem:[%s9080_s10 + $0x2c4] ss:$8 sps:$4 sm:$0xff]  }
  0xe4   : > { %5933 = vmatpush1.bf16.msra.mxu0 %v7743_v21  ;;  %5442 = vmatprep.subr.bf16.mxu1 %v7748_v22  ;;  %v7829_v21 = vld [vmem:[%s9080_s10 + $0xec4] ss:$8 sps:$4 sm:$0xff]   ;;  %v7824_v22 = vld [vmem:[%s9080_s10 + $0x2c0] ss:$8 sps:$4 sm:$0xff]  }
  0xe5   : > { %5934 = vmatprep.subr.bf16.mxu0 %v7751_v23  ;;  %v7827_v23 = vld [vmem:[%s9080_s10 + $0xec0] ss:$8 sps:$4 sm:$0xff]  }
  0xe7   : > { %5443 = vmatpush1.bf16.msra.mxu1 %v7746_v52  ;;  %v7832_v52 = vld [vmem:[%s9080_s10 + $0x2d4] ss:$8 sps:$4 sm:$0xff]  }
  0xe8   : > { %5935 = vmatpush1.bf16.msra.mxu0 %v7749_v56  ;;  %5453 = vmatprep.subr.bf16.mxu1 %v7754_v26  ;;  %v7835_v56 = vld [vmem:[%s9080_s10 + $0xed4] ss:$8 sps:$4 sm:$0xff]   ;;  %v7830_v26 = vld [vmem:[%s9080_s10 + $0x2d0] ss:$8 sps:$4 sm:$0xff]  }
  0xe9   : > { %5945 = vmatprep.subr.bf16.mxu0 %v7757_v27  ;;  %v7833_v27 = vld [vmem:[%s9080_s10 + $0xed0] ss:$8 sps:$4 sm:$0xff]  }
  0xea   : > { %5445 = vmatmul.mubr.bf16.vlgmr.msra.gmra.mrb[0].mxu1 %v1139_v30  ;;  %v7836_v30 = vld [vmem:[%s9080_s10 + $0x2e0] ss:$8 sps:$4 sm:$0xff]  }
  0xeb   : > { %5937 = vmatmul.mubr.bf16.vlgmr.msra.gmra.mrb[0].mxu0 %v1286_v31  ;;  %5454 = vmatpush1.bf16.msra.mxu1 %v7752_v32  ;;  %v7839_v31 = vld [vmem:[%s9080_s10 + $0xee0] ss:$8 sps:$4 sm:$0xff]   ;;  %v7844_v32 = vld [vmem:[%s9080_s10 + $0x2f4] ss:$8 sps:$4 sm:$0xff]  }
  0xec   : > { %5946 = vmatpush1.bf16.msra.mxu0 %v7755_v33  ;;  %5455 = vmatprep.subr.bf16.mxu1 %v7760_v34  ;;  %v7847_v33 = vld [vmem:[%s9080_s10 + $0xef4] ss:$8 sps:$4 sm:$0xff]   ;;  %v7842_v34 = vld [vmem:[%s9080_s10 + $0x2f0] ss:$8 sps:$4 sm:$0xff]  }
  0xed   : > { %5947 = vmatprep.subr.bf16.mxu0 %v7763_v35  ;;  %5485 = vmatprep.mubr.bf16.mxu1 %v9278_v36  ;;  %v7845_v35 = vld [vmem:[%s9080_s10 + $0xef0] ss:$8 sps:$4 sm:$0xff]  }
  0xee   : > { %5977 = vmatprep.mubr.bf16.mxu0 %v9281_v16 }
  0xef   : > { %5456 = vmatpush1.bf16.msra.mxu1 %v7758_v17  ;;  %v7850_v17 = vld [vmem:[%s9080_s10 + $0x304] ss:$8 sps:$4 sm:$0xff]  }
  0xf0   : > { %5948 = vmatpush1.bf16.msra.mxu0 %v7761_v37  ;;  %5457 = vmatprep.subr.bf16.mxu1 %v7766_v38  ;;  %v7853_v37 = vld [vmem:[%s9080_s10 + $0xf04] ss:$8 sps:$4 sm:$0xff]   ;;  %v9347_v38 = vrot.slane %v9256_v24, %v9143_v49  ;;  %v1142_v24 = vcombine.high %v9278_v36, %v9278_v36 }
  0xf1   : > { %5949 = vmatprep.subr.bf16.mxu0 %v7769_v39  ;;  %v9351_v39 = vrot.slane %v9259_v25, %v9143_v49  ;;  %v7854_v25 = vld [vmem:[%s9080_s10 + $0x310] ss:$8 sps:$4 sm:$0xff]   ;;  %v7862_v36 = vld [vmem:[%s9080_s10 + $0x324] ss:$8 sps:$4 sm:$0xff]  }
  0xf3   : > { %5458 = vmatpush1.bf16.msra.mxu1 %v7764_v40  ;;  %v7848_v40 = vld [vmem:[%s9080_s10 + $0x300] ss:$8 sps:$4 sm:$0xff]  }
  0xf4   : > { %5950 = vmatpush1.bf16.msra.mxu0 %v7767_v41  ;;  %5459 = vmatprep.subr.bf16.mxu1 %v7772_v42  ;;  %v7851_v41 = vld [vmem:[%s9080_s10 + $0xf00] ss:$8 sps:$4 sm:$0xff]   ;;  %v7856_v42 = vld [vmem:[%s9080_s10 + $0x314] ss:$8 sps:$4 sm:$0xff]  }
  0xf5   : > { %5951 = vmatprep.subr.bf16.mxu0 %v7775_v44  ;;  %v7859_v44 = vld [vmem:[%s9080_s10 + $0xf14] ss:$8 sps:$4 sm:$0xff]  }
  0xf7   : > { %5460 = vmatpush1.bf16.msra.mxu1 %v7770_v45  ;;  %v1289_v45 = vcombine.high %v9281_v16, %v9281_v16  ;;  %v7860_v16 = vld [vmem:[%s9080_s10 + $0x320] ss:$8 sps:$4 sm:$0xff]  }
  0xf8   : > { %5952 = vmatpush1.bf16.msra.mxu0 %v7773_v46  ;;  %5461 = vmatprep.subr.bf16.mxu1 %v7778_v47  ;;  %v7857_v46 = vld [vmem:[%s9080_s10 + $0xf10] ss:$8 sps:$4 sm:$0xff]   ;;  %v7865_v47 = vld [vmem:[%s9080_s10 + $0xf24] ss:$8 sps:$4 sm:$0xff]  }
  0xf9   : > { %5953 = vmatprep.subr.bf16.mxu0 %v7781_v48  ;;  %v7863_v48 = vld [vmem:[%s9080_s10 + $0xf20] ss:$8 sps:$4 sm:$0xff]  }
  0xfb   : > { %5462 = vmatpush1.bf16.msra.mxu1 %v7776_v50  ;;  %v7868_v50 = vld [vmem:[%s9080_s10 + $0x334] ss:$8 sps:$4 sm:$0xff]  }
  0xfc   : > { %5954 = vmatpush1.bf16.msra.mxu0 %v7779_v51  ;;  %5463 = vmatprep.subr.bf16.mxu1 %v7784_v53  ;;  %v7871_v51 = vld [vmem:[%s9080_s10 + $0xf34] ss:$8 sps:$4 sm:$0xff]   ;;  %v7866_v53 = vld [vmem:[%s9080_s10 + $0x330] ss:$8 sps:$4 sm:$0xff]  }
  0xfd   : > { %5955 = vmatprep.subr.bf16.mxu0 %v7787_v54  ;;  %v7869_v54 = vld [vmem:[%s9080_s10 + $0xf30] ss:$8 sps:$4 sm:$0xff]  }
  0xff   : > { %5464 = vmatpush1.bf16.msra.mxu1 %v7782_v55  ;;  %v7874_v55 = vld [vmem:[%s9080_s10 + $0x344] ss:$8 sps:$4 sm:$0xff]  }
 0x100   : > { %5956 = vmatpush1.bf16.msra.mxu0 %v7785_v57  ;;  %5465 = vmatprep.subr.bf16.mxu1 %v7790_v58  ;;  %v7877_v57 = vld [vmem:[%s9080_s10 + $0xf44] ss:$8 sps:$4 sm:$0xff]   ;;  %v7872_v58 = vld [vmem:[%s9080_s10 + $0x340] ss:$8 sps:$4 sm:$0xff]  }
 0x101   : > { %5957 = vmatprep.subr.bf16.mxu0 %v7793_v59  ;;  %v7875_v59 = vld [vmem:[%s9080_s10 + $0xf40] ss:$8 sps:$4 sm:$0xff]  }
 0x103   : > { %5466 = vmatpush1.bf16.msra.mxu1 %v7788_v60  ;;  %v7880_v60 = vld [vmem:[%s9080_s10 + $0x354] ss:$8 sps:$4 sm:$0xff]  }
 0x104   : > { %5958 = vmatpush1.bf16.msra.mxu0 %v7791_v61  ;;  %5467 = vmatprep.subr.bf16.mxu1 %v7796_v62  ;;  %v7883_v61 = vld [vmem:[%s9080_s10 + $0xf54] ss:$8 sps:$4 sm:$0xff]   ;;  %v7878_v62 = vld [vmem:[%s9080_s10 + $0x350] ss:$8 sps:$4 sm:$0xff]  }
 0x105   : > { %5959 = vmatprep.subr.bf16.mxu0 %v7799_v63  ;;  %v7881_v63 = vld [vmem:[%s9080_s10 + $0xf50] ss:$8 sps:$4 sm:$0xff]  }
 0x107   : > { %5468 = vmatpush1.bf16.msra.mxu1 %v7794_v0  ;;  %v7886_v0 = vld [vmem:[%s9080_s10 + $0x364] ss:$8 sps:$4 sm:$0xff]  }
 0x108   : > { %5960 = vmatpush1.bf16.msra.mxu0 %v7797_v1  ;;  %5469 = vmatprep.subr.bf16.mxu1 %v7802_v2  ;;  %v7889_v1 = vld [vmem:[%s9080_s10 + $0xf64] ss:$8 sps:$4 sm:$0xff]   ;;  %v7884_v2 = vld [vmem:[%s9080_s10 + $0x360] ss:$8 sps:$4 sm:$0xff]  }
 0x109   : > { %5961 = vmatprep.subr.bf16.mxu0 %v7805_v3  ;;  %v7887_v3 = vld [vmem:[%s9080_s10 + $0xf60] ss:$8 sps:$4 sm:$0xff]  }
 0x10b   : > { %5470 = vmatpush1.bf16.msra.mxu1 %v7800_v4  ;;  %v7892_v4 = vld [vmem:[%s9080_s10 + $0x374] ss:$8 sps:$4 sm:$0xff]  }
 0x10c   : > { %5962 = vmatpush1.bf16.msra.mxu0 %v7803_v5  ;;  %5471 = vmatprep.subr.bf16.mxu1 %v7808_v6  ;;  %v7895_v5 = vld [vmem:[%s9080_s10 + $0xf74] ss:$8 sps:$4 sm:$0xff]   ;;  %v7890_v6 = vld [vmem:[%s9080_s10 + $0x370] ss:$8 sps:$4 sm:$0xff]  }
 0x10d   : > { %5963 = vmatprep.subr.bf16.mxu0 %v7811_v7  ;;  %v7893_v7 = vld [vmem:[%s9080_s10 + $0xf70] ss:$8 sps:$4 sm:$0xff]  }
 0x10f   : > { %5472 = vmatpush1.bf16.msra.mxu1 %v7806_v8  ;;  %v7898_v8 = vld [vmem:[%s9080_s10 + $0x384] ss:$8 sps:$4 sm:$0xff]  }
 0x110   : > { %5964 = vmatpush1.bf16.msra.mxu0 %v7809_v9  ;;  %5473 = vmatprep.subr.bf16.mxu1 %v7814_v10  ;;  %v7901_v9 = vld [vmem:[%s9080_s10 + $0xf84] ss:$8 sps:$4 sm:$0xff]   ;;  %v7896_v10 = vld [vmem:[%s9080_s10 + $0x380] ss:$8 sps:$4 sm:$0xff]  }
 0x111   : > { %5965 = vmatprep.subr.bf16.mxu0 %v7817_v11  ;;  %v7899_v11 = vld [vmem:[%s9080_s10 + $0xf80] ss:$8 sps:$4 sm:$0xff]  }
 0x113   : > { %5474 = vmatpush1.bf16.msra.mxu1 %v7812_v12  ;;  %v7904_v12 = vld [vmem:[%s9080_s10 + $0x394] ss:$8 sps:$4 sm:$0xff]  }
 0x114   : > { %5966 = vmatpush1.bf16.msra.mxu0 %v7815_v13  ;;  %5475 = vmatprep.subr.bf16.mxu1 %v7820_v14  ;;  %v7907_v13 = vld [vmem:[%s9080_s10 + $0xf94] ss:$8 sps:$4 sm:$0xff]   ;;  %v7902_v14 = vld [vmem:[%s9080_s10 + $0x390] ss:$8 sps:$4 sm:$0xff]  }
 0x115   : > { %5967 = vmatprep.subr.bf16.mxu0 %v7823_v15  ;;  %v7905_v15 = vld [vmem:[%s9080_s10 + $0xf90] ss:$8 sps:$4 sm:$0xff]  }
 0x117   : > { %5476 = vmatpush1.bf16.msra.mxu1 %v7818_v18  ;;  %v7910_v18 = vld [vmem:[%s9080_s10 + $0x3a4] ss:$8 sps:$4 sm:$0xff]  }
 0x118   : > { %5968 = vmatpush1.bf16.msra.mxu0 %v7821_v19  ;;  %5477 = vmatprep.subr.bf16.mxu1 %v7826_v20  ;;  %v7913_v19 = vld [vmem:[%s9080_s10 + $0xfa4] ss:$8 sps:$4 sm:$0xff]   ;;  %v7908_v20 = vld [vmem:[%s9080_s10 + $0x3a0] ss:$8 sps:$4 sm:$0xff]  }
 0x119   : > { %5969 = vmatprep.subr.bf16.mxu0 %v7829_v21  ;;  %v7911_v21 = vld [vmem:[%s9080_s10 + $0xfa0] ss:$8 sps:$4 sm:$0xff]  }
 0x11b   : > { %5478 = vmatpush1.bf16.msra.mxu1 %v7824_v22  ;;  %v7916_v22 = vld [vmem:[%s9080_s10 + $0x3b4] ss:$8 sps:$4 sm:$0xff]  }
 0x11c   : > { %5970 = vmatpush1.bf16.msra.mxu0 %v7827_v23  ;;  %5479 = vmatprep.subr.bf16.mxu1 %v7832_v52  ;;  %v7919_v23 = vld [vmem:[%s9080_s10 + $0xfb4] ss:$8 sps:$4 sm:$0xff]   ;;  %v7914_v52 = vld [vmem:[%s9080_s10 + $0x3b0] ss:$8 sps:$4 sm:$0xff]  }
 0x11d   : > { %5971 = vmatprep.subr.bf16.mxu0 %v7835_v56  ;;  %v7917_v56 = vld [vmem:[%s9080_s10 + $0xfb0] ss:$8 sps:$4 sm:$0xff]  }
 0x11f   : > { %5480 = vmatpush1.bf16.msra.mxu1 %v7830_v26  ;;  %v7922_v26 = vld [vmem:[%s9080_s10 + $0x3c4] ss:$8 sps:$4 sm:$0xff]  }
 0x120   : > { %5972 = vmatpush1.bf16.msra.mxu0 %v7833_v27  ;;  %5481 = vmatprep.subr.bf16.mxu1 %v7838_v28  ;;  %v7925_v27 = vld [vmem:[%s9080_s10 + $0xfc4] ss:$8 sps:$4 sm:$0xff]   ;;  %v7920_v28 = vld [vmem:[%s9080_s10 + $0x3c0] ss:$8 sps:$4 sm:$0xff]  }
 0x121   : > { %5973 = vmatprep.subr.bf16.mxu0 %v7841_v29  ;;  %v7923_v29 = vld [vmem:[%s9080_s10 + $0xfc0] ss:$8 sps:$4 sm:$0xff]  }
 0x123   : > { %5482 = vmatpush1.bf16.msra.mxu1 %v7836_v30  ;;  %v7928_v30 = vld [vmem:[%s9080_s10 + $0x3d4] ss:$8 sps:$4 sm:$0xff]  }
 0x124   : > { %5974 = vmatpush1.bf16.msra.mxu0 %v7839_v31  ;;  %5483 = vmatprep.subr.bf16.mxu1 %v7844_v32  ;;  %v7931_v31 = vld [vmem:[%s9080_s10 + $0xfd4] ss:$8 sps:$4 sm:$0xff]   ;;  %v7926_v32 = vld [vmem:[%s9080_s10 + $0x3d0] ss:$8 sps:$4 sm:$0xff]  }
 0x125   : > { %5975 = vmatprep.subr.bf16.mxu0 %v7847_v33  ;;  %v7929_v33 = vld [vmem:[%s9080_s10 + $0xfd0] ss:$8 sps:$4 sm:$0xff]  }
 0x127   : > { %5484 = vmatpush1.bf16.msra.mxu1 %v7842_v34  ;;  %v7934_v34 = vld [vmem:[%s9080_s10 + $0x3e4] ss:$8 sps:$4 sm:$0xff]  }
 0x128   : > { %5976 = vmatpush1.bf16.msra.mxu0 %v7845_v35  ;;  %5494 = vmatprep.subr.bf16.mxu1 %v7850_v17  ;;  %v7937_v35 = vld [vmem:[%s9080_s10 + $0xfe4] ss:$8 sps:$4 sm:$0xff]   ;;  %v7932_v17 = vld [vmem:[%s9080_s10 + $0x3e0] ss:$8 sps:$4 sm:$0xff]  }
 0x129   : > { %5986 = vmatprep.subr.bf16.mxu0 %v7853_v37  ;;  %v7935_v37 = vld [vmem:[%s9080_s10 + $0xfe0] ss:$8 sps:$4 sm:$0xff]  }
 0x12a   : > { %5486 = vmatmul.mubr.bf16.vlgmr.msra.gmra.mrb[0].mxu1 %v9347_v38 }
 0x12b   : > { %5978 = vmatmul.mubr.bf16.vlgmr.msra.gmra.mrb[0].mxu0 %v9351_v39  ;;  %5495 = vmatpush1.bf16.msra.mxu1 %v7848_v40  ;;  %v9420_v40 = vld.sshfl [vmem:[%s10149_s0 + $0x8] sm:$0xff pattern:$0x75316420] }
 0x12c   : > { %5987 = vmatpush1.bf16.msra.mxu0 %v7851_v41  ;;  %5496 = vmatprep.subr.bf16.mxu1 %v7856_v42  ;;  %v9425_v41 = vld.sshfl [vmem:[%s10149_s0 + $0x20] sm:$0xff pattern:$0x75316420]  ;;  %v7940_v42 = vld [vmem:[%s9080_s10 + $0x3f4] ss:$8 sps:$4 sm:$0xff]  }
 0x12d   : > { %5988 = vmatprep.subr.bf16.mxu0 %v7859_v44  ;;  %5526 = vmatprep.mubr.bf16.mxu1 %v1142_v24  ;;  %v7943_v44 = vld [vmem:[%s9080_s10 + $0xff4] ss:$8 sps:$4 sm:$0xff]   ;;  %v7938_v24 = vld [vmem:[%s9080_s10 + $0x3f0] ss:$8 sps:$4 sm:$0xff]  }
 0x12e   : > { %6018 = vmatprep.mubr.bf16.mxu0 %v1289_v45  ;;  %v7941_v45 = vld [vmem:[%s9080_s10 + $0xff0] ss:$8 sps:$4 sm:$0xff]  }
 0x12f   : > { %5497 = vmatpush1.bf16.msra.mxu1 %v7854_v25  ;;  %v7946_v25 = vld [vmem:[%s9080_s10 + $0x404] ss:$8 sps:$4 sm:$0xff]  }
 0x130   : > { %5989 = vmatpush1.bf16.msra.mxu0 %v7857_v46  ;;  %5498 = vmatprep.subr.bf16.mxu1 %v7862_v36  ;;  %v7949_v46 = vld [vmem:[%s9080_s10 + $0x1004] ss:$8 sps:$4 sm:$0xff]   ;;  %v1158_v36 = vcombine.high %v9420_v40, %v9420_v40 }
 0x131   : > { %5990 = vmatprep.subr.bf16.mxu0 %v7865_v47  ;;  %v1305_v47 = vcombine.high %v9425_v41, %v9425_v41 }
 0x133   : > { %5499 = vmatpush1.bf16.msra.mxu1 %v7860_v16  ;;  %v7944_v16 = vld [vmem:[%s9080_s10 + $0x400] ss:$8 sps:$4 sm:$0xff]  }
 0x134   : > { %5991 = vmatpush1.bf16.msra.mxu0 %v7863_v48  ;;  %5500 = vmatprep.subr.bf16.mxu1 %v7868_v50  ;;  %v7947_v48 = vld [vmem:[%s9080_s10 + $0x1000] ss:$8 sps:$4 sm:$0xff]   ;;  %v1140_v50 = vcombine.high %v9347_v38, %v9347_v38  ;;  %v7950_v38 = vld [vmem:[%s9080_s10 + $0x410] ss:$8 sps:$4 sm:$0xff]  }
 0x135   : > { %5992 = vmatprep.subr.bf16.mxu0 %v7871_v51  ;;  %v1287_v51 = vcombine.high %v9351_v39, %v9351_v39  ;;  %v7953_v39 = vld [vmem:[%s9080_s10 + $0x1010] ss:$8 sps:$4 sm:$0xff]  }
 0x137   : > { %5501 = vmatpush1.bf16.msra.mxu1 %v7866_v53  ;;  %v7952_v53 = vld [vmem:[%s9080_s10 + $0x414] ss:$8 sps:$4 sm:$0xff]  }
 0x138   : > { %5993 = vmatpush1.bf16.msra.mxu0 %v7869_v54  ;;  %5502 = vmatprep.subr.bf16.mxu1 %v7874_v55  ;;  %v7955_v54 = vld [vmem:[%s9080_s10 + $0x1014] ss:$8 sps:$4 sm:$0xff]   ;;  %v9446_v55 = vrot.slane %v1158_v36, %v9143_v49  ;;  %v8030_v36 = vld [vmem:[%s9080_s10 + $0x4e4] ss:$8 sps:$4 sm:$0xff]  }
 0x139   : > { %5994 = vmatprep.subr.bf16.mxu0 %v7877_v57  ;;  %v9449_v57 = vrot.slane %v1305_v47, %v9143_v49  ;;  %v8033_v47 = vld [vmem:[%s9080_s10 + $0x10e4] ss:$8 sps:$4 sm:$0xff]  }
 0x13b   : > { %5503 = vmatpush1.bf16.msra.mxu1 %v7872_v58  ;;  %v7958_v58 = vld [vmem:[%s9080_s10 + $0x424] ss:$8 sps:$4 sm:$0xff]  }
 0x13c   : > { %5995 = vmatpush1.bf16.msra.mxu0 %v7875_v59  ;;  %5504 = vmatprep.subr.bf16.mxu1 %v7880_v60  ;;  %v7961_v59 = vld [vmem:[%s9080_s10 + $0x1024] ss:$8 sps:$4 sm:$0xff]   ;;  %v7956_v60 = vld [vmem:[%s9080_s10 + $0x420] ss:$8 sps:$4 sm:$0xff]  }
 0x13d   : > { %5996 = vmatprep.subr.bf16.mxu0 %v7883_v61  ;;  %v7959_v61 = vld [vmem:[%s9080_s10 + $0x1020] ss:$8 sps:$4 sm:$0xff]  }
 0x13f   : > { %5505 = vmatpush1.bf16.msra.mxu1 %v7878_v62  ;;  %v7964_v62 = vld [vmem:[%s9080_s10 + $0x434] ss:$8 sps:$4 sm:$0xff]  }
 0x140   : > { %5997 = vmatpush1.bf16.msra.mxu0 %v7881_v63  ;;  %5506 = vmatprep.subr.bf16.mxu1 %v7886_v0  ;;  %v7967_v63 = vld [vmem:[%s9080_s10 + $0x1034] ss:$8 sps:$4 sm:$0xff]   ;;  %v7962_v0 = vld [vmem:[%s9080_s10 + $0x430] ss:$8 sps:$4 sm:$0xff]  }
 0x141   : > { %5998 = vmatprep.subr.bf16.mxu0 %v7889_v1  ;;  %v7965_v1 = vld [vmem:[%s9080_s10 + $0x1030] ss:$8 sps:$4 sm:$0xff]  }
 0x143   : > { %5507 = vmatpush1.bf16.msra.mxu1 %v7884_v2  ;;  %v7970_v2 = vld [vmem:[%s9080_s10 + $0x444] ss:$8 sps:$4 sm:$0xff]  }
 0x144   : > { %5999 = vmatpush1.bf16.msra.mxu0 %v7887_v3  ;;  %5508 = vmatprep.subr.bf16.mxu1 %v7892_v4  ;;  %v7973_v3 = vld [vmem:[%s9080_s10 + $0x1044] ss:$8 sps:$4 sm:$0xff]   ;;  %v7968_v4 = vld [vmem:[%s9080_s10 + $0x440] ss:$8 sps:$4 sm:$0xff]  }
 0x145   : > { %6000 = vmatprep.subr.bf16.mxu0 %v7895_v5  ;;  %v7971_v5 = vld [vmem:[%s9080_s10 + $0x1040] ss:$8 sps:$4 sm:$0xff]  }
 0x147   : > { %5509 = vmatpush1.bf16.msra.mxu1 %v7890_v6  ;;  %v7976_v6 = vld [vmem:[%s9080_s10 + $0x454] ss:$8 sps:$4 sm:$0xff]  }
 0x148   : > { %6001 = vmatpush1.bf16.msra.mxu0 %v7893_v7  ;;  %5510 = vmatprep.subr.bf16.mxu1 %v7898_v8  ;;  %v7979_v7 = vld [vmem:[%s9080_s10 + $0x1054] ss:$8 sps:$4 sm:$0xff]   ;;  %v7974_v8 = vld [vmem:[%s9080_s10 + $0x450] ss:$8 sps:$4 sm:$0xff]  }
 0x149   : > { %6002 = vmatprep.subr.bf16.mxu0 %v7901_v9  ;;  %v7977_v9 = vld [vmem:[%s9080_s10 + $0x1050] ss:$8 sps:$4 sm:$0xff]  }
 0x14b   : > { %5511 = vmatpush1.bf16.msra.mxu1 %v7896_v10  ;;  %v7982_v10 = vld [vmem:[%s9080_s10 + $0x464] ss:$8 sps:$4 sm:$0xff]  }
 0x14c   : > { %6003 = vmatpush1.bf16.msra.mxu0 %v7899_v11  ;;  %5512 = vmatprep.subr.bf16.mxu1 %v7904_v12  ;;  %v7985_v11 = vld [vmem:[%s9080_s10 + $0x1064] ss:$8 sps:$4 sm:$0xff]   ;;  %v7980_v12 = vld [vmem:[%s9080_s10 + $0x460] ss:$8 sps:$4 sm:$0xff]  }
 0x14d   : > { %6004 = vmatprep.subr.bf16.mxu0 %v7907_v13  ;;  %v7983_v13 = vld [vmem:[%s9080_s10 + $0x1060] ss:$8 sps:$4 sm:$0xff]  }
 0x14f   : > { %5513 = vmatpush1.bf16.msra.mxu1 %v7902_v14  ;;  %v7988_v14 = vld [vmem:[%s9080_s10 + $0x474] ss:$8 sps:$4 sm:$0xff]  }
 0x150   : > { %6005 = vmatpush1.bf16.msra.mxu0 %v7905_v15  ;;  %5514 = vmatprep.subr.bf16.mxu1 %v7910_v18  ;;  %v7991_v15 = vld [vmem:[%s9080_s10 + $0x1074] ss:$8 sps:$4 sm:$0xff]   ;;  %v7986_v18 = vld [vmem:[%s9080_s10 + $0x470] ss:$8 sps:$4 sm:$0xff]  }
 0x151   : > { %6006 = vmatprep.subr.bf16.mxu0 %v7913_v19  ;;  %v7989_v19 = vld [vmem:[%s9080_s10 + $0x1070] ss:$8 sps:$4 sm:$0xff]  }
 0x153   : > { %5515 = vmatpush1.bf16.msra.mxu1 %v7908_v20  ;;  %v7994_v20 = vld [vmem:[%s9080_s10 + $0x484] ss:$8 sps:$4 sm:$0xff]  }
 0x154   : > { %6007 = vmatpush1.bf16.msra.mxu0 %v7911_v21  ;;  %5516 = vmatprep.subr.bf16.mxu1 %v7916_v22  ;;  %v7997_v21 = vld [vmem:[%s9080_s10 + $0x1084] ss:$8 sps:$4 sm:$0xff]   ;;  %v7992_v22 = vld [vmem:[%s9080_s10 + $0x480] ss:$8 sps:$4 sm:$0xff]  }
 0x155   : > { %6008 = vmatprep.subr.bf16.mxu0 %v7919_v23  ;;  %v7995_v23 = vld [vmem:[%s9080_s10 + $0x1080] ss:$8 sps:$4 sm:$0xff]  }
 0x157   : > { %5517 = vmatpush1.bf16.msra.mxu1 %v7914_v52  ;;  %v8000_v52 = vld [vmem:[%s9080_s10 + $0x494] ss:$8 sps:$4 sm:$0xff]  }
 0x158   : > { %6009 = vmatpush1.bf16.msra.mxu0 %v7917_v56  ;;  %5518 = vmatprep.subr.bf16.mxu1 %v7922_v26  ;;  %v8003_v56 = vld [vmem:[%s9080_s10 + $0x1094] ss:$8 sps:$4 sm:$0xff]   ;;  %v7998_v26 = vld [vmem:[%s9080_s10 + $0x490] ss:$8 sps:$4 sm:$0xff]  }
 0x159   : > { %6010 = vmatprep.subr.bf16.mxu0 %v7925_v27  ;;  %v8001_v27 = vld [vmem:[%s9080_s10 + $0x1090] ss:$8 sps:$4 sm:$0xff]  }
 0x15b   : > { %5519 = vmatpush1.bf16.msra.mxu1 %v7920_v28  ;;  %v8006_v28 = vld [vmem:[%s9080_s10 + $0x4a4] ss:$8 sps:$4 sm:$0xff]  }
 0x15c   : > { %6011 = vmatpush1.bf16.msra.mxu0 %v7923_v29  ;;  %5520 = vmatprep.subr.bf16.mxu1 %v7928_v30  ;;  %v8009_v29 = vld [vmem:[%s9080_s10 + $0x10a4] ss:$8 sps:$4 sm:$0xff]   ;;  %v8004_v30 = vld [vmem:[%s9080_s10 + $0x4a0] ss:$8 sps:$4 sm:$0xff]  }
 0x15d   : > { %6012 = vmatprep.subr.bf16.mxu0 %v7931_v31  ;;  %v8007_v31 = vld [vmem:[%s9080_s10 + $0x10a0] ss:$8 sps:$4 sm:$0xff]  }
 0x15f   : > { %5521 = vmatpush1.bf16.msra.mxu1 %v7926_v32  ;;  %v8012_v32 = vld [vmem:[%s9080_s10 + $0x4b4] ss:$8 sps:$4 sm:$0xff]  }
 0x160   : > { %6013 = vmatpush1.bf16.msra.mxu0 %v7929_v33  ;;  %5522 = vmatprep.subr.bf16.mxu1 %v7934_v34  ;;  %v8015_v33 = vld [vmem:[%s9080_s10 + $0x10b4] ss:$8 sps:$4 sm:$0xff]   ;;  %v8010_v34 = vld [vmem:[%s9080_s10 + $0x4b0] ss:$8 sps:$4 sm:$0xff]  }
 0x161   : > { %6014 = vmatprep.subr.bf16.mxu0 %v7937_v35  ;;  %v8013_v35 = vld [vmem:[%s9080_s10 + $0x10b0] ss:$8 sps:$4 sm:$0xff]  }
 0x163   : > { %5523 = vmatpush1.bf16.msra.mxu1 %v7932_v17  ;;  %v8018_v17 = vld [vmem:[%s9080_s10 + $0x4c4] ss:$8 sps:$4 sm:$0xff]  }
 0x164   : > { %6015 = vmatpush1.bf16.msra.mxu0 %v7935_v37  ;;  %5524 = vmatprep.subr.bf16.mxu1 %v7940_v42  ;;  %v8021_v37 = vld [vmem:[%s9080_s10 + $0x10c4] ss:$8 sps:$4 sm:$0xff]   ;;  %v8016_v42 = vld [vmem:[%s9080_s10 + $0x4c0] ss:$8 sps:$4 sm:$0xff]  }
 0x165   : > { %6016 = vmatprep.subr.bf16.mxu0 %v7943_v44  ;;  %v8019_v44 = vld [vmem:[%s9080_s10 + $0x10c0] ss:$8 sps:$4 sm:$0xff]  }
 0x167   : > { %5525 = vmatpush1.bf16.msra.mxu1 %v7938_v24  ;;  %v8024_v24 = vld [vmem:[%s9080_s10 + $0x4d4] ss:$8 sps:$4 sm:$0xff]  }
 0x168   : > { %6017 = vmatpush1.bf16.msra.mxu0 %v7941_v45  ;;  %5535 = vmatprep.subr.bf16.mxu1 %v7946_v25  ;;  %v8027_v45 = vld [vmem:[%s9080_s10 + $0x10d4] ss:$8 sps:$4 sm:$0xff]   ;;  %v8022_v25 = vld [vmem:[%s9080_s10 + $0x4d0] ss:$8 sps:$4 sm:$0xff]  }
 0x169   : > { %6027 = vmatprep.subr.bf16.mxu0 %v7949_v46  ;;  %v8025_v46 = vld [vmem:[%s9080_s10 + $0x10d0] ss:$8 sps:$4 sm:$0xff]  }
 0x16a   : > { %5527 = vmatmul.mubr.bf16.vlgmr.msra.gmra.mrb[0].mxu1 %v1140_v50  ;;  %v8036_v50 = vld [vmem:[%s9080_s10 + $0x4f4] ss:$8 sps:$4 sm:$0xff]  }
 0x16b   : > { %6019 = vmatmul.mubr.bf16.vlgmr.msra.gmra.mrb[0].mxu0 %v1287_v51  ;;  %5536 = vmatpush1.bf16.msra.mxu1 %v7944_v16  ;;  %v8028_v16 = vld [vmem:[%s9080_s10 + $0x4e0] ss:$8 sps:$4 sm:$0xff]   ;;  %v8039_v51 = vld [vmem:[%s9080_s10 + $0x10f4] ss:$8 sps:$4 sm:$0xff]  }
 0x16c   : > { %6028 = vmatpush1.bf16.msra.mxu0 %v7947_v48  ;;  %5537 = vmatprep.subr.bf16.mxu1 %v7952_v53  ;;  %v8031_v48 = vld [vmem:[%s9080_s10 + $0x10e0] ss:$8 sps:$4 sm:$0xff]   ;;  %v8034_v53 = vld [vmem:[%s9080_s10 + $0x4f0] ss:$8 sps:$4 sm:$0xff]  }
 0x16d   : > { %6029 = vmatprep.subr.bf16.mxu0 %v7955_v54  ;;  %5567 = vmatprep.mubr.bf16.mxu1 %v9446_v55  ;;  %v8037_v54 = vld [vmem:[%s9080_s10 + $0x10f0] ss:$8 sps:$4 sm:$0xff]  }
 0x16e   : > { %6059 = vmatprep.mubr.bf16.mxu0 %v9449_v57 }
 0x16f   : > { %5538 = vmatpush1.bf16.msra.mxu1 %v7950_v38  ;;  %v8042_v38 = vld [vmem:[%s9080_s10 + $0x504] ss:$8 sps:$4 sm:$0xff]  }
 0x170   : > { %6030 = vmatpush1.bf16.msra.mxu0 %v7953_v39  ;;  %5539 = vmatprep.subr.bf16.mxu1 %v7958_v58  ;;  %v8045_v39 = vld [vmem:[%s9080_s10 + $0x1104] ss:$8 sps:$4 sm:$0xff]   ;;  %v9515_v58 = vrot.slane %v9420_v40, %v9143_v49  ;;  %v1190_v40 = vcombine.high %v9446_v55, %v9446_v55 }
 0x171   : > { %6031 = vmatprep.subr.bf16.mxu0 %v7961_v59  ;;  %v9519_v59 = vrot.slane %v9425_v41, %v9143_v49  ;;  %v8046_v41 = vld [vmem:[%s9080_s10 + $0x510] ss:$8 sps:$4 sm:$0xff]   ;;  %v8054_v55 = vld [vmem:[%s9080_s10 + $0x524] ss:$8 sps:$4 sm:$0xff]  }
 0x173   : > { %5540 = vmatpush1.bf16.msra.mxu1 %v7956_v60  ;;  %v8040_v60 = vld [vmem:[%s9080_s10 + $0x500] ss:$8 sps:$4 sm:$0xff]  }
 0x174   : > { %6032 = vmatpush1.bf16.msra.mxu0 %v7959_v61  ;;  %5541 = vmatprep.subr.bf16.mxu1 %v7964_v62  ;;  %v8043_v61 = vld [vmem:[%s9080_s10 + $0x1100] ss:$8 sps:$4 sm:$0xff]   ;;  %v8048_v62 = vld [vmem:[%s9080_s10 + $0x514] ss:$8 sps:$4 sm:$0xff]  }
 0x175   : > { %6033 = vmatprep.subr.bf16.mxu0 %v7967_v63  ;;  %v8051_v63 = vld [vmem:[%s9080_s10 + $0x1114] ss:$8 sps:$4 sm:$0xff]  }
 0x177   : > { %5542 = vmatpush1.bf16.msra.mxu1 %v7962_v0  ;;  %v1337_v0 = vcombine.high %v9449_v57, %v9449_v57  ;;  %v8052_v57 = vld [vmem:[%s9080_s10 + $0x520] ss:$8 sps:$4 sm:$0xff]  }
 0x178   : > { %6034 = vmatpush1.bf16.msra.mxu0 %v7965_v1  ;;  %5543 = vmatprep.subr.bf16.mxu1 %v7970_v2  ;;  %v8049_v1 = vld [vmem:[%s9080_s10 + $0x1110] ss:$8 sps:$4 sm:$0xff]   ;;  %v8057_v2 = vld [vmem:[%s9080_s10 + $0x1124] ss:$8 sps:$4 sm:$0xff]  }
 0x179   : > { %6035 = vmatprep.subr.bf16.mxu0 %v7973_v3  ;;  %v8055_v3 = vld [vmem:[%s9080_s10 + $0x1120] ss:$8 sps:$4 sm:$0xff]  }
 0x17b   : > { %5544 = vmatpush1.bf16.msra.mxu1 %v7968_v4  ;;  %v8060_v4 = vld [vmem:[%s9080_s10 + $0x534] ss:$8 sps:$4 sm:$0xff]  }
 0x17c   : > { %6036 = vmatpush1.bf16.msra.mxu0 %v7971_v5  ;;  %5545 = vmatprep.subr.bf16.mxu1 %v7976_v6  ;;  %v8063_v5 = vld [vmem:[%s9080_s10 + $0x1134] ss:$8 sps:$4 sm:$0xff]   ;;  %v8058_v6 = vld [vmem:[%s9080_s10 + $0x530] ss:$8 sps:$4 sm:$0xff]  }
 0x17d   : > { %6037 = vmatprep.subr.bf16.mxu0 %v7979_v7  ;;  %v8061_v7 = vld [vmem:[%s9080_s10 + $0x1130] ss:$8 sps:$4 sm:$0xff]  }
 0x17f   : > { %5546 = vmatpush1.bf16.msra.mxu1 %v7974_v8  ;;  %v8066_v8 = vld [vmem:[%s9080_s10 + $0x544] ss:$8 sps:$4 sm:$0xff]  }
 0x180   : > { %6038 = vmatpush1.bf16.msra.mxu0 %v7977_v9  ;;  %5547 = vmatprep.subr.bf16.mxu1 %v7982_v10  ;;  %v8069_v9 = vld [vmem:[%s9080_s10 + $0x1144] ss:$8 sps:$4 sm:$0xff]   ;;  %v8064_v10 = vld [vmem:[%s9080_s10 + $0x540] ss:$8 sps:$4 sm:$0xff]  }
 0x181   : > { %6039 = vmatprep.subr.bf16.mxu0 %v7985_v11  ;;  %v8067_v11 = vld [vmem:[%s9080_s10 + $0x1140] ss:$8 sps:$4 sm:$0xff]  }
 0x183   : > { %5548 = vmatpush1.bf16.msra.mxu1 %v7980_v12  ;;  %v8072_v12 = vld [vmem:[%s9080_s10 + $0x554] ss:$8 sps:$4 sm:$0xff]  }
 0x184   : > { %6040 = vmatpush1.bf16.msra.mxu0 %v7983_v13  ;;  %5549 = vmatprep.subr.bf16.mxu1 %v7988_v14  ;;  %v8075_v13 = vld [vmem:[%s9080_s10 + $0x1154] ss:$8 sps:$4 sm:$0xff]   ;;  %v8070_v14 = vld [vmem:[%s9080_s10 + $0x550] ss:$8 sps:$4 sm:$0xff]  }
 0x185   : > { %6041 = vmatprep.subr.bf16.mxu0 %v7991_v15  ;;  %v8073_v15 = vld [vmem:[%s9080_s10 + $0x1150] ss:$8 sps:$4 sm:$0xff]  }
 0x187   : > { %5550 = vmatpush1.bf16.msra.mxu1 %v7986_v18  ;;  %v8078_v18 = vld [vmem:[%s9080_s10 + $0x564] ss:$8 sps:$4 sm:$0xff]  }
 0x188   : > { %6042 = vmatpush1.bf16.msra.mxu0 %v7989_v19  ;;  %5551 = vmatprep.subr.bf16.mxu1 %v7994_v20  ;;  %v8081_v19 = vld [vmem:[%s9080_s10 + $0x1164] ss:$8 sps:$4 sm:$0xff]   ;;  %v8076_v20 = vld [vmem:[%s9080_s10 + $0x560] ss:$8 sps:$4 sm:$0xff]  }
 0x189   : > { %6043 = vmatprep.subr.bf16.mxu0 %v7997_v21  ;;  %v8079_v21 = vld [vmem:[%s9080_s10 + $0x1160] ss:$8 sps:$4 sm:$0xff]  }
 0x18b   : > { %5552 = vmatpush1.bf16.msra.mxu1 %v7992_v22  ;;  %v8084_v22 = vld [vmem:[%s9080_s10 + $0x574] ss:$8 sps:$4 sm:$0xff]  }
 0x18c   : > { %6044 = vmatpush1.bf16.msra.mxu0 %v7995_v23  ;;  %5553 = vmatprep.subr.bf16.mxu1 %v8000_v52  ;;  %v8087_v23 = vld [vmem:[%s9080_s10 + $0x1174] ss:$8 sps:$4 sm:$0xff]   ;;  %v8082_v52 = vld [vmem:[%s9080_s10 + $0x570] ss:$8 sps:$4 sm:$0xff]  }
 0x18d   : > { %6045 = vmatprep.subr.bf16.mxu0 %v8003_v56  ;;  %v8085_v56 = vld [vmem:[%s9080_s10 + $0x1170] ss:$8 sps:$4 sm:$0xff]  }
 0x18f   : > { %5554 = vmatpush1.bf16.msra.mxu1 %v7998_v26  ;;  %v8090_v26 = vld [vmem:[%s9080_s10 + $0x584] ss:$8 sps:$4 sm:$0xff]  }
 0x190   : > { %6046 = vmatpush1.bf16.msra.mxu0 %v8001_v27  ;;  %5555 = vmatprep.subr.bf16.mxu1 %v8006_v28  ;;  %v8093_v27 = vld [vmem:[%s9080_s10 + $0x1184] ss:$8 sps:$4 sm:$0xff]   ;;  %v8088_v28 = vld [vmem:[%s9080_s10 + $0x580] ss:$8 sps:$4 sm:$0xff]  }
 0x191   : > { %6047 = vmatprep.subr.bf16.mxu0 %v8009_v29  ;;  %v8091_v29 = vld [vmem:[%s9080_s10 + $0x1180] ss:$8 sps:$4 sm:$0xff]  }
 0x193   : > { %5556 = vmatpush1.bf16.msra.mxu1 %v8004_v30  ;;  %v8096_v30 = vld [vmem:[%s9080_s10 + $0x594] ss:$8 sps:$4 sm:$0xff]  }
 0x194   : > { %6048 = vmatpush1.bf16.msra.mxu0 %v8007_v31  ;;  %5557 = vmatprep.subr.bf16.mxu1 %v8012_v32  ;;  %v8099_v31 = vld [vmem:[%s9080_s10 + $0x1194] ss:$8 sps:$4 sm:$0xff]   ;;  %v8094_v32 = vld [vmem:[%s9080_s10 + $0x590] ss:$8 sps:$4 sm:$0xff]  }
 0x195   : > { %6049 = vmatprep.subr.bf16.mxu0 %v8015_v33  ;;  %v8097_v33 = vld [vmem:[%s9080_s10 + $0x1190] ss:$8 sps:$4 sm:$0xff]  }
 0x197   : > { %5558 = vmatpush1.bf16.msra.mxu1 %v8010_v34  ;;  %v8102_v34 = vld [vmem:[%s9080_s10 + $0x5a4] ss:$8 sps:$4 sm:$0xff]  }
 0x198   : > { %6050 = vmatpush1.bf16.msra.mxu0 %v8013_v35  ;;  %5559 = vmatprep.subr.bf16.mxu1 %v8018_v17  ;;  %v8105_v35 = vld [vmem:[%s9080_s10 + $0x11a4] ss:$8 sps:$4 sm:$0xff]   ;;  %v8100_v17 = vld [vmem:[%s9080_s10 + $0x5a0] ss:$8 sps:$4 sm:$0xff]  }
 0x199   : > { %6051 = vmatprep.subr.bf16.mxu0 %v8021_v37  ;;  %v8103_v37 = vld [vmem:[%s9080_s10 + $0x11a0] ss:$8 sps:$4 sm:$0xff]  }
 0x19b   : > { %5560 = vmatpush1.bf16.msra.mxu1 %v8016_v42  ;;  %v8108_v42 = vld [vmem:[%s9080_s10 + $0x5b4] ss:$8 sps:$4 sm:$0xff]  }
 0x19c   : > { %6052 = vmatpush1.bf16.msra.mxu0 %v8019_v44  ;;  %5561 = vmatprep.subr.bf16.mxu1 %v8024_v24  ;;  %v8111_v44 = vld [vmem:[%s9080_s10 + $0x11b4] ss:$8 sps:$4 sm:$0xff]   ;;  %v8106_v24 = vld [vmem:[%s9080_s10 + $0x5b0] ss:$8 sps:$4 sm:$0xff]  }
 0x19d   : > { %6053 = vmatprep.subr.bf16.mxu0 %v8027_v45  ;;  %v8109_v45 = vld [vmem:[%s9080_s10 + $0x11b0] ss:$8 sps:$4 sm:$0xff]  }
 0x19f   : > { %5562 = vmatpush1.bf16.msra.mxu1 %v8022_v25  ;;  %v8114_v25 = vld [vmem:[%s9080_s10 + $0x5c4] ss:$8 sps:$4 sm:$0xff]  }
 0x1a0   : > { %6054 = vmatpush1.bf16.msra.mxu0 %v8025_v46  ;;  %5563 = vmatprep.subr.bf16.mxu1 %v8030_v36  ;;  %v8117_v46 = vld [vmem:[%s9080_s10 + $0x11c4] ss:$8 sps:$4 sm:$0xff]   ;;  %v8112_v36 = vld [vmem:[%s9080_s10 + $0x5c0] ss:$8 sps:$4 sm:$0xff]  }
 0x1a1   : > { %6055 = vmatprep.subr.bf16.mxu0 %v8033_v47  ;;  %v8115_v47 = vld [vmem:[%s9080_s10 + $0x11c0] ss:$8 sps:$4 sm:$0xff]  }
 0x1a3   : > { %5564 = vmatpush1.bf16.msra.mxu1 %v8028_v16  ;;  %v8120_v16 = vld [vmem:[%s9080_s10 + $0x5d4] ss:$8 sps:$4 sm:$0xff]  }
 0x1a4   : > { %6056 = vmatpush1.bf16.msra.mxu0 %v8031_v48  ;;  %5565 = vmatprep.subr.bf16.mxu1 %v8036_v50  ;;  %v8123_v48 = vld [vmem:[%s9080_s10 + $0x11d4] ss:$8 sps:$4 sm:$0xff]   ;;  %v8118_v50 = vld [vmem:[%s9080_s10 + $0x5d0] ss:$8 sps:$4 sm:$0xff]  }
 0x1a5   : > { %6057 = vmatprep.subr.bf16.mxu0 %v8039_v51  ;;  %v8121_v51 = vld [vmem:[%s9080_s10 + $0x11d0] ss:$8 sps:$4 sm:$0xff]  }
 0x1a7   : > { %5566 = vmatpush1.bf16.msra.mxu1 %v8034_v53  ;;  %v8126_v53 = vld [vmem:[%s9080_s10 + $0x5e4] ss:$8 sps:$4 sm:$0xff]  }
 0x1a8   : > { %6058 = vmatpush1.bf16.msra.mxu0 %v8037_v54  ;;  %5576 = vmatprep.subr.bf16.mxu1 %v8042_v38  ;;  %v8129_v54 = vld [vmem:[%s9080_s10 + $0x11e4] ss:$8 sps:$4 sm:$0xff]  }
 0x1a9   : > { %6068 = vmatprep.subr.bf16.mxu0 %v8045_v39  ;;  %v8744_v38 = vld [vmem:[%s10149_s0 + $0x8] sm:$0xff] }
 0x1aa   : > { %5568 = vmatmul.mubr.bf16.vlgmr.msra.gmra.mrb[0].mxu1 %v9515_v58  ;;  %v1143_v39 = vcombine.high %v8744_v38, %v8744_v38  ;;  %v8204_v38 = vld [vmem:[%s9080_s10 + $0x6b4] ss:$8 sps:$4 sm:$0xff]  }
 0x1ab   : > { %6060 = vmatmul.mubr.bf16.vlgmr.msra.gmra.mrb[0].mxu0 %v9519_v59  ;;  %5577 = vmatpush1.bf16.msra.mxu1 %v8040_v60  ;;  %v8745_v60 = vld [vmem:[%s10149_s0 + $0x20] sm:$0xff] }
 0x1ac   : > { %6069 = vmatpush1.bf16.msra.mxu0 %v8043_v61  ;;  %5578 = vmatprep.subr.bf16.mxu1 %v8048_v62  ;;  %v1290_v61 = vcombine.high %v8745_v60, %v8745_v60  ;;  %v8124_v62 = vld [vmem:[%s9080_s10 + $0x5e0] ss:$8 sps:$4 sm:$0xff]   ;;  %v8202_v60 = vld [vmem:[%s9080_s10 + $0x6b0] ss:$8 sps:$4 sm:$0xff]  }
 0x1ad   : > { %6070 = vmatprep.subr.bf16.mxu0 %v8051_v63  ;;  %5608 = vmatprep.mubr.bf16.mxu1 %v1190_v40  ;;  %v8127_v63 = vld [vmem:[%s9080_s10 + $0x11e0] ss:$8 sps:$4 sm:$0xff]   ;;  %v8132_v40 = vld [vmem:[%s9080_s10 + $0x5f4] ss:$8 sps:$4 sm:$0xff]  }
 0x1ae   : > { %6100 = vmatprep.mubr.bf16.mxu0 %v1337_v0  ;;  %v8135_v0 = vld [vmem:[%s9080_s10 + $0x11f4] ss:$8 sps:$4 sm:$0xff]  }
 0x1af   : > { %5579 = vmatpush1.bf16.msra.mxu1 %v8046_v41  ;;  %v9594_v41 = vrot.slane %v1143_v39, %v9143_v49  ;;  %v8207_v39 = vld [vmem:[%s9080_s10 + $0x12b4] ss:$8 sps:$4 sm:$0xff]  }
 0x1b0   : > { %6071 = vmatpush1.bf16.msra.mxu0 %v8049_v1  ;;  %5580 = vmatprep.subr.bf16.mxu1 %v8054_v55  ;;  %v9597_v1 = vrot.slane %v1290_v61, %v9143_v49  ;;  %v8130_v55 = vld [vmem:[%s9080_s10 + $0x5f0] ss:$8 sps:$4 sm:$0xff]  }
 0x1b1   : > { %6072 = vmatprep.subr.bf16.mxu0 %v8057_v2  ;;  %v8133_v2 = vld [vmem:[%s9080_s10 + $0x11f0] ss:$8 sps:$4 sm:$0xff]  }
 0x1b2   : > { %v8205_v61 = vld [vmem:[%s9080_s10 + $0x12b0] ss:$8 sps:$4 sm:$0xff]  }
 0x1b3   : > { %5581 = vmatpush1.bf16.msra.mxu1 %v8052_v57  ;;  %v8138_v57 = vld [vmem:[%s9080_s10 + $0x604] ss:$8 sps:$4 sm:$0xff]  }
 0x1b4   : > { %6073 = vmatpush1.bf16.msra.mxu0 %v8055_v3  ;;  %5582 = vmatprep.subr.bf16.mxu1 %v8060_v4  ;;  %v8141_v3 = vld [vmem:[%s9080_s10 + $0x1204] ss:$8 sps:$4 sm:$0xff]   ;;  %v1159_v4 = vcombine.high %v9594_v41, %v9594_v41 }
 0x1b5   : > { %6074 = vmatprep.subr.bf16.mxu0 %v8063_v5  ;;  %v1306_v5 = vcombine.high %v9597_v1, %v9597_v1 }
 0x1b7   : > { %5583 = vmatpush1.bf16.msra.mxu1 %v8058_v6  ;;  %v1188_v6 = vcombine.high %v9515_v58, %v9515_v58  ;;  %v9619_v58 = vrot.slane %v1306_v5, %v9143_v49  ;;  %v8225_v5 = vld [vmem:[%s9080_s10 + $0x12e4] ss:$8 sps:$4 sm:$0xff]  }
 0x1b8   : > { %6075 = vmatpush1.bf16.msra.mxu0 %v8061_v7  ;;  %5584 = vmatprep.subr.bf16.mxu1 %v8066_v8  ;;  %v1335_v7 = vcombine.high %v9519_v59, %v9519_v59  ;;  %v8136_v8 = vld [vmem:[%s9080_s10 + $0x600] ss:$8 sps:$4 sm:$0xff]   ;;  %v8142_v59 = vld [vmem:[%s9080_s10 + $0x610] ss:$8 sps:$4 sm:$0xff]  }
 0x1b9   : > { %6076 = vmatprep.subr.bf16.mxu0 %v8069_v9  ;;  %v8139_v9 = vld [vmem:[%s9080_s10 + $0x1200] ss:$8 sps:$4 sm:$0xff]  }
 0x1bb   : > { %5585 = vmatpush1.bf16.msra.mxu1 %v8064_v10  ;;  %v8144_v10 = vld [vmem:[%s9080_s10 + $0x614] ss:$8 sps:$4 sm:$0xff]  }
 0x1bc   : > { %6077 = vmatpush1.bf16.msra.mxu0 %v8067_v11  ;;  %5586 = vmatprep.subr.bf16.mxu1 %v8072_v12  ;;  %v8147_v11 = vld [vmem:[%s9080_s10 + $0x1214] ss:$8 sps:$4 sm:$0xff]   ;;  %v9616_v12 = vrot.slane %v1159_v4, %v9143_v49  ;;  %v8222_v4 = vld [vmem:[%s9080_s10 + $0x6e4] ss:$8 sps:$4 sm:$0xff]  }
 0x1bd   : > { %6078 = vmatprep.subr.bf16.mxu0 %v8075_v13  ;;  %v8145_v13 = vld [vmem:[%s9080_s10 + $0x1210] ss:$8 sps:$4 sm:$0xff]  }
 0x1bf   : > { %5587 = vmatpush1.bf16.msra.mxu1 %v8070_v14  ;;  %v8150_v14 = vld [vmem:[%s9080_s10 + $0x624] ss:$8 sps:$4 sm:$0xff]  }
 0x1c0   : > { %6079 = vmatpush1.bf16.msra.mxu0 %v8073_v15  ;;  %5588 = vmatprep.subr.bf16.mxu1 %v8078_v18  ;;  %v8153_v15 = vld [vmem:[%s9080_s10 + $0x1224] ss:$8 sps:$4 sm:$0xff]   ;;  %v8148_v18 = vld [vmem:[%s9080_s10 + $0x620] ss:$8 sps:$4 sm:$0xff]  }
 0x1c1   : > { %6080 = vmatprep.subr.bf16.mxu0 %v8081_v19  ;;  %v8151_v19 = vld [vmem:[%s9080_s10 + $0x1220] ss:$8 sps:$4 sm:$0xff]  }
 0x1c3   : > { %5589 = vmatpush1.bf16.msra.mxu1 %v8076_v20  ;;  %v8156_v20 = vld [vmem:[%s9080_s10 + $0x634] ss:$8 sps:$4 sm:$0xff]  }
 0x1c4   : > { %6081 = vmatpush1.bf16.msra.mxu0 %v8079_v21  ;;  %5590 = vmatprep.subr.bf16.mxu1 %v8084_v22  ;;  %v8159_v21 = vld [vmem:[%s9080_s10 + $0x1234] ss:$8 sps:$4 sm:$0xff]   ;;  %v8154_v22 = vld [vmem:[%s9080_s10 + $0x630] ss:$8 sps:$4 sm:$0xff]  }
 0x1c5   : > { %6082 = vmatprep.subr.bf16.mxu0 %v8087_v23  ;;  %v8157_v23 = vld [vmem:[%s9080_s10 + $0x1230] ss:$8 sps:$4 sm:$0xff]  }
 0x1c7   : > { %5591 = vmatpush1.bf16.msra.mxu1 %v8082_v52  ;;  %v8162_v52 = vld [vmem:[%s9080_s10 + $0x644] ss:$8 sps:$4 sm:$0xff]  }
 0x1c8   : > { %6083 = vmatpush1.bf16.msra.mxu0 %v8085_v56  ;;  %5592 = vmatprep.subr.bf16.mxu1 %v8090_v26  ;;  %v8165_v56 = vld [vmem:[%s9080_s10 + $0x1244] ss:$8 sps:$4 sm:$0xff]   ;;  %v8160_v26 = vld [vmem:[%s9080_s10 + $0x640] ss:$8 sps:$4 sm:$0xff]  }
 0x1c9   : > { %6084 = vmatprep.subr.bf16.mxu0 %v8093_v27  ;;  %v8163_v27 = vld [vmem:[%s9080_s10 + $0x1240] ss:$8 sps:$4 sm:$0xff]  }
 0x1cb   : > { %5593 = vmatpush1.bf16.msra.mxu1 %v8088_v28  ;;  %v8168_v28 = vld [vmem:[%s9080_s10 + $0x654] ss:$8 sps:$4 sm:$0xff]  }
 0x1cc   : > { %6085 = vmatpush1.bf16.msra.mxu0 %v8091_v29  ;;  %5594 = vmatprep.subr.bf16.mxu1 %v8096_v30  ;;  %v8171_v29 = vld [vmem:[%s9080_s10 + $0x1254] ss:$8 sps:$4 sm:$0xff]   ;;  %v8166_v30 = vld [vmem:[%s9080_s10 + $0x650] ss:$8 sps:$4 sm:$0xff]  }
 0x1cd   : > { %6086 = vmatprep.subr.bf16.mxu0 %v8099_v31  ;;  %v8169_v31 = vld [vmem:[%s9080_s10 + $0x1250] ss:$8 sps:$4 sm:$0xff]  }
 0x1cf   : > { %5595 = vmatpush1.bf16.msra.mxu1 %v8094_v32  ;;  %v8174_v32 = vld [vmem:[%s9080_s10 + $0x664] ss:$8 sps:$4 sm:$0xff]  }
 0x1d0   : > { %6087 = vmatpush1.bf16.msra.mxu0 %v8097_v33  ;;  %5596 = vmatprep.subr.bf16.mxu1 %v8102_v34  ;;  %v8177_v33 = vld [vmem:[%s9080_s10 + $0x1264] ss:$8 sps:$4 sm:$0xff]   ;;  %v8172_v34 = vld [vmem:[%s9080_s10 + $0x660] ss:$8 sps:$4 sm:$0xff]  }
 0x1d1   : > { %6088 = vmatprep.subr.bf16.mxu0 %v8105_v35  ;;  %v8175_v35 = vld [vmem:[%s9080_s10 + $0x1260] ss:$8 sps:$4 sm:$0xff]  }
 0x1d3   : > { %5597 = vmatpush1.bf16.msra.mxu1 %v8100_v17  ;;  %v8180_v17 = vld [vmem:[%s9080_s10 + $0x674] ss:$8 sps:$4 sm:$0xff]  }
 0x1d4   : > { %6089 = vmatpush1.bf16.msra.mxu0 %v8103_v37  ;;  %5598 = vmatprep.subr.bf16.mxu1 %v8108_v42  ;;  %v8183_v37 = vld [vmem:[%s9080_s10 + $0x1274] ss:$8 sps:$4 sm:$0xff]   ;;  %v8178_v42 = vld [vmem:[%s9080_s10 + $0x670] ss:$8 sps:$4 sm:$0xff]  }
 0x1d5   : > { %6090 = vmatprep.subr.bf16.mxu0 %v8111_v44  ;;  %v8181_v44 = vld [vmem:[%s9080_s10 + $0x1270] ss:$8 sps:$4 sm:$0xff]  }
 0x1d7   : > { %5599 = vmatpush1.bf16.msra.mxu1 %v8106_v24  ;;  %v8186_v24 = vld [vmem:[%s9080_s10 + $0x684] ss:$8 sps:$4 sm:$0xff]  }
 0x1d8   : > { %6091 = vmatpush1.bf16.msra.mxu0 %v8109_v45  ;;  %5600 = vmatprep.subr.bf16.mxu1 %v8114_v25  ;;  %v8189_v45 = vld [vmem:[%s9080_s10 + $0x1284] ss:$8 sps:$4 sm:$0xff]   ;;  %v8184_v25 = vld [vmem:[%s9080_s10 + $0x680] ss:$8 sps:$4 sm:$0xff]  }
 0x1d9   : > { %6092 = vmatprep.subr.bf16.mxu0 %v8117_v46  ;;  %v8187_v46 = vld [vmem:[%s9080_s10 + $0x1280] ss:$8 sps:$4 sm:$0xff]  }
 0x1db   : > { %5601 = vmatpush1.bf16.msra.mxu1 %v8112_v36  ;;  %v8192_v36 = vld [vmem:[%s9080_s10 + $0x694] ss:$8 sps:$4 sm:$0xff]  }
 0x1dc   : > { %6093 = vmatpush1.bf16.msra.mxu0 %v8115_v47  ;;  %5602 = vmatprep.subr.bf16.mxu1 %v8120_v16  ;;  %v8195_v47 = vld [vmem:[%s9080_s10 + $0x1294] ss:$8 sps:$4 sm:$0xff]   ;;  %v8190_v16 = vld [vmem:[%s9080_s10 + $0x690] ss:$8 sps:$4 sm:$0xff]  }
 0x1dd   : > { %6094 = vmatprep.subr.bf16.mxu0 %v8123_v48  ;;  %v8193_v48 = vld [vmem:[%s9080_s10 + $0x1290] ss:$8 sps:$4 sm:$0xff]  }
 0x1df   : > { %5603 = vmatpush1.bf16.msra.mxu1 %v8118_v50  ;;  %v8198_v50 = vld [vmem:[%s9080_s10 + $0x6a4] ss:$8 sps:$4 sm:$0xff]  }
 0x1e0   : > { %6095 = vmatpush1.bf16.msra.mxu0 %v8121_v51  ;;  %5604 = vmatprep.subr.bf16.mxu1 %v8126_v53  ;;  %v8201_v51 = vld [vmem:[%s9080_s10 + $0x12a4] ss:$8 sps:$4 sm:$0xff]   ;;  %v8196_v53 = vld [vmem:[%s9080_s10 + $0x6a0] ss:$8 sps:$4 sm:$0xff]  }
 0x1e1   : > { %6096 = vmatprep.subr.bf16.mxu0 %v8129_v54  ;;  %v8199_v54 = vld [vmem:[%s9080_s10 + $0x12a0] ss:$8 sps:$4 sm:$0xff]  }
 0x1e3   : > { %5605 = vmatpush1.bf16.msra.mxu1 %v8124_v62  ;;  %v8210_v62 = vld [vmem:[%s9080_s10 + $0x6c4] ss:$8 sps:$4 sm:$0xff]  }
 0x1e4   : > { %6097 = vmatpush1.bf16.msra.mxu0 %v8127_v63  ;;  %5606 = vmatprep.subr.bf16.mxu1 %v8132_v40  ;;  %v8213_v63 = vld [vmem:[%s9080_s10 + $0x12c4] ss:$8 sps:$4 sm:$0xff]   ;;  %v8208_v40 = vld [vmem:[%s9080_s10 + $0x6c0] ss:$8 sps:$4 sm:$0xff]  }
 0x1e5   : > { %6098 = vmatprep.subr.bf16.mxu0 %v8135_v0  ;;  %v8211_v0 = vld [vmem:[%s9080_s10 + $0x12c0] ss:$8 sps:$4 sm:$0xff]  }
 0x1e7   : > { %5607 = vmatpush1.bf16.msra.mxu1 %v8130_v55  ;;  %v8216_v55 = vld [vmem:[%s9080_s10 + $0x6d4] ss:$8 sps:$4 sm:$0xff]  }
 0x1e8   : > { %6099 = vmatpush1.bf16.msra.mxu0 %v8133_v2  ;;  %5617 = vmatprep.subr.bf16.mxu1 %v8138_v57  ;;  %v8219_v2 = vld [vmem:[%s9080_s10 + $0x12d4] ss:$8 sps:$4 sm:$0xff]   ;;  %v8214_v57 = vld [vmem:[%s9080_s10 + $0x6d0] ss:$8 sps:$4 sm:$0xff]  }
 0x1e9   : > { %6109 = vmatprep.subr.bf16.mxu0 %v8141_v3  ;;  %v8217_v3 = vld [vmem:[%s9080_s10 + $0x12d0] ss:$8 sps:$4 sm:$0xff]  }
 0x1ea   : > { %5609 = vmatmul.mubr.bf16.vlgmr.msra.gmra.mrb[0].mxu1 %v1188_v6  ;;  %v8220_v6 = vld [vmem:[%s9080_s10 + $0x6e0] ss:$8 sps:$4 sm:$0xff]  }
 0x1eb   : > { %6101 = vmatmul.mubr.bf16.vlgmr.msra.gmra.mrb[0].mxu0 %v1335_v7  ;;  %5618 = vmatpush1.bf16.msra.mxu1 %v8136_v8  ;;  %v8223_v7 = vld [vmem:[%s9080_s10 + $0x12e0] ss:$8 sps:$4 sm:$0xff]   ;;  %v8228_v8 = vld [vmem:[%s9080_s10 + $0x6f4] ss:$8 sps:$4 sm:$0xff]  }
 0x1ec   : > { %6110 = vmatpush1.bf16.msra.mxu0 %v8139_v9  ;;  %5619 = vmatprep.subr.bf16.mxu1 %v8144_v10  ;;  %v8231_v9 = vld [vmem:[%s9080_s10 + $0x12f4] ss:$8 sps:$4 sm:$0xff]   ;;  %v8226_v10 = vld [vmem:[%s9080_s10 + $0x6f0] ss:$8 sps:$4 sm:$0xff]  }
 0x1ed   : > { %6111 = vmatprep.subr.bf16.mxu0 %v8147_v11  ;;  %5649 = vmatprep.mubr.bf16.mxu1 %v9616_v12  ;;  %v8229_v11 = vld [vmem:[%s9080_s10 + $0x12f0] ss:$8 sps:$4 sm:$0xff]  }
 0x1ee   : > { %6141 = vmatprep.mubr.bf16.mxu0 %v9619_v58 }
 0x1ef   : > { %5620 = vmatpush1.bf16.msra.mxu1 %v8142_v59  ;;  %v8235_v59 = vld [vmem:[%s9080_s10 + $0x704] ss:$8 sps:$4 sm:$0xff]  }
 0x1f0   : > { %6112 = vmatpush1.bf16.msra.mxu0 %v8145_v13  ;;  %5621 = vmatprep.subr.bf16.mxu1 %v8150_v14  ;;  %v8239_v13 = vld [vmem:[%s9080_s10 + $0x1304] ss:$8 sps:$4 sm:$0xff]   ;;  %v9685_v14 = vrot.slane %v9594_v41, %v9143_v49  ;;  %v1191_v41 = vcombine.high %v9616_v12, %v9616_v12 }
 0x1f1   : > { %6113 = vmatprep.subr.bf16.mxu0 %v8153_v15  ;;  %v9689_v15 = vrot.slane %v9597_v1, %v9143_v49  ;;  %v8240_v1 = vld [vmem:[%s9080_s10 + $0x710] ss:$8 sps:$4 sm:$0xff]   ;;  %v8248_v12 = vld [vmem:[%s9080_s10 + $0x724] ss:$8 sps:$4 sm:$0xff]  }
 0x1f3   : > { %5622 = vmatpush1.bf16.msra.mxu1 %v8148_v18  ;;  %v8233_v18 = vld [vmem:[%s9080_s10 + $0x700] ss:$8 sps:$4 sm:$0xff]  }
 0x1f4   : > { %6114 = vmatpush1.bf16.msra.mxu0 %v8151_v19  ;;  %5623 = vmatprep.subr.bf16.mxu1 %v8156_v20  ;;  %v8237_v19 = vld [vmem:[%s9080_s10 + $0x1300] ss:$8 sps:$4 sm:$0xff]   ;;  %v8242_v20 = vld [vmem:[%s9080_s10 + $0x714] ss:$8 sps:$4 sm:$0xff]  }
 0x1f5   : > { %6115 = vmatprep.subr.bf16.mxu0 %v8159_v21  ;;  %v8245_v21 = vld [vmem:[%s9080_s10 + $0x1314] ss:$8 sps:$4 sm:$0xff]  }
 0x1f7   : > { %5624 = vmatpush1.bf16.msra.mxu1 %v8154_v22  ;;  %v1338_v22 = vcombine.high %v9619_v58, %v9619_v58  ;;  %v8246_v58 = vld [vmem:[%s9080_s10 + $0x720] ss:$8 sps:$4 sm:$0xff]  }
 0x1f8   : > { %6116 = vmatpush1.bf16.msra.mxu0 %v8157_v23  ;;  %5625 = vmatprep.subr.bf16.mxu1 %v8162_v52  ;;  %v8243_v23 = vld [vmem:[%s9080_s10 + $0x1310] ss:$8 sps:$4 sm:$0xff]   ;;  %v8251_v52 = vld [vmem:[%s9080_s10 + $0x1324] ss:$8 sps:$4 sm:$0xff]  }
 0x1f9   : > { %6117 = vmatprep.subr.bf16.mxu0 %v8165_v56  ;;  %v8249_v56 = vld [vmem:[%s9080_s10 + $0x1320] ss:$8 sps:$4 sm:$0xff]  }
 0x1fb   : > { %5626 = vmatpush1.bf16.msra.mxu1 %v8160_v26  ;;  %v8254_v26 = vld [vmem:[%s9080_s10 + $0x734] ss:$8 sps:$4 sm:$0xff]  }
 0x1fc   : > { %6118 = vmatpush1.bf16.msra.mxu0 %v8163_v27  ;;  %5627 = vmatprep.subr.bf16.mxu1 %v8168_v28  ;;  %v8257_v27 = vld [vmem:[%s9080_s10 + $0x1334] ss:$8 sps:$4 sm:$0xff]   ;;  %v8252_v28 = vld [vmem:[%s9080_s10 + $0x730] ss:$8 sps:$4 sm:$0xff]  }
 0x1fd   : > { %6119 = vmatprep.subr.bf16.mxu0 %v8171_v29  ;;  %v8255_v29 = vld [vmem:[%s9080_s10 + $0x1330] ss:$8 sps:$4 sm:$0xff]  }
 0x1ff   : > { %5628 = vmatpush1.bf16.msra.mxu1 %v8166_v30  ;;  %v8260_v30 = vld [vmem:[%s9080_s10 + $0x744] ss:$8 sps:$4 sm:$0xff]  }
 0x200   : > { %6120 = vmatpush1.bf16.msra.mxu0 %v8169_v31  ;;  %5629 = vmatprep.subr.bf16.mxu1 %v8174_v32  ;;  %v8263_v31 = vld [vmem:[%s9080_s10 + $0x1344] ss:$8 sps:$4 sm:$0xff]   ;;  %v8258_v32 = vld [vmem:[%s9080_s10 + $0x740] ss:$8 sps:$4 sm:$0xff]  }
 0x201   : > { %6121 = vmatprep.subr.bf16.mxu0 %v8177_v33  ;;  %v8261_v33 = vld [vmem:[%s9080_s10 + $0x1340] ss:$8 sps:$4 sm:$0xff]  }
 0x203   : > { %5630 = vmatpush1.bf16.msra.mxu1 %v8172_v34  ;;  %v8266_v34 = vld [vmem:[%s9080_s10 + $0x754] ss:$8 sps:$4 sm:$0xff]  }
 0x204   : > { %6122 = vmatpush1.bf16.msra.mxu0 %v8175_v35  ;;  %5631 = vmatprep.subr.bf16.mxu1 %v8180_v17  ;;  %v8269_v35 = vld [vmem:[%s9080_s10 + $0x1354] ss:$8 sps:$4 sm:$0xff]   ;;  %v8264_v17 = vld [vmem:[%s9080_s10 + $0x750] ss:$8 sps:$4 sm:$0xff]  }
 0x205   : > { %6123 = vmatprep.subr.bf16.mxu0 %v8183_v37  ;;  %v8267_v37 = vld [vmem:[%s9080_s10 + $0x1350] ss:$8 sps:$4 sm:$0xff]  }
 0x207   : > { %5632 = vmatpush1.bf16.msra.mxu1 %v8178_v42  ;;  %v8272_v42 = vld [vmem:[%s9080_s10 + $0x764] ss:$8 sps:$4 sm:$0xff]  }
 0x208   : > { %6124 = vmatpush1.bf16.msra.mxu0 %v8181_v44  ;;  %5633 = vmatprep.subr.bf16.mxu1 %v8186_v24  ;;  %v8275_v44 = vld [vmem:[%s9080_s10 + $0x1364] ss:$8 sps:$4 sm:$0xff]   ;;  %v8270_v24 = vld [vmem:[%s9080_s10 + $0x760] ss:$8 sps:$4 sm:$0xff]  }
 0x209   : > { %6125 = vmatprep.subr.bf16.mxu0 %v8189_v45  ;;  %v8273_v45 = vld [vmem:[%s9080_s10 + $0x1360] ss:$8 sps:$4 sm:$0xff]  }
 0x20b   : > { %5634 = vmatpush1.bf16.msra.mxu1 %v8184_v25  ;;  %v8278_v25 = vld [vmem:[%s9080_s10 + $0x774] ss:$8 sps:$4 sm:$0xff]  }
 0x20c   : > { %6126 = vmatpush1.bf16.msra.mxu0 %v8187_v46  ;;  %5635 = vmatprep.subr.bf16.mxu1 %v8192_v36  ;;  %v8281_v46 = vld [vmem:[%s9080_s10 + $0x1374] ss:$8 sps:$4 sm:$0xff]   ;;  %v8276_v36 = vld [vmem:[%s9080_s10 + $0x770] ss:$8 sps:$4 sm:$0xff]  }
 0x20d   : > { %6127 = vmatprep.subr.bf16.mxu0 %v8195_v47  ;;  %v8279_v47 = vld [vmem:[%s9080_s10 + $0x1370] ss:$8 sps:$4 sm:$0xff]  }
 0x20f   : > { %5636 = vmatpush1.bf16.msra.mxu1 %v8190_v16  ;;  %v8284_v16 = vld [vmem:[%s9080_s10 + $0x784] ss:$8 sps:$4 sm:$0xff]  }
 0x210   : > { %6128 = vmatpush1.bf16.msra.mxu0 %v8193_v48  ;;  %5637 = vmatprep.subr.bf16.mxu1 %v8198_v50  ;;  %v8287_v48 = vld [vmem:[%s9080_s10 + $0x1384] ss:$8 sps:$4 sm:$0xff]   ;;  %v8282_v50 = vld [vmem:[%s9080_s10 + $0x780] ss:$8 sps:$4 sm:$0xff]  }
 0x211   : > { %6129 = vmatprep.subr.bf16.mxu0 %v8201_v51  ;;  %v8285_v51 = vld [vmem:[%s9080_s10 + $0x1380] ss:$8 sps:$4 sm:$0xff]  }
 0x213   : > { %5638 = vmatpush1.bf16.msra.mxu1 %v8196_v53  ;;  %v8290_v53 = vld [vmem:[%s9080_s10 + $0x794] ss:$8 sps:$4 sm:$0xff]  }
 0x214   : > { %6130 = vmatpush1.bf16.msra.mxu0 %v8199_v54  ;;  %5639 = vmatprep.subr.bf16.mxu1 %v8204_v38  ;;  %v8293_v54 = vld [vmem:[%s9080_s10 + $0x1394] ss:$8 sps:$4 sm:$0xff]   ;;  %v8288_v38 = vld [vmem:[%s9080_s10 + $0x790] ss:$8 sps:$4 sm:$0xff]  }
 0x215   : > { %6131 = vmatprep.subr.bf16.mxu0 %v8207_v39  ;;  %v8291_v39 = vld [vmem:[%s9080_s10 + $0x1390] ss:$8 sps:$4 sm:$0xff]  }
 0x217   : > { %5640 = vmatpush1.bf16.msra.mxu1 %v8202_v60  ;;  %v8296_v60 = vld [vmem:[%s9080_s10 + $0x7a4] ss:$8 sps:$4 sm:$0xff]  }
 0x218   : > { %6132 = vmatpush1.bf16.msra.mxu0 %v8205_v61  ;;  %5641 = vmatprep.subr.bf16.mxu1 %v8210_v62  ;;  %v8299_v61 = vld [vmem:[%s9080_s10 + $0x13a4] ss:$8 sps:$4 sm:$0xff]   ;;  %v8294_v62 = vld [vmem:[%s9080_s10 + $0x7a0] ss:$8 sps:$4 sm:$0xff]  }
 0x219   : > { %6133 = vmatprep.subr.bf16.mxu0 %v8213_v63  ;;  %v8297_v63 = vld [vmem:[%s9080_s10 + $0x13a0] ss:$8 sps:$4 sm:$0xff]  }
 0x21b   : > { %5642 = vmatpush1.bf16.msra.mxu1 %v8208_v40  ;;  %v8302_v40 = vld [vmem:[%s9080_s10 + $0x7b4] ss:$8 sps:$4 sm:$0xff]  }
 0x21c   : > { %6134 = vmatpush1.bf16.msra.mxu0 %v8211_v0  ;;  %5643 = vmatprep.subr.bf16.mxu1 %v8216_v55  ;;  %v8305_v0 = vld [vmem:[%s9080_s10 + $0x13b4] ss:$8 sps:$4 sm:$0xff]   ;;  %v8300_v55 = vld [vmem:[%s9080_s10 + $0x7b0] ss:$8 sps:$4 sm:$0xff]  }
 0x21d   : > { %6135 = vmatprep.subr.bf16.mxu0 %v8219_v2  ;;  %v8303_v2 = vld [vmem:[%s9080_s10 + $0x13b0] ss:$8 sps:$4 sm:$0xff]  }
 0x21f   : > { %5644 = vmatpush1.bf16.msra.mxu1 %v8214_v57  ;;  %v8308_v57 = vld [vmem:[%s9080_s10 + $0x7c4] ss:$8 sps:$4 sm:$0xff]  }
 0x220   : > { %6136 = vmatpush1.bf16.msra.mxu0 %v8217_v3  ;;  %5645 = vmatprep.subr.bf16.mxu1 %v8222_v4  ;;  %v8311_v3 = vld [vmem:[%s9080_s10 + $0x13c4] ss:$8 sps:$4 sm:$0xff]   ;;  %v8306_v4 = vld [vmem:[%s9080_s10 + $0x7c0] ss:$8 sps:$4 sm:$0xff]  }
 0x221   : > { %6137 = vmatprep.subr.bf16.mxu0 %v8225_v5  ;;  %v8309_v5 = vld [vmem:[%s9080_s10 + $0x13c0] ss:$8 sps:$4 sm:$0xff]  }
 0x223   : > { %5646 = vmatpush1.bf16.msra.mxu1 %v8220_v6  ;;  %v8314_v6 = vld [vmem:[%s9080_s10 + $0x7d4] ss:$8 sps:$4 sm:$0xff]  }
 0x224   : > { %6138 = vmatpush1.bf16.msra.mxu0 %v8223_v7  ;;  %5647 = vmatprep.subr.bf16.mxu1 %v8228_v8  ;;  %v8317_v7 = vld [vmem:[%s9080_s10 + $0x13d4] ss:$8 sps:$4 sm:$0xff]   ;;  %v8312_v8 = vld [vmem:[%s9080_s10 + $0x7d0] ss:$8 sps:$4 sm:$0xff]  }
 0x225   : > { %6139 = vmatprep.subr.bf16.mxu0 %v8231_v9  ;;  %v8315_v9 = vld [vmem:[%s9080_s10 + $0x13d0] ss:$8 sps:$4 sm:$0xff]  }
 0x227   : > { %5648 = vmatpush1.bf16.msra.mxu1 %v8226_v10  ;;  %v8320_v10 = vld [vmem:[%s9080_s10 + $0x7e4] ss:$8 sps:$4 sm:$0xff]  }
 0x228   : > { %6140 = vmatpush1.bf16.msra.mxu0 %v8229_v11  ;;  %5658 = vmatprep.subr.bf16.mxu1 %v8235_v59  ;;  %v8323_v11 = vld [vmem:[%s9080_s10 + $0x13e4] ss:$8 sps:$4 sm:$0xff]   ;;  %v9756_v59 = vld [vmem:[%s10149_s0 + $0x10] sm:$0xff] }
 0x229   : > { %6150 = vmatprep.subr.bf16.mxu0 %v8239_v13  ;;  %v9761_v13 = vld [vmem:[%s10149_s0 + $0x28] sm:$0xff] }
 0x22a   : > { %5650 = vmatmul.mubr.bf16.vlgmr.msra.gmra.mrb[0].mxu1 %v9685_v14 }
 0x22b   : > { %6142 = vmatmul.mubr.bf16.vlgmr.msra.gmra.mrb[0].mxu0 %v9689_v15  ;;  %5659 = vmatpush1.bf16.msra.mxu1 %v8233_v18  ;;  %v8318_v18 = vld [vmem:[%s9080_s10 + $0x7e0] ss:$8 sps:$4 sm:$0xff]  }
 0x22c   : > { %6151 = vmatpush1.bf16.msra.mxu0 %v8237_v19  ;;  %5660 = vmatprep.subr.bf16.mxu1 %v8242_v20  ;;  %v8321_v19 = vld [vmem:[%s9080_s10 + $0x13e0] ss:$8 sps:$4 sm:$0xff]   ;;  %v8326_v20 = vld [vmem:[%s9080_s10 + $0x7f4] ss:$8 sps:$4 sm:$0xff]  }
 0x22d   : > { %6152 = vmatprep.subr.bf16.mxu0 %v8245_v21  ;;  %5690 = vmatprep.mubr.bf16.mxu1 %v1191_v41  ;;  %v8329_v21 = vld [vmem:[%s9080_s10 + $0x13f4] ss:$8 sps:$4 sm:$0xff]   ;;  %v9769_v41 = vrot.slane %v9756_v59, %v9143_v49 }
 0x22e   : > { %6182 = vmatprep.mubr.bf16.mxu0 %v1338_v22  ;;  %v9773_v22 = vrot.slane %v9761_v13, %v9143_v49 }
 0x22f   : > { %5661 = vmatpush1.bf16.msra.mxu1 %v8240_v1  ;;  %v8324_v1 = vld [vmem:[%s9080_s10 + $0x7f0] ss:$8 sps:$4 sm:$0xff]  }
 0x230   : > { %6153 = vmatpush1.bf16.msra.mxu0 %v8243_v23  ;;  %5662 = vmatprep.subr.bf16.mxu1 %v8248_v12  ;;  %v8327_v23 = vld [vmem:[%s9080_s10 + $0x13f0] ss:$8 sps:$4 sm:$0xff]   ;;  %v8332_v12 = vld [vmem:[%s9080_s10 + $0x804] ss:$8 sps:$4 sm:$0xff]  }
 0x231   : > { %6154 = vmatprep.subr.bf16.mxu0 %v8251_v52  ;;  %v8335_v52 = vld [vmem:[%s9080_s10 + $0x1404] ss:$8 sps:$4 sm:$0xff]  }
 0x233   : > { %5663 = vmatpush1.bf16.msra.mxu1 %v8246_v58  ;;  %v1207_v58 = vcombine.high %v9769_v41, %v9769_v41 }
 0x234   : > { %6155 = vmatpush1.bf16.msra.mxu0 %v8249_v56  ;;  %5664 = vmatprep.subr.bf16.mxu1 %v8254_v26  ;;  %v1354_v56 = vcombine.high %v9773_v22, %v9773_v22  ;;  %v1189_v26 = vcombine.high %v9685_v14, %v9685_v14 }
 0x235   : > { %6156 = vmatprep.subr.bf16.mxu0 %v8257_v27  ;;  %v1336_v27 = vcombine.high %v9689_v15, %v9689_v15  ;;  %v8336_v15 = vld [vmem:[%s9080_s10 + $0x810] ss:$8 sps:$4 sm:$0xff]  }
 0x236   : > { %v9795_v14 = vrot.slane %v1354_v56, %v9143_v49  ;;  %v8411_v56 = vld [vmem:[%s9080_s10 + $0x14d0] ss:$8 sps:$4 sm:$0xff]  }
 0x237   : > { %5665 = vmatpush1.bf16.msra.mxu1 %v8252_v28  ;;  %v8330_v28 = vld [vmem:[%s9080_s10 + $0x800] ss:$8 sps:$4 sm:$0xff]  }
 0x238   : > { %6157 = vmatpush1.bf16.msra.mxu0 %v8255_v29  ;;  %5666 = vmatprep.subr.bf16.mxu1 %v8260_v30  ;;  %v8333_v29 = vld [vmem:[%s9080_s10 + $0x1400] ss:$8 sps:$4 sm:$0xff]   ;;  %v8338_v30 = vld [vmem:[%s9080_s10 + $0x814] ss:$8 sps:$4 sm:$0xff]  }
 0x239   : > { %6158 = vmatprep.subr.bf16.mxu0 %v8263_v31  ;;  %v8341_v31 = vld [vmem:[%s9080_s10 + $0x1414] ss:$8 sps:$4 sm:$0xff]  }
 0x23b   : > { %5667 = vmatpush1.bf16.msra.mxu1 %v8258_v32  ;;  %v9792_v32 = vrot.slane %v1207_v58, %v9143_v49  ;;  %v8408_v58 = vld [vmem:[%s9080_s10 + $0x8d0] ss:$8 sps:$4 sm:$0xff]  }
 0x23c   : > { %6159 = vmatpush1.bf16.msra.mxu0 %v8261_v33  ;;  %5668 = vmatprep.subr.bf16.mxu1 %v8266_v34  ;;  %v8339_v33 = vld [vmem:[%s9080_s10 + $0x1410] ss:$8 sps:$4 sm:$0xff]   ;;  %v8344_v34 = vld [vmem:[%s9080_s10 + $0x824] ss:$8 sps:$4 sm:$0xff]  }
 0x23d   : > { %6160 = vmatprep.subr.bf16.mxu0 %v8269_v35  ;;  %v8347_v35 = vld [vmem:[%s9080_s10 + $0x1424] ss:$8 sps:$4 sm:$0xff]  }
 0x23f   : > { %5669 = vmatpush1.bf16.msra.mxu1 %v8264_v17  ;;  %v8342_v17 = vld [vmem:[%s9080_s10 + $0x820] ss:$8 sps:$4 sm:$0xff]  }
 0x240   : > { %6161 = vmatpush1.bf16.msra.mxu0 %v8267_v37  ;;  %5670 = vmatprep.subr.bf16.mxu1 %v8272_v42  ;;  %v8345_v37 = vld [vmem:[%s9080_s10 + $0x1420] ss:$8 sps:$4 sm:$0xff]   ;;  %v8350_v42 = vld [vmem:[%s9080_s10 + $0x834] ss:$8 sps:$4 sm:$0xff]  }
 0x241   : > { %6162 = vmatprep.subr.bf16.mxu0 %v8275_v44  ;;  %v8353_v44 = vld [vmem:[%s9080_s10 + $0x1434] ss:$8 sps:$4 sm:$0xff]  }
 0x243   : > { %5671 = vmatpush1.bf16.msra.mxu1 %v8270_v24  ;;  %v8348_v24 = vld [vmem:[%s9080_s10 + $0x830] ss:$8 sps:$4 sm:$0xff]  }
 0x244   : > { %6163 = vmatpush1.bf16.msra.mxu0 %v8273_v45  ;;  %5672 = vmatprep.subr.bf16.mxu1 %v8278_v25  ;;  %v8351_v45 = vld [vmem:[%s9080_s10 + $0x1430] ss:$8 sps:$4 sm:$0xff]   ;;  %v8356_v25 = vld [vmem:[%s9080_s10 + $0x844] ss:$8 sps:$4 sm:$0xff]  }
 0x245   : > { %6164 = vmatprep.subr.bf16.mxu0 %v8281_v46  ;;  %v8359_v46 = vld [vmem:[%s9080_s10 + $0x1444] ss:$8 sps:$4 sm:$0xff]  }
 0x247   : > { %5673 = vmatpush1.bf16.msra.mxu1 %v8276_v36  ;;  %v8354_v36 = vld [vmem:[%s9080_s10 + $0x840] ss:$8 sps:$4 sm:$0xff]  }
 0x248   : > { %6165 = vmatpush1.bf16.msra.mxu0 %v8279_v47  ;;  %5674 = vmatprep.subr.bf16.mxu1 %v8284_v16  ;;  %v8357_v47 = vld [vmem:[%s9080_s10 + $0x1440] ss:$8 sps:$4 sm:$0xff]   ;;  %v8362_v16 = vld [vmem:[%s9080_s10 + $0x854] ss:$8 sps:$4 sm:$0xff]  }
 0x249   : > { %6166 = vmatprep.subr.bf16.mxu0 %v8287_v48  ;;  %v8365_v48 = vld [vmem:[%s9080_s10 + $0x1454] ss:$8 sps:$4 sm:$0xff]  }
 0x24b   : > { %5675 = vmatpush1.bf16.msra.mxu1 %v8282_v50  ;;  %v8360_v50 = vld [vmem:[%s9080_s10 + $0x850] ss:$8 sps:$4 sm:$0xff]  }
 0x24c   : > { %6167 = vmatpush1.bf16.msra.mxu0 %v8285_v51  ;;  %5676 = vmatprep.subr.bf16.mxu1 %v8290_v53  ;;  %v8363_v51 = vld [vmem:[%s9080_s10 + $0x1450] ss:$8 sps:$4 sm:$0xff]   ;;  %v8368_v53 = vld [vmem:[%s9080_s10 + $0x864] ss:$8 sps:$4 sm:$0xff]  }
 0x24d   : > { %6168 = vmatprep.subr.bf16.mxu0 %v8293_v54  ;;  %v8371_v54 = vld [vmem:[%s9080_s10 + $0x1464] ss:$8 sps:$4 sm:$0xff]  }
 0x24f   : > { %5677 = vmatpush1.bf16.msra.mxu1 %v8288_v38  ;;  %v8366_v38 = vld [vmem:[%s9080_s10 + $0x860] ss:$8 sps:$4 sm:$0xff]  }
 0x250   : > { %6169 = vmatpush1.bf16.msra.mxu0 %v8291_v39  ;;  %5678 = vmatprep.subr.bf16.mxu1 %v8296_v60  ;;  %v8369_v39 = vld [vmem:[%s9080_s10 + $0x1460] ss:$8 sps:$4 sm:$0xff]   ;;  %v8374_v60 = vld [vmem:[%s9080_s10 + $0x874] ss:$8 sps:$4 sm:$0xff]  }
 0x251   : > { %6170 = vmatprep.subr.bf16.mxu0 %v8299_v61  ;;  %v8377_v61 = vld [vmem:[%s9080_s10 + $0x1474] ss:$8 sps:$4 sm:$0xff]  }
 0x253   : > { %5679 = vmatpush1.bf16.msra.mxu1 %v8294_v62  ;;  %v8372_v62 = vld [vmem:[%s9080_s10 + $0x870] ss:$8 sps:$4 sm:$0xff]  }
 0x254   : > { %6171 = vmatpush1.bf16.msra.mxu0 %v8297_v63  ;;  %5680 = vmatprep.subr.bf16.mxu1 %v8302_v40  ;;  %v8375_v63 = vld [vmem:[%s9080_s10 + $0x1470] ss:$8 sps:$4 sm:$0xff]   ;;  %v8380_v40 = vld [vmem:[%s9080_s10 + $0x884] ss:$8 sps:$4 sm:$0xff]  }
 0x255   : > { %6172 = vmatprep.subr.bf16.mxu0 %v8305_v0  ;;  %v8383_v0 = vld [vmem:[%s9080_s10 + $0x1484] ss:$8 sps:$4 sm:$0xff]  }
 0x257   : > { %5681 = vmatpush1.bf16.msra.mxu1 %v8300_v55  ;;  %v8378_v55 = vld [vmem:[%s9080_s10 + $0x880] ss:$8 sps:$4 sm:$0xff]  }
 0x258   : > { %6173 = vmatpush1.bf16.msra.mxu0 %v8303_v2  ;;  %5682 = vmatprep.subr.bf16.mxu1 %v8308_v57  ;;  %v8381_v2 = vld [vmem:[%s9080_s10 + $0x1480] ss:$8 sps:$4 sm:$0xff]   ;;  %v8386_v57 = vld [vmem:[%s9080_s10 + $0x894] ss:$8 sps:$4 sm:$0xff]  }
 0x259   : > { %6174 = vmatprep.subr.bf16.mxu0 %v8311_v3  ;;  %v8389_v3 = vld [vmem:[%s9080_s10 + $0x1494] ss:$8 sps:$4 sm:$0xff]  }
 0x25b   : > { %5683 = vmatpush1.bf16.msra.mxu1 %v8306_v4  ;;  %v8384_v4 = vld [vmem:[%s9080_s10 + $0x890] ss:$8 sps:$4 sm:$0xff]  }
 0x25c   : > { %6175 = vmatpush1.bf16.msra.mxu0 %v8309_v5  ;;  %5684 = vmatprep.subr.bf16.mxu1 %v8314_v6  ;;  %v8387_v5 = vld [vmem:[%s9080_s10 + $0x1490] ss:$8 sps:$4 sm:$0xff]   ;;  %v8392_v6 = vld [vmem:[%s9080_s10 + $0x8a4] ss:$8 sps:$4 sm:$0xff]  }
 0x25d   : > { %6176 = vmatprep.subr.bf16.mxu0 %v8317_v7  ;;  %v8395_v7 = vld [vmem:[%s9080_s10 + $0x14a4] ss:$8 sps:$4 sm:$0xff]  }
 0x25f   : > { %5685 = vmatpush1.bf16.msra.mxu1 %v8312_v8  ;;  %v8390_v8 = vld [vmem:[%s9080_s10 + $0x8a0] ss:$8 sps:$4 sm:$0xff]  }
 0x260   : > { %6177 = vmatpush1.bf16.msra.mxu0 %v8315_v9  ;;  %5686 = vmatprep.subr.bf16.mxu1 %v8320_v10  ;;  %v8393_v9 = vld [vmem:[%s9080_s10 + $0x14a0] ss:$8 sps:$4 sm:$0xff]   ;;  %v8398_v10 = vld [vmem:[%s9080_s10 + $0x8b4] ss:$8 sps:$4 sm:$0xff]  }
 0x261   : > { %6178 = vmatprep.subr.bf16.mxu0 %v8323_v11  ;;  %v8401_v11 = vld [vmem:[%s9080_s10 + $0x14b4] ss:$8 sps:$4 sm:$0xff]  }
 0x263   : > { %5687 = vmatpush1.bf16.msra.mxu1 %v8318_v18  ;;  %v8396_v18 = vld [vmem:[%s9080_s10 + $0x8b0] ss:$8 sps:$4 sm:$0xff]  }
 0x264   : > { %6179 = vmatpush1.bf16.msra.mxu0 %v8321_v19  ;;  %5688 = vmatprep.subr.bf16.mxu1 %v8326_v20  ;;  %v8399_v19 = vld [vmem:[%s9080_s10 + $0x14b0] ss:$8 sps:$4 sm:$0xff]   ;;  %v8404_v20 = vld [vmem:[%s9080_s10 + $0x8c4] ss:$8 sps:$4 sm:$0xff]  }
 0x265   : > { %6180 = vmatprep.subr.bf16.mxu0 %v8329_v21  ;;  %v8407_v21 = vld [vmem:[%s9080_s10 + $0x14c4] ss:$8 sps:$4 sm:$0xff]  }
 0x267   : > { %5689 = vmatpush1.bf16.msra.mxu1 %v8324_v1  ;;  %v8402_v1 = vld [vmem:[%s9080_s10 + $0x8c0] ss:$8 sps:$4 sm:$0xff]  }
 0x268   : > { %6181 = vmatpush1.bf16.msra.mxu0 %v8327_v23  ;;  %5699 = vmatprep.subr.bf16.mxu1 %v8332_v12  ;;  %v8405_v23 = vld [vmem:[%s9080_s10 + $0x14c0] ss:$8 sps:$4 sm:$0xff]   ;;  %v8410_v12 = vld [vmem:[%s9080_s10 + $0x8d4] ss:$8 sps:$4 sm:$0xff]  }
 0x269   : > { %6191 = vmatprep.subr.bf16.mxu0 %v8335_v52  ;;  %v8413_v52 = vld [vmem:[%s9080_s10 + $0x14d4] ss:$8 sps:$4 sm:$0xff]  }
 0x26a   : > { %5691 = vmatmul.mubr.bf16.vlgmr.msra.gmra.mrb[0].mxu1 %v1189_v26  ;;  %v8416_v26 = vld [vmem:[%s9080_s10 + $0x8e4] ss:$8 sps:$4 sm:$0xff]  }
 0x26b   : > { %6183 = vmatmul.mubr.bf16.vlgmr.msra.gmra.mrb[0].mxu0 %v1336_v27  ;;  %5700 = vmatpush1.bf16.msra.mxu1 %v8330_v28  ;;  %v8419_v27 = vld [vmem:[%s9080_s10 + $0x14e4] ss:$8 sps:$4 sm:$0xff]   ;;  %v8414_v28 = vld [vmem:[%s9080_s10 + $0x8e0] ss:$8 sps:$4 sm:$0xff]  }
 0x26c   : > { %6192 = vmatpush1.bf16.msra.mxu0 %v8333_v29  ;;  %5701 = vmatprep.subr.bf16.mxu1 %v8338_v30  ;;  %v8417_v29 = vld [vmem:[%s9080_s10 + $0x14e0] ss:$8 sps:$4 sm:$0xff]   ;;  %v8422_v30 = vld [vmem:[%s9080_s10 + $0x8f4] ss:$8 sps:$4 sm:$0xff]  }
 0x26d   : > { %6193 = vmatprep.subr.bf16.mxu0 %v8341_v31  ;;  %5731 = vmatprep.mubr.bf16.mxu1 %v9792_v32  ;;  %v8425_v31 = vld [vmem:[%s9080_s10 + $0x14f4] ss:$8 sps:$4 sm:$0xff]  }
 0x26e   : > { %6223 = vmatprep.mubr.bf16.mxu0 %v9795_v14 }
 0x26f   : > { %5702 = vmatpush1.bf16.msra.mxu1 %v8336_v15  ;;  %v8420_v15 = vld [vmem:[%s9080_s10 + $0x8f0] ss:$8 sps:$4 sm:$0xff]  }
 0x270   : > { %6194 = vmatpush1.bf16.msra.mxu0 %v8339_v33  ;;  %5703 = vmatprep.subr.bf16.mxu1 %v8344_v34  ;;  %v8423_v33 = vld [vmem:[%s9080_s10 + $0x14f0] ss:$8 sps:$4 sm:$0xff]   ;;  %v8428_v34 = vld [vmem:[%s9080_s10 + $0x904] ss:$8 sps:$4 sm:$0xff]  }
 0x271   : > { %6195 = vmatprep.subr.bf16.mxu0 %v8347_v35  ;;  %v8431_v35 = vld [vmem:[%s9080_s10 + $0x1504] ss:$8 sps:$4 sm:$0xff]  }
 0x273   : > { %5704 = vmatpush1.bf16.msra.mxu1 %v8342_v17  ;;  %v9861_v17 = vrot.slane %v9769_v41, %v9143_v49  ;;  %v1239_v41 = vcombine.high %v9792_v32, %v9792_v32  ;;  %v8440_v32 = vld [vmem:[%s9080_s10 + $0x924] ss:$8 sps:$4 sm:$0xff]  }
 0x274   : > { %6196 = vmatpush1.bf16.msra.mxu0 %v8345_v37  ;;  %5705 = vmatprep.subr.bf16.mxu1 %v8350_v42  ;;  %v9865_v37 = vrot.slane %v9773_v22, %v9143_v49  ;;  %v8426_v42 = vld [vmem:[%s9080_s10 + $0x900] ss:$8 sps:$4 sm:$0xff]   ;;  %v8432_v22 = vld [vmem:[%s9080_s10 + $0x910] ss:$8 sps:$4 sm:$0xff]  }
 0x275   : > { %6197 = vmatprep.subr.bf16.mxu0 %v8353_v44  ;;  %v8429_v44 = vld [vmem:[%s9080_s10 + $0x1500] ss:$8 sps:$4 sm:$0xff]  }
 0x277   : > { %5706 = vmatpush1.bf16.msra.mxu1 %v8348_v24  ;;  %v8434_v24 = vld [vmem:[%s9080_s10 + $0x914] ss:$8 sps:$4 sm:$0xff]  }
 0x278   : > { %6198 = vmatpush1.bf16.msra.mxu0 %v8351_v45  ;;  %5707 = vmatprep.subr.bf16.mxu1 %v8356_v25  ;;  %v8437_v45 = vld [vmem:[%s9080_s10 + $0x1514] ss:$8 sps:$4 sm:$0xff]   ;;  %v1386_v25 = vcombine.high %v9795_v14, %v9795_v14  ;;  %v8438_v14 = vld [vmem:[%s9080_s10 + $0x920] ss:$8 sps:$4 sm:$0xff]  }
 0x279   : > { %6199 = vmatprep.subr.bf16.mxu0 %v8359_v46  ;;  %v8435_v46 = vld [vmem:[%s9080_s10 + $0x1510] ss:$8 sps:$4 sm:$0xff]  }
 0x27b   : > { %5708 = vmatpush1.bf16.msra.mxu1 %v8354_v36  ;;  %v8443_v36 = vld [vmem:[%s9080_s10 + $0x1524] ss:$8 sps:$4 sm:$0xff]  }
 0x27c   : > { %6200 = vmatpush1.bf16.msra.mxu0 %v8357_v47  ;;  %5709 = vmatprep.subr.bf16.mxu1 %v8362_v16  ;;  %v8441_v47 = vld [vmem:[%s9080_s10 + $0x1520] ss:$8 sps:$4 sm:$0xff]   ;;  %v8446_v16 = vld [vmem:[%s9080_s10 + $0x934] ss:$8 sps:$4 sm:$0xff]  }
 0x27d   : > { %6201 = vmatprep.subr.bf16.mxu0 %v8365_v48  ;;  %v8449_v48 = vld [vmem:[%s9080_s10 + $0x1534] ss:$8 sps:$4 sm:$0xff]  }
 0x27f   : > { %5710 = vmatpush1.bf16.msra.mxu1 %v8360_v50  ;;  %v8444_v50 = vld [vmem:[%s9080_s10 + $0x930] ss:$8 sps:$4 sm:$0xff]  }
 0x280   : > { %6202 = vmatpush1.bf16.msra.mxu0 %v8363_v51  ;;  %5711 = vmatprep.subr.bf16.mxu1 %v8368_v53  ;;  %v8447_v51 = vld [vmem:[%s9080_s10 + $0x1530] ss:$8 sps:$4 sm:$0xff]   ;;  %v8452_v53 = vld [vmem:[%s9080_s10 + $0x944] ss:$8 sps:$4 sm:$0xff]  }
 0x281   : > { %6203 = vmatprep.subr.bf16.mxu0 %v8371_v54  ;;  %v8455_v54 = vld [vmem:[%s9080_s10 + $0x1544] ss:$8 sps:$4 sm:$0xff]  }
 0x283   : > { %5712 = vmatpush1.bf16.msra.mxu1 %v8366_v38  ;;  %v8450_v38 = vld [vmem:[%s9080_s10 + $0x940] ss:$8 sps:$4 sm:$0xff]  }
 0x284   : > { %6204 = vmatpush1.bf16.msra.mxu0 %v8369_v39  ;;  %5713 = vmatprep.subr.bf16.mxu1 %v8374_v60  ;;  %v8453_v39 = vld [vmem:[%s9080_s10 + $0x1540] ss:$8 sps:$4 sm:$0xff]   ;;  %v8458_v60 = vld [vmem:[%s9080_s10 + $0x954] ss:$8 sps:$4 sm:$0xff]  }
 0x285   : > { %6205 = vmatprep.subr.bf16.mxu0 %v8377_v61  ;;  %v8461_v61 = vld [vmem:[%s9080_s10 + $0x1554] ss:$8 sps:$4 sm:$0xff]  }
 0x287   : > { %5714 = vmatpush1.bf16.msra.mxu1 %v8372_v62  ;;  %v8456_v62 = vld [vmem:[%s9080_s10 + $0x950] ss:$8 sps:$4 sm:$0xff]  }
 0x288   : > { %6206 = vmatpush1.bf16.msra.mxu0 %v8375_v63  ;;  %5715 = vmatprep.subr.bf16.mxu1 %v8380_v40  ;;  %v8459_v63 = vld [vmem:[%s9080_s10 + $0x1550] ss:$8 sps:$4 sm:$0xff]   ;;  %v8464_v40 = vld [vmem:[%s9080_s10 + $0x964] ss:$8 sps:$4 sm:$0xff]  }
 0x289   : > { %6207 = vmatprep.subr.bf16.mxu0 %v8383_v0  ;;  %v8467_v0 = vld [vmem:[%s9080_s10 + $0x1564] ss:$8 sps:$4 sm:$0xff]  }
 0x28b   : > { %5716 = vmatpush1.bf16.msra.mxu1 %v8378_v55  ;;  %v8462_v55 = vld [vmem:[%s9080_s10 + $0x960] ss:$8 sps:$4 sm:$0xff]  }
 0x28c   : > { %6208 = vmatpush1.bf16.msra.mxu0 %v8381_v2  ;;  %5717 = vmatprep.subr.bf16.mxu1 %v8386_v57  ;;  %v8465_v2 = vld [vmem:[%s9080_s10 + $0x1560] ss:$8 sps:$4 sm:$0xff]   ;;  %v8470_v57 = vld [vmem:[%s9080_s10 + $0x974] ss:$8 sps:$4 sm:$0xff]  }
 0x28d   : > { %6209 = vmatprep.subr.bf16.mxu0 %v8389_v3  ;;  %v8473_v3 = vld [vmem:[%s9080_s10 + $0x1574] ss:$8 sps:$4 sm:$0xff]  }
 0x28f   : > { %5718 = vmatpush1.bf16.msra.mxu1 %v8384_v4  ;;  %v8468_v4 = vld [vmem:[%s9080_s10 + $0x970] ss:$8 sps:$4 sm:$0xff]  }
 0x290   : > { %6210 = vmatpush1.bf16.msra.mxu0 %v8387_v5  ;;  %5719 = vmatprep.subr.bf16.mxu1 %v8392_v6  ;;  %v8471_v5 = vld [vmem:[%s9080_s10 + $0x1570] ss:$8 sps:$4 sm:$0xff]   ;;  %v8476_v6 = vld [vmem:[%s9080_s10 + $0x984] ss:$8 sps:$4 sm:$0xff]  }
 0x291   : > { %6211 = vmatprep.subr.bf16.mxu0 %v8395_v7  ;;  %v8479_v7 = vld [vmem:[%s9080_s10 + $0x1584] ss:$8 sps:$4 sm:$0xff]  }
 0x293   : > { %5720 = vmatpush1.bf16.msra.mxu1 %v8390_v8  ;;  %v8474_v8 = vld [vmem:[%s9080_s10 + $0x980] ss:$8 sps:$4 sm:$0xff]  }
 0x294   : > { %6212 = vmatpush1.bf16.msra.mxu0 %v8393_v9  ;;  %5721 = vmatprep.subr.bf16.mxu1 %v8398_v10  ;;  %v8477_v9 = vld [vmem:[%s9080_s10 + $0x1580] ss:$8 sps:$4 sm:$0xff]   ;;  %v8482_v10 = vld [vmem:[%s9080_s10 + $0x994] ss:$8 sps:$4 sm:$0xff]  }
 0x295   : > { %6213 = vmatprep.subr.bf16.mxu0 %v8401_v11  ;;  %v8485_v11 = vld [vmem:[%s9080_s10 + $0x1594] ss:$8 sps:$4 sm:$0xff]  }
 0x297   : > { %5722 = vmatpush1.bf16.msra.mxu1 %v8396_v18  ;;  %v8480_v18 = vld [vmem:[%s9080_s10 + $0x990] ss:$8 sps:$4 sm:$0xff]  }
 0x298   : > { %6214 = vmatpush1.bf16.msra.mxu0 %v8399_v19  ;;  %5723 = vmatprep.subr.bf16.mxu1 %v8404_v20  ;;  %v8483_v19 = vld [vmem:[%s9080_s10 + $0x1590] ss:$8 sps:$4 sm:$0xff]   ;;  %v8488_v20 = vld [vmem:[%s9080_s10 + $0x9a4] ss:$8 sps:$4 sm:$0xff]  }
 0x299   : > { %6215 = vmatprep.subr.bf16.mxu0 %v8407_v21  ;;  %v8491_v21 = vld [vmem:[%s9080_s10 + $0x15a4] ss:$8 sps:$4 sm:$0xff]  }
 0x29b   : > { %5724 = vmatpush1.bf16.msra.mxu1 %v8402_v1  ;;  %v8486_v1 = vld [vmem:[%s9080_s10 + $0x9a0] ss:$8 sps:$4 sm:$0xff]  }
 0x29c   : > { %6216 = vmatpush1.bf16.msra.mxu0 %v8405_v23  ;;  %5725 = vmatprep.subr.bf16.mxu1 %v8410_v12  ;;  %v8489_v23 = vld [vmem:[%s9080_s10 + $0x15a0] ss:$8 sps:$4 sm:$0xff]   ;;  %v8494_v12 = vld [vmem:[%s9080_s10 + $0x9b4] ss:$8 sps:$4 sm:$0xff]  }
 0x29d   : > { %6217 = vmatprep.subr.bf16.mxu0 %v8413_v52  ;;  %v8497_v52 = vld [vmem:[%s9080_s10 + $0x15b4] ss:$8 sps:$4 sm:$0xff]  }
 0x29f   : > { %5726 = vmatpush1.bf16.msra.mxu1 %v8408_v58  ;;  %v8492_v58 = vld [vmem:[%s9080_s10 + $0x9b0] ss:$8 sps:$4 sm:$0xff]  }
 0x2a0   : > { %6218 = vmatpush1.bf16.msra.mxu0 %v8411_v56  ;;  %5727 = vmatprep.subr.bf16.mxu1 %v8416_v26  ;;  %v8495_v56 = vld [vmem:[%s9080_s10 + $0x15b0] ss:$8 sps:$4 sm:$0xff]   ;;  %v8500_v26 = vld [vmem:[%s9080_s10 + $0x9c4] ss:$8 sps:$4 sm:$0xff]  }
 0x2a1   : > { %6219 = vmatprep.subr.bf16.mxu0 %v8419_v27  ;;  %v8503_v27 = vld [vmem:[%s9080_s10 + $0x15c4] ss:$8 sps:$4 sm:$0xff]  }
 0x2a3   : > { %5728 = vmatpush1.bf16.msra.mxu1 %v8414_v28  ;;  %v8498_v28 = vld [vmem:[%s9080_s10 + $0x9c0] ss:$8 sps:$4 sm:$0xff]  }
 0x2a4   : > { %6220 = vmatpush1.bf16.msra.mxu0 %v8417_v29  ;;  %5729 = vmatprep.subr.bf16.mxu1 %v8422_v30  ;;  %v8501_v29 = vld [vmem:[%s9080_s10 + $0x15c0] ss:$8 sps:$4 sm:$0xff]   ;;  %v8506_v30 = vld [vmem:[%s9080_s10 + $0x9d4] ss:$8 sps:$4 sm:$0xff]  }
 0x2a5   : > { %6221 = vmatprep.subr.bf16.mxu0 %v8425_v31  ;;  %v8509_v31 = vld [vmem:[%s9080_s10 + $0x15d4] ss:$8 sps:$4 sm:$0xff]  }
 0x2a7   : > { %5730 = vmatpush1.bf16.msra.mxu1 %v8420_v15  ;;  %v8504_v15 = vld [vmem:[%s9080_s10 + $0x9d0] ss:$8 sps:$4 sm:$0xff]  }
 0x2a8   : > { %6222 = vmatpush1.bf16.msra.mxu0 %v8423_v33  ;;  %5740 = vmatprep.subr.bf16.mxu1 %v8428_v34  ;;  %v8507_v33 = vld [vmem:[%s9080_s10 + $0x15d0] ss:$8 sps:$4 sm:$0xff]   ;;  %v8512_v34 = vld [vmem:[%s9080_s10 + $0x9e4] ss:$8 sps:$4 sm:$0xff]  }
 0x2a9   : > { %6232 = vmatprep.subr.bf16.mxu0 %v8431_v35  ;;  %v8515_v35 = vld [vmem:[%s9080_s10 + $0x15e4] ss:$8 sps:$4 sm:$0xff]  }
 0x2aa   : > { %5732 = vmatmul.mubr.bf16.vlgmr.msra.gmra.mrb[0].mxu1 %v9861_v17 }
 0x2ab   : > { %6224 = vmatmul.mubr.bf16.vlgmr.msra.gmra.mrb[0].mxu0 %v9865_v37  ;;  %5741 = vmatpush1.bf16.msra.mxu1 %v8426_v42  ;;  %v1192_v42 = vcombine.high %v9756_v59, %v9756_v59  ;;  %v8516_v59 = vld [vmem:[%s9080_s10 + $0x9f0] ss:$8 sps:$4 sm:$0xff]  }
 0x2ac   : > { %6233 = vmatpush1.bf16.msra.mxu0 %v8429_v44  ;;  %5742 = vmatprep.subr.bf16.mxu1 %v8434_v24  ;;  %v1339_v44 = vcombine.high %v9761_v13, %v9761_v13  ;;  %v8510_v24 = vld [vmem:[%s9080_s10 + $0x9e0] ss:$8 sps:$4 sm:$0xff]   ;;  %v8519_v13 = vld [vmem:[%s9080_s10 + $0x15f0] ss:$8 sps:$4 sm:$0xff]  }
 0x2ad   : > { %6234 = vmatprep.subr.bf16.mxu0 %v8437_v45  ;;  %5772 = vmatprep.mubr.bf16.mxu1 %v1239_v41  ;;  %v8513_v45 = vld [vmem:[%s9080_s10 + $0x15e0] ss:$8 sps:$4 sm:$0xff]   ;;  %v8518_v41 = vld [vmem:[%s9080_s10 + $0x9f4] ss:$8 sps:$4 sm:$0xff]  }
 0x2ae   : > { %6264 = vmatprep.mubr.bf16.mxu0 %v1386_v25  ;;  %v8521_v25 = vld [vmem:[%s9080_s10 + $0x15f4] ss:$8 sps:$4 sm:$0xff]  }
 0x2af   : > { %5743 = vmatpush1.bf16.msra.mxu1 %v8432_v22  ;;  %v9938_v22 = vrot.slane %v1192_v42, %v9143_v49  ;;  %v8588_v42 = vld [vmem:[%s9080_s10 + $0xab0] ss:$8 sps:$4 sm:$0xff]  }
 0x2b0   : > { %6235 = vmatpush1.bf16.msra.mxu0 %v8435_v46  ;;  %5744 = vmatprep.subr.bf16.mxu1 %v8440_v32  ;;  %v9941_v46 = vrot.slane %v1339_v44, %v9143_v49  ;;  %v8524_v32 = vld [vmem:[%s9080_s10 + $0xa04] ss:$8 sps:$4 sm:$0xff]   ;;  %v8591_v44 = vld [vmem:[%s9080_s10 + $0x16b0] ss:$8 sps:$4 sm:$0xff]  }
 0x2b1   : > { %6236 = vmatprep.subr.bf16.mxu0 %v8443_v36  ;;  %v8527_v36 = vld [vmem:[%s9080_s10 + $0x1604] ss:$8 sps:$4 sm:$0xff]  }
 0x2b3   : > { %5745 = vmatpush1.bf16.msra.mxu1 %v8438_v14  ;;  %v1208_v14 = vcombine.high %v9938_v22, %v9938_v22 }
 0x2b4   : > { %6237 = vmatpush1.bf16.msra.mxu0 %v8441_v47  ;;  %5746 = vmatprep.subr.bf16.mxu1 %v8446_v16  ;;  %v1355_v47 = vcombine.high %v9941_v46, %v9941_v46  ;;  %v1237_v16 = vcombine.high %v9861_v17, %v9861_v17 }
 0x2b5   : > { %6238 = vmatprep.subr.bf16.mxu0 %v8449_v48  ;;  %v1384_v48 = vcombine.high %v9865_v37, %v9865_v37  ;;  %v8528_v37 = vld [vmem:[%s9080_s10 + $0xa10] ss:$8 sps:$4 sm:$0xff]  }
 0x2b6   : > { %v9963_v17 = vrot.slane %v1355_v47, %v9143_v49  ;;  %v8611_v47 = vld [vmem:[%s9080_s10 + $0x16e4] ss:$8 sps:$4 sm:$0xff]  }
 0x2b7   : > { %5747 = vmatpush1.bf16.msra.mxu1 %v8444_v50  ;;  %v8522_v50 = vld [vmem:[%s9080_s10 + $0xa00] ss:$8 sps:$4 sm:$0xff]  }
 0x2b8   : > { %6239 = vmatpush1.bf16.msra.mxu0 %v8447_v51  ;;  %5748 = vmatprep.subr.bf16.mxu1 %v8452_v53  ;;  %v8525_v51 = vld [vmem:[%s9080_s10 + $0x1600] ss:$8 sps:$4 sm:$0xff]   ;;  %v8530_v53 = vld [vmem:[%s9080_s10 + $0xa14] ss:$8 sps:$4 sm:$0xff]  }
 0x2b9   : > { %6240 = vmatprep.subr.bf16.mxu0 %v8455_v54  ;;  %v8533_v54 = vld [vmem:[%s9080_s10 + $0x1614] ss:$8 sps:$4 sm:$0xff]  }
 0x2bb   : > { %5749 = vmatpush1.bf16.msra.mxu1 %v8450_v38  ;;  %v9960_v38 = vrot.slane %v1208_v14, %v9143_v49  ;;  %v8608_v14 = vld [vmem:[%s9080_s10 + $0xae4] ss:$8 sps:$4 sm:$0xff]  }
 0x2bc   : > { %6241 = vmatpush1.bf16.msra.mxu0 %v8453_v39  ;;  %5750 = vmatprep.subr.bf16.mxu1 %v8458_v60  ;;  %v8531_v39 = vld [vmem:[%s9080_s10 + $0x1610] ss:$8 sps:$4 sm:$0xff]   ;;  %v8536_v60 = vld [vmem:[%s9080_s10 + $0xa24] ss:$8 sps:$4 sm:$0xff]  }
 0x2bd   : > { %6242 = vmatprep.subr.bf16.mxu0 %v8461_v61  ;;  %v8539_v61 = vld [vmem:[%s9080_s10 + $0x1624] ss:$8 sps:$4 sm:$0xff]  }
 0x2bf   : > { %5751 = vmatpush1.bf16.msra.mxu1 %v8456_v62  ;;  %v8534_v62 = vld [vmem:[%s9080_s10 + $0xa20] ss:$8 sps:$4 sm:$0xff]  }
 0x2c0   : > { %6243 = vmatpush1.bf16.msra.mxu0 %v8459_v63  ;;  %5752 = vmatprep.subr.bf16.mxu1 %v8464_v40  ;;  %v8537_v63 = vld [vmem:[%s9080_s10 + $0x1620] ss:$8 sps:$4 sm:$0xff]   ;;  %v8542_v40 = vld [vmem:[%s9080_s10 + $0xa34] ss:$8 sps:$4 sm:$0xff]  }
 0x2c1   : > { %6244 = vmatprep.subr.bf16.mxu0 %v8467_v0  ;;  %v8545_v0 = vld [vmem:[%s9080_s10 + $0x1634] ss:$8 sps:$4 sm:$0xff]  }
 0x2c3   : > { %5753 = vmatpush1.bf16.msra.mxu1 %v8462_v55  ;;  %v8540_v55 = vld [vmem:[%s9080_s10 + $0xa30] ss:$8 sps:$4 sm:$0xff]  }
 0x2c4   : > { %6245 = vmatpush1.bf16.msra.mxu0 %v8465_v2  ;;  %5754 = vmatprep.subr.bf16.mxu1 %v8470_v57  ;;  %v8543_v2 = vld [vmem:[%s9080_s10 + $0x1630] ss:$8 sps:$4 sm:$0xff]   ;;  %v8548_v57 = vld [vmem:[%s9080_s10 + $0xa44] ss:$8 sps:$4 sm:$0xff]  }
 0x2c5   : > { %6246 = vmatprep.subr.bf16.mxu0 %v8473_v3  ;;  %v8551_v3 = vld [vmem:[%s9080_s10 + $0x1644] ss:$8 sps:$4 sm:$0xff]  }
 0x2c7   : > { %5755 = vmatpush1.bf16.msra.mxu1 %v8468_v4  ;;  %v8546_v4 = vld [vmem:[%s9080_s10 + $0xa40] ss:$8 sps:$4 sm:$0xff]  }
 0x2c8   : > { %6247 = vmatpush1.bf16.msra.mxu0 %v8471_v5  ;;  %5756 = vmatprep.subr.bf16.mxu1 %v8476_v6  ;;  %v8549_v5 = vld [vmem:[%s9080_s10 + $0x1640] ss:$8 sps:$4 sm:$0xff]   ;;  %v8554_v6 = vld [vmem:[%s9080_s10 + $0xa54] ss:$8 sps:$4 sm:$0xff]  }
 0x2c9   : > { %6248 = vmatprep.subr.bf16.mxu0 %v8479_v7  ;;  %v8557_v7 = vld [vmem:[%s9080_s10 + $0x1654] ss:$8 sps:$4 sm:$0xff]  }
 0x2cb   : > { %5757 = vmatpush1.bf16.msra.mxu1 %v8474_v8  ;;  %v8552_v8 = vld [vmem:[%s9080_s10 + $0xa50] ss:$8 sps:$4 sm:$0xff]  }
 0x2cc   : > { %6249 = vmatpush1.bf16.msra.mxu0 %v8477_v9  ;;  %5758 = vmatprep.subr.bf16.mxu1 %v8482_v10  ;;  %v8555_v9 = vld [vmem:[%s9080_s10 + $0x1650] ss:$8 sps:$4 sm:$0xff]   ;;  %v8560_v10 = vld [vmem:[%s9080_s10 + $0xa64] ss:$8 sps:$4 sm:$0xff]  }
 0x2cd   : > { %6250 = vmatprep.subr.bf16.mxu0 %v8485_v11  ;;  %v8563_v11 = vld [vmem:[%s9080_s10 + $0x1664] ss:$8 sps:$4 sm:$0xff]  }
 0x2cf   : > { %5759 = vmatpush1.bf16.msra.mxu1 %v8480_v18  ;;  %v8558_v18 = vld [vmem:[%s9080_s10 + $0xa60] ss:$8 sps:$4 sm:$0xff]  }
 0x2d0   : > { %6251 = vmatpush1.bf16.msra.mxu0 %v8483_v19  ;;  %5760 = vmatprep.subr.bf16.mxu1 %v8488_v20  ;;  %v8561_v19 = vld [vmem:[%s9080_s10 + $0x1660] ss:$8 sps:$4 sm:$0xff]   ;;  %v8566_v20 = vld [vmem:[%s9080_s10 + $0xa74] ss:$8 sps:$4 sm:$0xff]  }
 0x2d1   : > { %6252 = vmatprep.subr.bf16.mxu0 %v8491_v21  ;;  %v8569_v21 = vld [vmem:[%s9080_s10 + $0x1674] ss:$8 sps:$4 sm:$0xff]  }
 0x2d3   : > { %5761 = vmatpush1.bf16.msra.mxu1 %v8486_v1  ;;  %v8564_v1 = vld [vmem:[%s9080_s10 + $0xa70] ss:$8 sps:$4 sm:$0xff]  }
 0x2d4   : > { %6253 = vmatpush1.bf16.msra.mxu0 %v8489_v23  ;;  %5762 = vmatprep.subr.bf16.mxu1 %v8494_v12  ;;  %v8567_v23 = vld [vmem:[%s9080_s10 + $0x1670] ss:$8 sps:$4 sm:$0xff]   ;;  %v8572_v12 = vld [vmem:[%s9080_s10 + $0xa84] ss:$8 sps:$4 sm:$0xff]  }
 0x2d5   : > { %6254 = vmatprep.subr.bf16.mxu0 %v8497_v52  ;;  %v8575_v52 = vld [vmem:[%s9080_s10 + $0x1684] ss:$8 sps:$4 sm:$0xff]  }
 0x2d7   : > { %5763 = vmatpush1.bf16.msra.mxu1 %v8492_v58  ;;  %v8570_v58 = vld [vmem:[%s9080_s10 + $0xa80] ss:$8 sps:$4 sm:$0xff]  }
 0x2d8   : > { %6255 = vmatpush1.bf16.msra.mxu0 %v8495_v56  ;;  %5764 = vmatprep.subr.bf16.mxu1 %v8500_v26  ;;  %v8573_v56 = vld [vmem:[%s9080_s10 + $0x1680] ss:$8 sps:$4 sm:$0xff]   ;;  %v8578_v26 = vld [vmem:[%s9080_s10 + $0xa94] ss:$8 sps:$4 sm:$0xff]  }
 0x2d9   : > { %6256 = vmatprep.subr.bf16.mxu0 %v8503_v27  ;;  %v8581_v27 = vld [vmem:[%s9080_s10 + $0x1694] ss:$8 sps:$4 sm:$0xff]  }
 0x2db   : > { %5765 = vmatpush1.bf16.msra.mxu1 %v8498_v28  ;;  %v8576_v28 = vld [vmem:[%s9080_s10 + $0xa90] ss:$8 sps:$4 sm:$0xff]  }
 0x2dc   : > { %6257 = vmatpush1.bf16.msra.mxu0 %v8501_v29  ;;  %5766 = vmatprep.subr.bf16.mxu1 %v8506_v30  ;;  %v8579_v29 = vld [vmem:[%s9080_s10 + $0x1690] ss:$8 sps:$4 sm:$0xff]   ;;  %v8584_v30 = vld [vmem:[%s9080_s10 + $0xaa4] ss:$8 sps:$4 sm:$0xff]  }
 0x2dd   : > { %6258 = vmatprep.subr.bf16.mxu0 %v8509_v31  ;;  %v8587_v31 = vld [vmem:[%s9080_s10 + $0x16a4] ss:$8 sps:$4 sm:$0xff]  }
 0x2df   : > { %5767 = vmatpush1.bf16.msra.mxu1 %v8504_v15  ;;  %v8582_v15 = vld [vmem:[%s9080_s10 + $0xaa0] ss:$8 sps:$4 sm:$0xff]  }
 0x2e0   : > { %6259 = vmatpush1.bf16.msra.mxu0 %v8507_v33  ;;  %5768 = vmatprep.subr.bf16.mxu1 %v8512_v34  ;;  %v8585_v33 = vld [vmem:[%s9080_s10 + $0x16a0] ss:$8 sps:$4 sm:$0xff]   ;;  %v8590_v34 = vld [vmem:[%s9080_s10 + $0xab4] ss:$8 sps:$4 sm:$0xff]  }
 0x2e1   : > { %6260 = vmatprep.subr.bf16.mxu0 %v8515_v35  ;;  %v8593_v35 = vld [vmem:[%s9080_s10 + $0x16b4] ss:$8 sps:$4 sm:$0xff]  }
 0x2e3   : > { %5769 = vmatpush1.bf16.msra.mxu1 %v8510_v24  ;;  %v8596_v24 = vld [vmem:[%s9080_s10 + $0xac4] ss:$8 sps:$4 sm:$0xff]  }
 0x2e4   : > { %6261 = vmatpush1.bf16.msra.mxu0 %v8513_v45  ;;  %5770 = vmatprep.subr.bf16.mxu1 %v8518_v41  ;;  %v8599_v45 = vld [vmem:[%s9080_s10 + $0x16c4] ss:$8 sps:$4 sm:$0xff]   ;;  %v8594_v41 = vld [vmem:[%s9080_s10 + $0xac0] ss:$8 sps:$4 sm:$0xff]  }
 0x2e5   : > { %6262 = vmatprep.subr.bf16.mxu0 %v8521_v25  ;;  %v8597_v25 = vld [vmem:[%s9080_s10 + $0x16c0] ss:$8 sps:$4 sm:$0xff]  }
 0x2e7   : > { %5771 = vmatpush1.bf16.msra.mxu1 %v8516_v59  ;;  %v8602_v59 = vld [vmem:[%s9080_s10 + $0xad4] ss:$8 sps:$4 sm:$0xff]  }
 0x2e8   : > { %6263 = vmatpush1.bf16.msra.mxu0 %v8519_v13  ;;  %5781 = vmatprep.subr.bf16.mxu1 %v8524_v32  ;;  %v8605_v13 = vld [vmem:[%s9080_s10 + $0x16d4] ss:$8 sps:$4 sm:$0xff]   ;;  %v8600_v32 = vld [vmem:[%s9080_s10 + $0xad0] ss:$8 sps:$4 sm:$0xff]  }
 0x2e9   : > { %6273 = vmatprep.subr.bf16.mxu0 %v8527_v36  ;;  %v8603_v36 = vld [vmem:[%s9080_s10 + $0x16d0] ss:$8 sps:$4 sm:$0xff]  }
 0x2ea   : > { %5773 = vmatmul.mubr.bf16.vlgmr.msra.gmra.mrb[0].mxu1 %v1237_v16  ;;  %v8606_v16 = vld [vmem:[%s9080_s10 + $0xae0] ss:$8 sps:$4 sm:$0xff]  }
 0x2eb   : > { %6265 = vmatmul.mubr.bf16.vlgmr.msra.gmra.mrb[0].mxu0 %v1384_v48  ;;  %5782 = vmatpush1.bf16.msra.mxu1 %v8522_v50  ;;  %v8609_v48 = vld [vmem:[%s9080_s10 + $0x16e0] ss:$8 sps:$4 sm:$0xff]   ;;  %v8614_v50 = vld [vmem:[%s9080_s10 + $0xaf4] ss:$8 sps:$4 sm:$0xff]  }
 0x2ec   : > { %6274 = vmatpush1.bf16.msra.mxu0 %v8525_v51  ;;  %5783 = vmatprep.subr.bf16.mxu1 %v8530_v53  ;;  %v8617_v51 = vld [vmem:[%s9080_s10 + $0x16f4] ss:$8 sps:$4 sm:$0xff]   ;;  %v8612_v53 = vld [vmem:[%s9080_s10 + $0xaf0] ss:$8 sps:$4 sm:$0xff]  }
 0x2ed   : > { %6275 = vmatprep.subr.bf16.mxu0 %v8533_v54  ;;  %5813 = vmatprep.mubr.bf16.mxu1 %v9960_v38  ;;  %v8615_v54 = vld [vmem:[%s9080_s10 + $0x16f0] ss:$8 sps:$4 sm:$0xff]  }
 0x2ee   : > { %6305 = vmatprep.mubr.bf16.mxu0 %v9963_v17 }
 0x2ef   : > { %5784 = vmatpush1.bf16.msra.mxu1 %v8528_v37  ;;  %v8621_v37 = vld [vmem:[%s9080_s10 + $0xb04] ss:$8 sps:$4 sm:$0xff]  }
 0x2f0   : > { %6276 = vmatpush1.bf16.msra.mxu0 %v8531_v39  ;;  %5785 = vmatprep.subr.bf16.mxu1 %v8536_v60  ;;  %v8625_v39 = vld [vmem:[%s9080_s10 + $0x1704] ss:$8 sps:$4 sm:$0xff]   ;;  %v10029_v60 = vrot.slane %v9938_v22, %v9143_v49  ;;  %v1240_v22 = vcombine.high %v9960_v38, %v9960_v38 }
 0x2f1   : > { %6277 = vmatprep.subr.bf16.mxu0 %v8539_v61  ;;  %v10033_v61 = vrot.slane %v9941_v46, %v9143_v49  ;;  %v8626_v46 = vld [vmem:[%s9080_s10 + $0xb10] ss:$8 sps:$4 sm:$0xff]   ;;  %v8634_v38 = vld [vmem:[%s9080_s10 + $0xb24] ss:$8 sps:$4 sm:$0xff]  }
 0x2f3   : > { %5786 = vmatpush1.bf16.msra.mxu1 %v8534_v62  ;;  %v8619_v62 = vld [vmem:[%s9080_s10 + $0xb00] ss:$8 sps:$4 sm:$0xff]  }
 0x2f4   : > { %6278 = vmatpush1.bf16.msra.mxu0 %v8537_v63  ;;  %5787 = vmatprep.subr.bf16.mxu1 %v8542_v40  ;;  %v8623_v63 = vld [vmem:[%s9080_s10 + $0x1700] ss:$8 sps:$4 sm:$0xff]   ;;  %v8628_v40 = vld [vmem:[%s9080_s10 + $0xb14] ss:$8 sps:$4 sm:$0xff]  }
 0x2f5   : > { %6279 = vmatprep.subr.bf16.mxu0 %v8545_v0  ;;  %v8631_v0 = vld [vmem:[%s9080_s10 + $0x1714] ss:$8 sps:$4 sm:$0xff]  }
 0x2f7   : > { %5788 = vmatpush1.bf16.msra.mxu1 %v8540_v55  ;;  %v1387_v55 = vcombine.high %v9963_v17, %v9963_v17  ;;  %v8632_v17 = vld [vmem:[%s9080_s10 + $0xb20] ss:$8 sps:$4 sm:$0xff]  }
 0x2f8   : > { %6280 = vmatpush1.bf16.msra.mxu0 %v8543_v2  ;;  %5789 = vmatprep.subr.bf16.mxu1 %v8548_v57  ;;  %v8629_v2 = vld [vmem:[%s9080_s10 + $0x1710] ss:$8 sps:$4 sm:$0xff]   ;;  %v8637_v57 = vld [vmem:[%s9080_s10 + $0x1724] ss:$8 sps:$4 sm:$0xff]  }
 0x2f9   : > { %6281 = vmatprep.subr.bf16.mxu0 %v8551_v3  ;;  %v8635_v3 = vld [vmem:[%s9080_s10 + $0x1720] ss:$8 sps:$4 sm:$0xff]  }
 0x2fb   : > { %5790 = vmatpush1.bf16.msra.mxu1 %v8546_v4  ;;  %v8640_v4 = vld [vmem:[%s9080_s10 + $0xb34] ss:$8 sps:$4 sm:$0xff]  }
 0x2fc   : > { %6282 = vmatpush1.bf16.msra.mxu0 %v8549_v5  ;;  %5791 = vmatprep.subr.bf16.mxu1 %v8554_v6  ;;  %v8643_v5 = vld [vmem:[%s9080_s10 + $0x1734] ss:$8 sps:$4 sm:$0xff]   ;;  %v8638_v6 = vld [vmem:[%s9080_s10 + $0xb30] ss:$8 sps:$4 sm:$0xff]  }
 0x2fd   : > { %6283 = vmatprep.subr.bf16.mxu0 %v8557_v7  ;;  %v8641_v7 = vld [vmem:[%s9080_s10 + $0x1730] ss:$8 sps:$4 sm:$0xff]  }
 0x2ff   : > { %5792 = vmatpush1.bf16.msra.mxu1 %v8552_v8  ;;  %v8646_v8 = vld [vmem:[%s9080_s10 + $0xb44] ss:$8 sps:$4 sm:$0xff]  }
 0x300   : > { %6284 = vmatpush1.bf16.msra.mxu0 %v8555_v9  ;;  %5793 = vmatprep.subr.bf16.mxu1 %v8560_v10  ;;  %v8649_v9 = vld [vmem:[%s9080_s10 + $0x1744] ss:$8 sps:$4 sm:$0xff]   ;;  %v8644_v10 = vld [vmem:[%s9080_s10 + $0xb40] ss:$8 sps:$4 sm:$0xff]  }
 0x301   : > { %6285 = vmatprep.subr.bf16.mxu0 %v8563_v11  ;;  %v8647_v11 = vld [vmem:[%s9080_s10 + $0x1740] ss:$8 sps:$4 sm:$0xff]  }
 0x303   : > { %5794 = vmatpush1.bf16.msra.mxu1 %v8558_v18  ;;  %v8652_v18 = vld [vmem:[%s9080_s10 + $0xb54] ss:$8 sps:$4 sm:$0xff]  }
 0x304   : > { %6286 = vmatpush1.bf16.msra.mxu0 %v8561_v19  ;;  %5795 = vmatprep.subr.bf16.mxu1 %v8566_v20  ;;  %v8655_v19 = vld [vmem:[%s9080_s10 + $0x1754] ss:$8 sps:$4 sm:$0xff]   ;;  %v8650_v20 = vld [vmem:[%s9080_s10 + $0xb50] ss:$8 sps:$4 sm:$0xff]  }
 0x305   : > { %6287 = vmatprep.subr.bf16.mxu0 %v8569_v21  ;;  %v8653_v21 = vld [vmem:[%s9080_s10 + $0x1750] ss:$8 sps:$4 sm:$0xff]  }
 0x307   : > { %5796 = vmatpush1.bf16.msra.mxu1 %v8564_v1  ;;  %v8658_v1 = vld [vmem:[%s9080_s10 + $0xb64] ss:$8 sps:$4 sm:$0xff]  }
 0x308   : > { %6288 = vmatpush1.bf16.msra.mxu0 %v8567_v23  ;;  %5797 = vmatprep.subr.bf16.mxu1 %v8572_v12  ;;  %v8661_v23 = vld [vmem:[%s9080_s10 + $0x1764] ss:$8 sps:$4 sm:$0xff]   ;;  %v8656_v12 = vld [vmem:[%s9080_s10 + $0xb60] ss:$8 sps:$4 sm:$0xff]  }
 0x309   : > { %6289 = vmatprep.subr.bf16.mxu0 %v8575_v52  ;;  %v8659_v52 = vld [vmem:[%s9080_s10 + $0x1760] ss:$8 sps:$4 sm:$0xff]  }
 0x30b   : > { %5798 = vmatpush1.bf16.msra.mxu1 %v8570_v58  ;;  %v8664_v58 = vld [vmem:[%s9080_s10 + $0xb74] ss:$8 sps:$4 sm:$0xff]  }
 0x30c   : > { %6290 = vmatpush1.bf16.msra.mxu0 %v8573_v56  ;;  %5799 = vmatprep.subr.bf16.mxu1 %v8578_v26  ;;  %v8667_v56 = vld [vmem:[%s9080_s10 + $0x1774] ss:$8 sps:$4 sm:$0xff]   ;;  %v8662_v26 = vld [vmem:[%s9080_s10 + $0xb70] ss:$8 sps:$4 sm:$0xff]  }
 0x30d   : > { %6291 = vmatprep.subr.bf16.mxu0 %v8581_v27  ;;  %v8665_v27 = vld [vmem:[%s9080_s10 + $0x1770] ss:$8 sps:$4 sm:$0xff]  }
 0x30f   : > { %5800 = vmatpush1.bf16.msra.mxu1 %v8576_v28  ;;  %v8670_v28 = vld [vmem:[%s9080_s10 + $0xb84] ss:$8 sps:$4 sm:$0xff]  }
 0x310   : > { %6292 = vmatpush1.bf16.msra.mxu0 %v8579_v29  ;;  %5801 = vmatprep.subr.bf16.mxu1 %v8584_v30  ;;  %v8673_v29 = vld [vmem:[%s9080_s10 + $0x1784] ss:$8 sps:$4 sm:$0xff]   ;;  %v8668_v30 = vld [vmem:[%s9080_s10 + $0xb80] ss:$8 sps:$4 sm:$0xff]  }
 0x311   : > { %6293 = vmatprep.subr.bf16.mxu0 %v8587_v31  ;;  %v8671_v31 = vld [vmem:[%s9080_s10 + $0x1780] ss:$8 sps:$4 sm:$0xff]  }
 0x313   : > { %5802 = vmatpush1.bf16.msra.mxu1 %v8582_v15  ;;  %v8676_v15 = vld [vmem:[%s9080_s10 + $0xb94] ss:$8 sps:$4 sm:$0xff]  }
 0x314   : > { %6294 = vmatpush1.bf16.msra.mxu0 %v8585_v33  ;;  %5803 = vmatprep.subr.bf16.mxu1 %v8590_v34  ;;  %v8679_v33 = vld [vmem:[%s9080_s10 + $0x1794] ss:$8 sps:$4 sm:$0xff]   ;;  %v8674_v34 = vld [vmem:[%s9080_s10 + $0xb90] ss:$8 sps:$4 sm:$0xff]  }
 0x315   : > { %6295 = vmatprep.subr.bf16.mxu0 %v8593_v35  ;;  %v8677_v35 = vld [vmem:[%s9080_s10 + $0x1790] ss:$8 sps:$4 sm:$0xff]  }
 0x317   : > { %5804 = vmatpush1.bf16.msra.mxu1 %v8588_v42  ;;  %v8682_v42 = vld [vmem:[%s9080_s10 + $0xba4] ss:$8 sps:$4 sm:$0xff]  }
 0x318   : > { %6296 = vmatpush1.bf16.msra.mxu0 %v8591_v44  ;;  %5805 = vmatprep.subr.bf16.mxu1 %v8596_v24  ;;  %v8685_v44 = vld [vmem:[%s9080_s10 + $0x17a4] ss:$8 sps:$4 sm:$0xff]   ;;  %v8680_v24 = vld [vmem:[%s9080_s10 + $0xba0] ss:$8 sps:$4 sm:$0xff]  }
 0x319   : > { %6297 = vmatprep.subr.bf16.mxu0 %v8599_v45  ;;  %v8683_v45 = vld [vmem:[%s9080_s10 + $0x17a0] ss:$8 sps:$4 sm:$0xff]  }
 0x31b   : > { %5806 = vmatpush1.bf16.msra.mxu1 %v8594_v41  ;;  %v8688_v41 = vld [vmem:[%s9080_s10 + $0xbb4] ss:$8 sps:$4 sm:$0xff]  }
 0x31c   : > { %6298 = vmatpush1.bf16.msra.mxu0 %v8597_v25  ;;  %5807 = vmatprep.subr.bf16.mxu1 %v8602_v59  ;;  %v8691_v25 = vld [vmem:[%s9080_s10 + $0x17b4] ss:$8 sps:$4 sm:$0xff]   ;;  %v8686_v59 = vld [vmem:[%s9080_s10 + $0xbb0] ss:$8 sps:$4 sm:$0xff]  }
 0x31d   : > { %6299 = vmatprep.subr.bf16.mxu0 %v8605_v13  ;;  %v8689_v13 = vld [vmem:[%s9080_s10 + $0x17b0] ss:$8 sps:$4 sm:$0xff]  }
 0x31f   : > { %5808 = vmatpush1.bf16.msra.mxu1 %v8600_v32  ;;  %v8694_v32 = vld [vmem:[%s9080_s10 + $0xbc4] ss:$8 sps:$4 sm:$0xff]  }
 0x320   : > { %6300 = vmatpush1.bf16.msra.mxu0 %v8603_v36  ;;  %5809 = vmatprep.subr.bf16.mxu1 %v8608_v14  ;;  %v8697_v36 = vld [vmem:[%s9080_s10 + $0x17c4] ss:$8 sps:$4 sm:$0xff]   ;;  %v8692_v14 = vld [vmem:[%s9080_s10 + $0xbc0] ss:$8 sps:$4 sm:$0xff]  }
 0x321   : > { %6301 = vmatprep.subr.bf16.mxu0 %v8611_v47  ;;  %v8695_v47 = vld [vmem:[%s9080_s10 + $0x17c0] ss:$8 sps:$4 sm:$0xff]  }
 0x323   : > { %5810 = vmatpush1.bf16.msra.mxu1 %v8606_v16  ;;  %v8700_v16 = vld [vmem:[%s9080_s10 + $0xbd4] ss:$8 sps:$4 sm:$0xff]  }
 0x324   : > { %6302 = vmatpush1.bf16.msra.mxu0 %v8609_v48  ;;  %5811 = vmatprep.subr.bf16.mxu1 %v8614_v50  ;;  %v8703_v48 = vld [vmem:[%s9080_s10 + $0x17d4] ss:$8 sps:$4 sm:$0xff]   ;;  %v8698_v50 = vld [vmem:[%s9080_s10 + $0xbd0] ss:$8 sps:$4 sm:$0xff]  }
 0x325   : > { %6303 = vmatprep.subr.bf16.mxu0 %v8617_v51  ;;  %v8701_v51 = vld [vmem:[%s9080_s10 + $0x17d0] ss:$8 sps:$4 sm:$0xff]  }
 0x327   : > { %5812 = vmatpush1.bf16.msra.mxu1 %v8612_v53  ;;  %v8706_v53 = vld [vmem:[%s9080_s10 + $0xbe4] ss:$8 sps:$4 sm:$0xff]  }
 0x328   : > { %6304 = vmatpush1.bf16.msra.mxu0 %v8615_v54  ;;  %5822 = vmatprep.subr.bf16.mxu1 %v8621_v37  ;;  %v8709_v54 = vld [vmem:[%s9080_s10 + $0x17e4] ss:$8 sps:$4 sm:$0xff]   ;;  %v8704_v37 = vld [vmem:[%s9080_s10 + $0xbe0] ss:$8 sps:$4 sm:$0xff]  }
 0x329   : > { %6314 = vmatprep.subr.bf16.mxu0 %v8625_v39  ;;  %v8707_v39 = vld [vmem:[%s9080_s10 + $0x17e0] ss:$8 sps:$4 sm:$0xff]  }
 0x32a   : > { %5814 = vmatmul.mubr.bf16.vlgmr.msra.gmra.mrb[0].mxu1 %v10029_v60 }
 0x32b   : > { %6306 = vmatmul.mubr.bf16.vlgmr.msra.gmra.mrb[0].mxu0 %v10033_v61  ;;  %5823 = vmatpush1.bf16.msra.mxu1 %v8619_v62  ;;  %v8712_v62 = vld [vmem:[%s9080_s10 + $0xbf4] ss:$8 sps:$4 sm:$0xff]  }
 0x32c   : > { %6315 = vmatpush1.bf16.msra.mxu0 %v8623_v63  ;;  %5824 = vmatprep.subr.bf16.mxu1 %v8628_v40  ;;  %v8715_v63 = vld [vmem:[%s9080_s10 + $0x17f4] ss:$8 sps:$4 sm:$0xff]   ;;  %v8710_v40 = vld [vmem:[%s9080_s10 + $0xbf0] ss:$8 sps:$4 sm:$0xff]  }
 0x32d   : > { %6316 = vmatprep.subr.bf16.mxu0 %v8631_v0  ;;  %5854 = vmatprep.mubr.bf16.mxu1 %v1240_v22  ;;  %v8713_v0 = vld [vmem:[%s9080_s10 + $0x17f0] ss:$8 sps:$4 sm:$0xff]   ;;  %v8718_v22 = vld [vmem:[%s9080_s10 + $0x1804] ss:$8 sps:$4 sm:$0xff]  }
 0x32e   : > { %6346 = vmatprep.mubr.bf16.mxu0 %v1387_v55  ;;  %v1238_v55 = vcombine.high %v10029_v60, %v10029_v60  ;;  %v8724_v60 = vld [vmem:[%s9080_s10 + $0x1824] ss:$8 sps:$4 sm:$0xff]  }
 0x32f   : > { %5825 = vmatpush1.bf16.msra.mxu1 %v8626_v46  ;;  %v1385_v46 = vcombine.high %v10033_v61, %v10033_v61  ;;  %v8722_v61 = vld [vmem:[%s9080_s10 + $0x1820] ss:$8 sps:$4 sm:$0xff]  }
 0x330   : > { %6317 = vmatpush1.bf16.msra.mxu0 %v8629_v2  ;;  %5826 = vmatprep.subr.bf16.mxu1 %v8634_v38  ;;  %v8716_v2 = vld [vmem:[%s9080_s10 + $0x1800] ss:$8 sps:$4 sm:$0xff]   ;;  %v8721_v38 = vld [vmem:[%s9080_s10 + $0x1814] ss:$8 sps:$4 sm:$0xff]  }
 0x331   : > { %6318 = vmatprep.subr.bf16.mxu0 %v8637_v57  ;;  %v8719_v57 = vld [vmem:[%s9080_s10 + $0x1810] ss:$8 sps:$4 sm:$0xff]  }
 0x333   : > { %5827 = vmatpush1.bf16.msra.mxu1 %v8632_v17  ;;  %v8885_v17 = vmov 0  }
 0x334   : > { %6319 = vmatpush1.bf16.msra.mxu0 %v8635_v3  ;;  %5828 = vmatprep.subr.bf16.mxu1 %v8640_v4  ;;  %v8727_v3 = vld [vmem:[%s9080_s10 + $0x1834] ss:$8 sps:$4 sm:$0xff]   ;;  %v8725_v4 = vld [vmem:[%s9080_s10 + $0x1830] ss:$8 sps:$4 sm:$0xff]  }
 0x335   : > { %6320 = vmatprep.subr.bf16.mxu0 %v8643_v5  ;;  %v8730_v5 = vld [vmem:[%s9080_s10 + $0x1844] ss:$8 sps:$4 sm:$0xff]  }
 0x337   : > { %5829 = vmatpush1.bf16.msra.mxu1 %v8638_v6  ;;  %v8728_v6 = vld [vmem:[%s9080_s10 + $0x1840] ss:$8 sps:$4 sm:$0xff]  }
 0x338   : > { %6321 = vmatpush1.bf16.msra.mxu0 %v8641_v7  ;;  %5830 = vmatprep.subr.bf16.mxu1 %v8646_v8  ;;  %v8733_v7 = vld [vmem:[%s9080_s10 + $0x1854] ss:$8 sps:$4 sm:$0xff]   ;;  %v8731_v8 = vld [vmem:[%s9080_s10 + $0x1850] ss:$8 sps:$4 sm:$0xff]  }
 0x339   : > { %6322 = vmatprep.subr.bf16.mxu0 %v8649_v9  ;;  %v8736_v9 = vld [vmem:[%s9080_s10 + $0x1864] ss:$8 sps:$4 sm:$0xff]  }
 0x33b   : > { %5831 = vmatpush1.bf16.msra.mxu1 %v8644_v10  ;;  %v8734_v10 = vld [vmem:[%s9080_s10 + $0x1860] ss:$8 sps:$4 sm:$0xff]  }
 0x33c   : > { %6323 = vmatpush1.bf16.msra.mxu0 %v8647_v11  ;;  %5832 = vmatprep.subr.bf16.mxu1 %v8652_v18  ;;  %v8739_v11 = vld [vmem:[%s9080_s10 + $0x1874] ss:$8 sps:$4 sm:$0xff]   ;;  %v8737_v18 = vld [vmem:[%s9080_s10 + $0x1870] ss:$8 sps:$4 sm:$0xff]   ;;  %s6615_s10 = sshll.u32 %s8930_s19, 1 }
 0x33d   : > { %6324 = vmatprep.subr.bf16.mxu0 %v8655_v19  ;;  %v6617_v19 = vld.sshfl [vmem:[%s10149_s0 + $0x30] sm:$0x1 pattern:$0x75316420]  ;;  %p290_p10 = scmp.lt.s32.totalorder %s6615_s10, 7 }
 0x33f   : > { %5833 = vmatpush1.bf16.msra.mxu1 %v8650_v20  ;;  %v1401_v20 = vrot.slane %v6617_v19, %v9143_v49  ;;  %s10168_s10 = smov (!%p290_p10, %s6615_s10), 7 }
 0x340   : > { %6325 = vmatpush1.bf16.msra.mxu0 %v8653_v21  ;;  %5834 = vmatprep.subr.bf16.mxu1 %v8658_v1  ;;  %s6616_s19 = sshll.u32 %s10168_s10, 1 }
 0x341   : > { %6326 = vmatprep.subr.bf16.mxu0 %v8661_v23 }
 0x343   : > { %5835 = vmatpush1.bf16.msra.mxu1 %v8656_v12 }
 0x344   : > { %6327 = vmatpush1.bf16.msra.mxu0 %v8659_v52  ;;  %5836 = vmatprep.subr.bf16.mxu1 %v8664_v58 }
 0x345   : > { %6328 = vmatprep.subr.bf16.mxu0 %v8667_v56 }
 0x347   : > { %5837 = vmatpush1.bf16.msra.mxu1 %v8662_v26 }
 0x348   : > { %6329 = vmatpush1.bf16.msra.mxu0 %v8665_v27  ;;  %5838 = vmatprep.subr.bf16.mxu1 %v8670_v28 }
 0x349   : > { %6330 = vmatprep.subr.bf16.mxu0 %v8673_v29 }
 0x34b   : > { %5839 = vmatpush1.bf16.msra.mxu1 %v8668_v30 }
 0x34c   : > { %6331 = vmatpush1.bf16.msra.mxu0 %v8671_v31  ;;  %5840 = vmatprep.subr.bf16.mxu1 %v8676_v15 }
 0x34d   : > { %6332 = vmatprep.subr.bf16.mxu0 %v8679_v33 }
 0x34f   : > { %5841 = vmatpush1.bf16.msra.mxu1 %v8674_v34 }
 0x350   : > { %6333 = vmatpush1.bf16.msra.mxu0 %v8677_v35  ;;  %5842 = vmatprep.subr.bf16.mxu1 %v8682_v42 }
 0x351   : > { %6334 = vmatprep.subr.bf16.mxu0 %v8685_v44 }
 0x353   : > { %5843 = vmatpush1.bf16.msra.mxu1 %v8680_v24 }
 0x354   : > { %6335 = vmatpush1.bf16.msra.mxu0 %v8683_v45  ;;  %5844 = vmatprep.subr.bf16.mxu1 %v8688_v41 }
 0x355   : > { %6336 = vmatprep.subr.bf16.mxu0 %v8691_v25 }
 0x357   : > { %5845 = vmatpush1.bf16.msra.mxu1 %v8686_v59 }
 0x358   : > { %6337 = vmatpush1.bf16.msra.mxu0 %v8689_v13  ;;  %5846 = vmatprep.subr.bf16.mxu1 %v8694_v32 }
 0x359   : > { %6338 = vmatprep.subr.bf16.mxu0 %v8697_v36 }
 0x35b   : > { %5847 = vmatpush1.bf16.msra.mxu1 %v8692_v14 }
 0x35c   : > { %6339 = vmatpush1.bf16.msra.mxu0 %v8695_v47  ;;  %5848 = vmatprep.subr.bf16.mxu1 %v8700_v16 }
 0x35d   : > { %6340 = vmatprep.subr.bf16.mxu0 %v8703_v48 }
 0x35f   : > { %5849 = vmatpush1.bf16.msra.mxu1 %v8698_v50 }
 0x360   : > { %6341 = vmatpush1.bf16.msra.mxu0 %v8701_v51  ;;  %5850 = vmatprep.subr.bf16.mxu1 %v8706_v53 }
 0x361   : > { %6342 = vmatprep.subr.bf16.mxu0 %v8709_v54 }
 0x363   : > { %5851 = vmatpush1.bf16.msra.mxu1 %v8704_v37 }
 0x364   : > { %6343 = vmatpush1.bf16.msra.mxu0 %v8707_v39  ;;  %5852 = vmatprep.subr.bf16.mxu1 %v8712_v62 }
 0x365   : > { %6344 = vmatprep.subr.bf16.mxu0 %v8715_v63 }
 0x367   : > { %5853 = vmatpush1.bf16.msra.mxu1 %v8710_v40 }
 0x368   : > { %6345 = vmatpush1.bf16.msra.mxu0 %v8713_v0 }
 0x369   : > { %6355 = vmatprep.subr.bf16.mxu0 %v8718_v22 }
 0x36a   : > { %5855 = vmatmul.mubr.bf16.vlgmr.msra.gmra.mrb[0].mxu1 %v1238_v55 }
 0x36b   : > { %6347 = vmatmul.mubr.bf16.vlgmr.msra.gmra.mrb[0].mxu0 %v1385_v46 }
 0x36c   : > { %6356 = vmatpush1.bf16.msra.mxu0 %v8716_v2  ;;  %6387 = vmatprep.mubr.bf16.mxu0 %v8885_v17 }
 0x36d   : > { %6357 = vmatprep.subr.bf16.mxu0 %v8721_v38 }
 0x370   : > { %6358 = vmatpush1.bf16.msra.mxu0 %v8719_v57 }
 0x371   : > { %6359 = vmatprep.subr.bf16.mxu0 %v8724_v60 }
 0x374   : > { %6360 = vmatpush1.bf16.msra.mxu0 %v8722_v61  ;;  %v6448_v61 = vsub.s32 0, %v9135_v43 }
 0x375   : > { %6361 = vmatprep.subr.bf16.mxu0 %v8727_v3  ;;  %v6444_v3 = vld [vmem:[%s9090_s9] sm:$0x3]  ;;  %s293_s9 = scalar_lea.vmem %s10153_s4, %s6616_s19 }
 0x378   : > { %6362 = vmatpush1.bf16.msra.mxu0 %v8725_v4  ;;  %v6452_v4 = vsub.s32 1, %v9135_v43 }
 0x379   : > { %6363 = vmatprep.subr.bf16.mxu0 %v8730_v5  ;;  %v6458_v5 = vld [vmem:[%s251_s6] sm:$0x3] }
 0x37a   : > { %v6463_v19 = vrot.slane %v6458_v5, %v6448_v61 }
 0x37c   : > { %6364 = vmatpush1.bf16.msra.mxu0 %v8728_v6 }
 0x37d   : > { %6365 = vmatprep.subr.bf16.mxu0 %v8733_v7  ;;  %v6449_v7 = vrot.slane %v6444_v3, %v6448_v61 }
 0x380   : > { %6366 = vmatpush1.bf16.msra.mxu0 %v8731_v8 }
 0x381   : > { %6367 = vmatprep.subr.bf16.mxu0 %v8736_v9 }
 0x384   : > { %6368 = vmatpush1.bf16.msra.mxu0 %v8734_v10  ;;  %v6453_v10 = vrot.slane %v6444_v3, %v6452_v4 }
 0x385   : > { %6369 = vmatprep.subr.bf16.mxu0 %v8739_v11 }
 0x388   : > { %6370 = vmatpush1.bf16.msra.mxu0 %v8737_v18 }
 0x38b   : > { %6388 = vmatmul.mubr.bf16.vlgmr.msra.gmra.mrb[0].mxu0 %v1401_v20 }
 0x43d   : > { %v5856_v21 = vpop.f32.mrb[0].mxu1 }
 0x43e   : > { %v5858_v1 = vpop.f32.mrb[1].mxu1 }
 0x43f   : > { %v5860_v23 = vpop.f32.mrb[2].mxu1 }
 0x440   : > { %v5861_v12 = vpop.f32.mrb[3].mxu1 }
 0x45e   : > { %v6389_v52 = vpop.f32.mrb[0].mxu0 }
 0x45f   : > { %v7408_v58 = vadd.f32 %v6389_v52, %v5856_v21  ;;  %v6391_v56 = vpop.f32.mrb[1].mxu0  ;;  %v6467_v21 = vrot.slane %v6458_v5, %v6452_v4 }
 0x460   : > { %v7409_v26 = vadd.f32 %v6391_v56, %v5858_v1  ;;  %v6393_v27 = vpop.f32.mrb[2].mxu0 }
 0x461   : > { %v6397_v28 = vsel %vm6396_vm0, %v7408_v58, 0.0  ;;  %v6414_v29 = vmul.f32 %v7408_v58, %v7408_v58  ;;  %v6394_v30 = vpop.f32.mrb[3].mxu0 }
 0x462   : > { %v6398_v31 = vrot.slane %v6397_v28, 4  ;;  %v6404_v15 = vsel %vm6396_vm0, %v7409_v26, 0.0  ;;  %v6415_v33 = vmul.f32 %v7409_v26, %v7409_v26 }
 0x463   : > { %v6416_v34 = vsel %vm6396_vm0, %v6414_v29, 0.0  ;;  %v6405_v49 = vrot.slane %v6404_v15, 4 }
 0x464   : > { %v6399_v35 = vadd.f32 %v6398_v31, %v6397_v28  ;;  %v6417_v42 = vrot.slane %v6416_v34, 4  ;;  %v6423_v44 = vsel %vm6396_vm0, %v6415_v33, 0.0 }
 0x465   : > { %v6406_v24 = vadd.f32 %v6405_v49, %v6404_v15  ;;  %v6424_v45 = vrot.slane %v6423_v44, 4 }
 0x466   : > { %v6400_v41 = vrot.slane %v6399_v35, 2  ;;  %v6418_v25 = vadd.f32 %v6417_v42, %v6416_v34 }
 0x467   : > { %v6407_v59 = vrot.slane %v6406_v24, 2  ;;  %v6425_v13 = vadd.f32 %v6424_v45, %v6423_v44 }
 0x468   : > { %v6401_v32 = vadd.f32 %v6400_v41, %v6399_v35  ;;  %v6419_v36 = vrot.slane %v6418_v25, 2 }
 0x469   : > { %v6408_v14 = vadd.f32 %v6407_v59, %v6406_v24  ;;  %v6426_v47 = vrot.slane %v6425_v13, 2 }
 0x46a   : > { %v6402_v16 = vrot.slane %v6401_v32, 1  ;;  %v6420_v48 = vadd.f32 %v6419_v36, %v6418_v25 }
 0x46b   : > { %v6409_v50 = vrot.slane %v6408_v14, 1  ;;  %v6427_v51 = vadd.f32 %v6426_v47, %v6425_v13 }
 0x46c   : > { %v6403_v53 = vadd.f32 %v6402_v16, %v6401_v32  ;;  %v6421_v54 = vrot.slane %v6420_v48, 1 }
 0x46d   : > { %v6410_v37 = vadd.f32 %v6409_v50, %v6408_v14  ;;  %v6428_v39 = vrot.slane %v6427_v51, 1 }
 0x46e   : > { %v6412_v62 = vmul.f32 0.5, %v6403_v53  ;;  %v6422_v63 = vadd.f32 %v6421_v54, %v6420_v48 }
 0x46f   : > { %v6413_v40 = vmul.f32 0.5, %v6410_v37  ;;  %v6429_v0 = vadd.f32 %v6428_v39, %v6427_v51 }
 0x470   : > { %v6430_v22 = vmul.f32 0.5, %v6422_v63  ;;  %v6432_v55 = vmul.f32 %v6412_v62, %v6412_v62  ;;  %v6436_v6 = vsub.f32 %v7408_v58, %v6412_v62 }
 0x471   : > { %v6431_v46 = vmul.f32 0.5, %v6429_v0  ;;  %v6433_v2 = vmul.f32 %v6413_v40, %v6413_v40  ;;  %v6437_v9 = vsub.f32 %v7409_v26, %v6413_v40 }
 0x472   : > { %v6434_v38 = vsub.f32 %v6430_v22, %v6432_v55 }
 0x473   : > { %v6435_v57 = vsub.f32 %v6431_v46, %v6433_v2 }
 0x474   : > { %v6438_v17 = vadd.f32 1e-05, %v6434_v38 }
 0x475   : > { %v6439_v60 = vadd.f32 1e-05, %v6435_v57 }
 0x476   : > { %8740 = vrsqrt.f32 %v6438_v17 }
 0x477   : > { %8742 = vrsqrt.f32 %v6439_v60 }
 0x480   : > { %v8741_v8 = vpop.eup %8740 }
 0x481   : > { %v8743_v11 = vpop.eup %8742  ;;  %v6442_v18 = vmul.f32 %v8741_v8, %v6436_v6 }
 0x482   : > { %v6443_v20 = vmul.f32 %v8743_v11, %v6437_v9 }
 0x483   : > { %v6456_v1 = vmul.f32 %v6449_v7, %v6442_v18 }
 0x484   : > { %v6457_v23 = vmul.f32 %v6453_v10, %v6443_v20 }
 0x485   : > { %v6470_v12 = vadd.f32 %v6463_v19, %v6456_v1 }
 0x486   : > { %v6471_v52 = vadd.f32 %v6467_v21, %v6457_v23 }
 0x487   : > { %vm6472_vm1 = vcmp.ge.f32.partialorder %v6470_v12, 0.0  ;;  %v6474_v43 = vmul.f32 0.1, %v6470_v12 }
 0x488   : > { %vm6473_vm2 = vcmp.ge.f32.partialorder %v6471_v52, 0.0  ;;  %v6475_v58 = vmul.f32 0.1, %v6471_v52 }
 0x489   : > { %v6476_v56 = vsel %vm6472_vm1, %v6470_v12, %v6474_v43 }
 0x48a   : > { %v6477_v26 = vsel %vm6473_vm2, %v6471_v52, %v6475_v58 }
 0x48b   : > { %v6480_v27 = vcombine.low %v6476_v56, %v6477_v26 }
 0x48d   : > { %7402 = vst.sshfl [vmem:[%s293_s9] sm:$0x33 pattern:$0x76325410] %v6480_v27 }
 0x48e PF: > { %p17_p0 = scmp.ge.s32.totalorder %s8933_s20, 6   ;;  %s10163_s15 = smov %s8868_s16 }
 0x48f   : > { %s10164_s16 = smov %s8872_s17  ;;  %s10165_s17 = smov %s8943_s23 }
 0x490   : > { %s10166_s18 = smov %s8933_s20  ;;  %19 = sbr.rel (!%p17_p0) target bundleno = 5 (0x5), region = 100 }
 0x497   :  { %6512 = vsyncpa [#allocation3], 1 }
 0x498   :  { %6514 = vsyncpa [#allocation3 + $0x1], 1 }
 0x499   :  { %6515 = vsyncpa [#allocation5], 1 }
 0x49a   :  { %6517 = vsyncpa [#allocation5 + $0x1], 1 }

</bundles_post_ra>
